<compile_context>
chip_gen: v7x
topology: tpu7x:2x2x1
jax: 0.10.0
libtpu: 0.0.40
codegen_flags: <defaults>
</compile_context>

<pallas_src>
import numpy as np
import jax
import jax.numpy as jnp
from jax.experimental import pallas as pl
from jax.experimental.pallas import tpu as pltpu

LRELU_SLOPE = 0.2
IN_EPS = 1e-5


# ----------------------------------------------------------------------------
# Fused Pallas kernel: whole StyleExtractor forward for one batch element
# ----------------------------------------------------------------------------
def _fused_style_kernel(x_ref, m1_ref, b1_ref, p1_ref,
                        m2_ref, b2_ref, p2_ref,
                        wr_ref, br_ref, wh_ref, bh_ref, o_ref):
    """x_ref: (1, Hin*Win*Cin) flattened NHWC image of one batch element.

    m*_ref: dense conv-operator matrices (conv as one matmul)
    b*_ref: conv bias replicated over spatial positions (1, P*C)
    p*_ref: per-channel spatial-mean projector (P*C, P*C)
    wr_ref/br_ref: representor Linear (rows pre-permuted for NCHW flatten)
    wh_ref/bh_ref: concatenated conv_kernel_gen_1 / _2 Linears (lane-dense 1152)
    o_ref: (1, 2*nkc*nkc*9) concatenated head outputs
    """
    def conv_in_lrelu(x, m_ref, b_ref, p_ref):
        # conv (as matmul) + bias
        y = jnp.dot(x, m_ref[...], preferred_element_type=jnp.float32) + b_ref[...]
        # InstanceNorm2d(affine=False): per-channel mean/var over spatial
        # positions, via the averaging projector; single-pass variance.
        mean_b = jnp.dot(y, p_ref[...], preferred_element_type=jnp.float32)
        msq_b = jnp.dot(y * y, p_ref[...], preferred_element_type=jnp.float32)
        var_b = jnp.maximum(msq_b - mean_b * mean_b, 0.0)
        yn = (y - mean_b) * jax.lax.rsqrt(var_b + IN_EPS)
        # LeakyReLU(0.2)
        return jnp.where(yn > 0, yn, LRELU_SLOPE * yn)

    a1 = conv_in_lrelu(x_ref[...], m1_ref, b1_ref, p1_ref)   # (1, P1*C1)
    a2 = conv_in_lrelu(a1, m2_ref, b2_ref, p2_ref)           # (1, P2*C2)

    # representor Linear + LeakyReLU (flatten permutation folded into wr)
    d = jnp.dot(a2, wr_ref[...], preferred_element_type=jnp.float32) + br_ref[...]
    d = jnp.where(d > 0, d, LRELU_SLOPE * d)

    # both conv_kernel_gen heads as one lane-dense matmul
    o_ref[...] = (jnp.dot(d, wh_ref[...], preferred_element_type=jnp.float32)
                  + bh_ref[...]).astype(o_ref.dtype)


def fused_style_forward(x_rows, fused):
    """x_rows: (B, 1, Hin*Win*Cin); returns (B, 1, 2*out_dim)."""
    B, _, fin = x_rows.shape
    out2 = fused["wh"].shape[1]

    def full(a):
        return pl.BlockSpec(a.shape, lambda *_: (0,) * a.ndim)

    return pl.pallas_call(
        _fused_style_kernel,
        out_shape=jax.ShapeDtypeStruct((B, 1, out2), jnp.float32),
        grid=(B,),
        in_specs=[
            pl.BlockSpec((None, 1, fin), lambda b: (b, 0, 0)),
            full(fused["m1"]), full(fused["b1"]), full(fused["p1"]),
            full(fused["m2"]), full(fused["b2"]), full(fused["p2"]),
            full(fused["wr"]), full(fused["br"]),
            full(fused["wh"]), full(fused["bh"]),
        ],
        out_specs=pl.BlockSpec((None, 1, out2), lambda b: (b, 0, 0)),
        compiler_params=pltpu.CompilerParams(dimension_semantics=("parallel",)),
    )(x_rows, fused["m1"], fused["b1"], fused["p1"],
      fused["m2"], fused["b2"], fused["p2"],
      fused["wr"], fused["br"], fused["wh"], fused["bh"])


# ----------------------------------------------------------------------------
# Host-side one-time prep: fold convs / flatten into matmul operators
# ----------------------------------------------------------------------------
def _conv_as_matmul_operator(w_hwio, hin, win, stride=2, pad=1):
    """M[(h*Win+w)*Cin+ci, (ho*Wo+wo)*Cout+co] so conv == x_flat @ M."""
    kh, kw, cin, cout = w_hwio.shape
    hout = (hin + 2 * pad - kh) // stride + 1
    wout = (win + 2 * pad - kw) // stride + 1
    w = np.asarray(w_hwio, dtype=np.float32)
    mat = np.zeros((hin * win * cin, hout * wout * cout), np.float32)
    for ho in range(hout):
        for wo in range(wout):
            for dy in range(kh):
                for dx in range(kw):
                    hi = ho * stride + dy - pad
                    wi = wo * stride + dx - pad
                    if 0 <= hi < hin and 0 <= wi < win:
                        rows = (hi * win + wi) * cin + np.arange(cin)
                        cols = (ho * wout + wo) * cout + np.arange(cout)
                        mat[np.ix_(rows, cols)] += w[dy, dx]
    return mat, hout, wout


def _channel_mean_projector(npos, cout):
    """P so that (y @ P)[p*C+c] = mean over positions of channel c."""
    return np.tile(np.eye(cout, dtype=np.float32), (npos, npos)) / float(npos)


def prepare_fused_params(params, input_size):
    (cw1, cb1), (cw2, cb2) = params["convs"]
    c1 = cw1.shape[-1]
    c2 = cw2.shape[-1]

    m1, h1, w1o = _conv_as_matmul_operator(cw1, input_size, input_size)
    m2, h2, w2o = _conv_as_matmul_operator(cw2, h1, w1o)
    n1, n2 = h1 * w1o, h2 * w2o

    p1 = _channel_mean_projector(n1, c1)
    p2 = _channel_mean_projector(n2, c2)

    b1row = np.tile(np.asarray(cb1, np.float32).reshape(-1), n1)[None, :]
    b2row = np.tile(np.asarray(cb2, np.float32).reshape(-1), n2)[None, :]

    # Fold torch's NCHW .view(B,-1) flatten (row index c*n2 + p) into a row
    # permutation of the representor weight (kernel feature layout is p*C + c).
    wr = np.asarray(params["wr"], np.float32)
    perm = np.array([c * n2 + p for p in range(n2) for c in range(c2)])
    wr_perm = wr[perm, :]

    wh = np.concatenate([np.asarray(params["w1"], np.float32),
                         np.asarray(params["w2"], np.float32)], axis=1)
    bh = np.concatenate([np.asarray(params["b1"], np.float32),
                         np.asarray(params["b2"], np.float32)], axis=1)

    return dict(
        m1=jnp.asarray(m1), b1=jnp.asarray(b1row), p1=jnp.asarray(p1),
        m2=jnp.asarray(m2), b2=jnp.asarray(b2row), p2=jnp.asarray(p2),
        wr=jnp.asarray(wr_perm), br=jnp.asarray(params["br"], jnp.float32),
        wh=jnp.asarray(wh), bh=jnp.asarray(bh),
    )


# ----------------------------------------------------------------------------
# Parameter init (xavier-style, gain 0.02, zero biases) and forward wrapper
# ----------------------------------------------------------------------------
def xavier_std(fan_in, fan_out, gain=0.02):
    return gain * (2.0 / (fan_in + fan_out)) ** 0.5


def init_params(key, input_nc, downsampling_nf, input_size, n_hidden, nkc):
    ks = jax.random.split(key, 3 + len(downsampling_nf))
    convs = []
    last_nf, fs = input_nc, input_size
    for i, nf in enumerate(downsampling_nf):
        std = xavier_std(last_nf * 9, nf * 9)
        w = std * jax.random.normal(ks[i], (3, 3, last_nf, nf), jnp.float32)
        b = jnp.zeros((1, nf), jnp.float32)
        convs.append((w, b))
        last_nf = nf
        fs = (fs - 1) // 2 + 1
    feat_dim = downsampling_nf[-1] * fs * fs
    out_dim = nkc * nkc * 3 * 3
    wr = xavier_std(feat_dim, n_hidden) * jax.random.normal(
        ks[-3], (feat_dim, n_hidden), jnp.float32)
    w1 = xavier_std(n_hidden, out_dim) * jax.random.normal(
        ks[-2], (n_hidden, out_dim), jnp.float32)
    w2 = xavier_std(n_hidden, out_dim) * jax.random.normal(
        ks[-1], (n_hidden, out_dim), jnp.float32)
    return dict(convs=convs, wr=wr, br=jnp.zeros((1, n_hidden), jnp.float32),
                w1=w1, b1=jnp.zeros((1, out_dim), jnp.float32),
                w2=w2, b2=jnp.zeros((1, out_dim), jnp.float32))


def style_extractor_forward(x_nchw, fused, nkc):
    B = x_nchw.shape[0]
    x_rows = jnp.transpose(x_nchw, (0, 2, 3, 1)).reshape(B, 1, -1)  # NHWC flat
    out = fused_style_forward(x_rows, fused).reshape(B, -1)          # (B, 2*O)
    half = out.shape[1] // 2
    k1 = out[:, :half].reshape(B, nkc, nkc, 3, 3)
    k2 = out[:, half:].reshape(B, nkc, nkc, 3, 3)
    # same nested-list structure as the torch module
    return [[k for k in k1], [k for k in k2]]


# ----------------------------------------------------------------------------
# Pure-JAX reference (mirrors the torch module exactly)
# ----------------------------------------------------------------------------
def reference_forward(x_nchw, params, nkc):
    x = jnp.transpose(x_nchw, (0, 2, 3, 1))
    h = x
    for w_hwio, b in params["convs"]:
        y = jax.lax.conv_general_dilated(
            h, w_hwio, window_strides=(2, 2), padding=((1, 1), (1, 1)),
            dimension_numbers=("NHWC", "HWIO", "NHWC")) + b
        mean = jnp.mean(y, axis=(1, 2), keepdims=True)
        var = jnp.mean((y - mean) ** 2, axis=(1, 2), keepdims=True)
        y = (y - mean) / jnp.sqrt(var + IN_EPS)
        h = jnp.where(y > 0, y, LRELU_SLOPE * y)
    B = h.shape[0]
    feats = jnp.transpose(h, (0, 3, 1, 2)).reshape(B, -1)
    hid = feats @ params["wr"] + params["br"]
    hid = jnp.where(hid > 0, hid, LRELU_SLOPE * hid)
    k1 = (hid @ params["w1"] + params["b1"]).reshape(B, nkc, nkc, 3, 3)
    k2 = (hid @ params["w2"] + params["b2"]).reshape(B, nkc, nkc, 3, 3)
    return k1, k2


if __name__ == "__main__":
    # Module-consistent small config: StyleExtractor(input_size=16,
    #   n_kernel_channels=8, same_size_nf=[], downsampling_nf=[8, 8],
    #   n_hidden=32); RGB input (input_nc=3 per Encoder default).
    B, C_IN, HW = 2, 3, 16
    NKC, N_HIDDEN = 8, 32
    DOWN_NF = [8, 8]

    key = jax.random.PRNGKey(0)
    kx, kp = jax.random.split(key)
    x = jax.random.normal(kx, (B, C_IN, HW, HW), jnp.float32)
    params = init_params(kp, C_IN, DOWN_NF, HW, N_HIDDEN, NKC)

    fused = prepare_fused_params(params, HW)   # one-time host prep
    out = style_extractor_forward(x, fused, NKC)
    out = jax.block_until_ready(out)

    # sanity-check against a pure-JAX reference
    ref_k1, ref_k2 = reference_forward(x, params, NKC)
    got_k1 = jnp.stack(out[0])
    got_k2 = jnp.stack(out[1])
    assert got_k1.shape == (B, NKC, NKC, 3, 3)
    assert got_k2.shape == (B, NKC, NKC, 3, 3)
    assert bool(jnp.all(jnp.isfinite(got_k1))) and bool(jnp.all(jnp.isfinite(got_k2)))
    assert bool(jnp.allclose(got_k1, ref_k1, atol=1e-3, rtol=1e-3))
    assert bool(jnp.allclose(got_k2, ref_k2, atol=1e-3, rtol=1e-3))

    print("KERNEL_OK")
</pallas_src>

<mosaic_0001>
module attributes {stable_mosaic.version = 11 : i64} {
  func.func @_fused_style_kernel(%arg0: i32, %arg1: memref<1x1x768xf32, #tpu.memory_space<vmem>>, %arg2: memref<768x512xf32, #tpu.memory_space<vmem>>, %arg3: memref<1x512xf32, #tpu.memory_space<vmem>>, %arg4: memref<512x512xf32, #tpu.memory_space<vmem>>, %arg5: memref<512x128xf32, #tpu.memory_space<vmem>>, %arg6: memref<1x128xf32, #tpu.memory_space<vmem>>, %arg7: memref<128x128xf32, #tpu.memory_space<vmem>>, %arg8: memref<128x32xf32, #tpu.memory_space<vmem>>, %arg9: memref<1x32xf32, #tpu.memory_space<vmem>>, %arg10: memref<32x1152xf32, #tpu.memory_space<vmem>>, %arg11: memref<1x1152xf32, #tpu.memory_space<vmem>>, %arg12: memref<1x1x1152xf32, #tpu.memory_space<vmem>>) attributes {dimension_semantics = [#tpu.dimension_semantics<parallel>], iteration_bounds = array<i64: 2>, scalar_prefetch = 0 : i64, scratch_operands = 0 : i64, tpu.core_type = #tpu.core_type<tc>, window_params = [{transform_indices = @transform_0, window_bounds = array<i64: 1, 1, 768>}, {pipeline_mode = #tpu.pipeline_mode<synchronous>, transform_indices = @transform_1, window_bounds = array<i64: 768, 512>}, {pipeline_mode = #tpu.pipeline_mode<synchronous>, transform_indices = @transform_2, window_bounds = array<i64: 1, 512>}, {pipeline_mode = #tpu.pipeline_mode<synchronous>, transform_indices = @transform_3, window_bounds = array<i64: 512, 512>}, {pipeline_mode = #tpu.pipeline_mode<synchronous>, transform_indices = @transform_4, window_bounds = array<i64: 512, 128>}, {pipeline_mode = #tpu.pipeline_mode<synchronous>, transform_indices = @transform_5, window_bounds = array<i64: 1, 128>}, {pipeline_mode = #tpu.pipeline_mode<synchronous>, transform_indices = @transform_6, window_bounds = array<i64: 128, 128>}, {pipeline_mode = #tpu.pipeline_mode<synchronous>, transform_indices = @transform_7, window_bounds = array<i64: 128, 32>}, {pipeline_mode = #tpu.pipeline_mode<synchronous>, transform_indices = @transform_8, window_bounds = array<i64: 1, 32>}, {pipeline_mode = #tpu.pipeline_mode<synchronous>, transform_indices = @transform_9, window_bounds = array<i64: 32, 1152>}, {pipeline_mode = #tpu.pipeline_mode<synchronous>, transform_indices = @transform_10, window_bounds = array<i64: 1, 1152>}, {transform_indices = @transform_11, window_bounds = array<i64: 1, 1, 1152>}]} {
    %c0 = arith.constant 0 : index
    %c0_0 = arith.constant 0 : index
    %c0_1 = arith.constant 0 : index
    %0 = vector.load %arg1[%c0, %c0_0, %c0_1] : memref<1x1x768xf32, #tpu.memory_space<vmem>>, vector<1x1x768xf32>
    %1 = vector.shape_cast %0 : vector<1x1x768xf32> to vector<1x768xf32>
    %c0_2 = arith.constant 0 : index
    %c0_3 = arith.constant 0 : index
    %2 = vector.load %arg2[%c0_2, %c0_3] : memref<768x512xf32, #tpu.memory_space<vmem>>, vector<768x512xf32>
    %cst = arith.constant dense<0.000000e+00> : vector<1x512xf32>
    %3 = tpu.matmul %1, %2, %cst {dimension_numbers = #tpu.dot_dimension_numbers<[1], [0], [0], [1], [0, 0, 1, 1], [], []>} : vector<1x768xf32>, vector<768x512xf32>, vector<1x512xf32> -> vector<1x512xf32>
    %c0_4 = arith.constant 0 : index
    %c0_5 = arith.constant 0 : index
    %4 = vector.load %arg3[%c0_4, %c0_5] : memref<1x512xf32, #tpu.memory_space<vmem>>, vector<1x512xf32>
    %5 = arith.addf %3, %4 : vector<1x512xf32>
    %c0_6 = arith.constant 0 : index
    %c0_7 = arith.constant 0 : index
    %6 = vector.load %arg4[%c0_6, %c0_7] : memref<512x512xf32, #tpu.memory_space<vmem>>, vector<512x512xf32>
    %cst_8 = arith.constant dense<0.000000e+00> : vector<1x512xf32>
    %7 = tpu.matmul %5, %6, %cst_8 {dimension_numbers = #tpu.dot_dimension_numbers<[1], [0], [0], [1], [0, 0, 1, 1], [], []>} : vector<1x512xf32>, vector<512x512xf32>, vector<1x512xf32> -> vector<1x512xf32>
    %8 = arith.mulf %5, %5 : vector<1x512xf32>
    %c0_9 = arith.constant 0 : index
    %c0_10 = arith.constant 0 : index
    %9 = vector.load %arg4[%c0_9, %c0_10] : memref<512x512xf32, #tpu.memory_space<vmem>>, vector<512x512xf32>
    %cst_11 = arith.constant dense<0.000000e+00> : vector<1x512xf32>
    %10 = tpu.matmul %8, %9, %cst_11 {dimension_numbers = #tpu.dot_dimension_numbers<[1], [0], [0], [1], [0, 0, 1, 1], [], []>} : vector<1x512xf32>, vector<512x512xf32>, vector<1x512xf32> -> vector<1x512xf32>
    %11 = arith.mulf %7, %7 : vector<1x512xf32>
    %12 = arith.subf %10, %11 : vector<1x512xf32>
    %cst_12 = arith.constant 0.000000e+00 : f32
    %13 = vector.broadcast %cst_12 : f32 to vector<1x512xf32>
    %14 = arith.maximumf %12, %13 : vector<1x512xf32>
    %15 = arith.subf %5, %7 : vector<1x512xf32>
    %cst_13 = arith.constant 9.99999974E-6 : f32
    %16 = vector.broadcast %cst_13 : f32 to vector<1x512xf32>
    %17 = arith.addf %14, %16 : vector<1x512xf32>
    %18 = math.rsqrt %17 : vector<1x512xf32>
    %19 = arith.mulf %15, %18 : vector<1x512xf32>
    %cst_14 = arith.constant 0.000000e+00 : f32
    %20 = vector.broadcast %cst_14 : f32 to vector<1x512xf32>
    %21 = arith.cmpf ogt, %19, %20 : vector<1x512xf32>
    %cst_15 = arith.constant 2.000000e-01 : f32
    %22 = vector.broadcast %cst_15 : f32 to vector<1x512xf32>
    %23 = arith.mulf %22, %19 : vector<1x512xf32>
    %24 = arith.select %21, %19, %23 : vector<1x512xi1>, vector<1x512xf32>
    %c0_16 = arith.constant 0 : index
    %c0_17 = arith.constant 0 : index
    %25 = vector.load %arg5[%c0_16, %c0_17] : memref<512x128xf32, #tpu.memory_space<vmem>>, vector<512x128xf32>
    %cst_18 = arith.constant dense<0.000000e+00> : vector<1x128xf32>
    %26 = tpu.matmul %24, %25, %cst_18 {dimension_numbers = #tpu.dot_dimension_numbers<[1], [0], [0], [1], [0, 0, 1, 1], [], []>} : vector<1x512xf32>, vector<512x128xf32>, vector<1x128xf32> -> vector<1x128xf32>
    %c0_19 = arith.constant 0 : index
    %c0_20 = arith.constant 0 : index
    %27 = vector.load %arg6[%c0_19, %c0_20] : memref<1x128xf32, #tpu.memory_space<vmem>>, vector<1x128xf32>
    %28 = arith.addf %26, %27 : vector<1x128xf32>
    %c0_21 = arith.constant 0 : index
    %c0_22 = arith.constant 0 : index
    %29 = vector.load %arg7[%c0_21, %c0_22] : memref<128x128xf32, #tpu.memory_space<vmem>>, vector<128x128xf32>
    %cst_23 = arith.constant dense<0.000000e+00> : vector<1x128xf32>
    %30 = tpu.matmul %28, %29, %cst_23 {dimension_numbers = #tpu.dot_dimension_numbers<[1], [0], [0], [1], [0, 0, 1, 1], [], []>} : vector<1x128xf32>, vector<128x128xf32>, vector<1x128xf32> -> vector<1x128xf32>
    %31 = arith.mulf %28, %28 : vector<1x128xf32>
    %c0_24 = arith.constant 0 : index
    %c0_25 = arith.constant 0 : index
    %32 = vector.load %arg7[%c0_24, %c0_25] : memref<128x128xf32, #tpu.memory_space<vmem>>, vector<128x128xf32>
    %cst_26 = arith.constant dense<0.000000e+00> : vector<1x128xf32>
    %33 = tpu.matmul %31, %32, %cst_26 {dimension_numbers = #tpu.dot_dimension_numbers<[1], [0], [0], [1], [0, 0, 1, 1], [], []>} : vector<1x128xf32>, vector<128x128xf32>, vector<1x128xf32> -> vector<1x128xf32>
    %34 = arith.mulf %30, %30 : vector<1x128xf32>
    %35 = arith.subf %33, %34 : vector<1x128xf32>
    %cst_27 = arith.constant 0.000000e+00 : f32
    %36 = vector.broadcast %cst_27 : f32 to vector<1x128xf32>
    %37 = arith.maximumf %35, %36 : vector<1x128xf32>
    %38 = arith.subf %28, %30 : vector<1x128xf32>
    %cst_28 = arith.constant 9.99999974E-6 : f32
    %39 = vector.broadcast %cst_28 : f32 to vector<1x128xf32>
    %40 = arith.addf %37, %39 : vector<1x128xf32>
    %41 = math.rsqrt %40 : vector<1x128xf32>
    %42 = arith.mulf %38, %41 : vector<1x128xf32>
    %cst_29 = arith.constant 0.000000e+00 : f32
    %43 = vector.broadcast %cst_29 : f32 to vector<1x128xf32>
    %44 = arith.cmpf ogt, %42, %43 : vector<1x128xf32>
    %cst_30 = arith.constant 2.000000e-01 : f32
    %45 = vector.broadcast %cst_30 : f32 to vector<1x128xf32>
    %46 = arith.mulf %45, %42 : vector<1x128xf32>
    %47 = arith.select %44, %42, %46 : vector<1x128xi1>, vector<1x128xf32>
    %c0_31 = arith.constant 0 : index
    %c0_32 = arith.constant 0 : index
    %48 = vector.load %arg8[%c0_31, %c0_32] : memref<128x32xf32, #tpu.memory_space<vmem>>, vector<128x32xf32>
    %cst_33 = arith.constant dense<0.000000e+00> : vector<1x32xf32>
    %49 = tpu.matmul %47, %48, %cst_33 {dimension_numbers = #tpu.dot_dimension_numbers<[1], [0], [0], [1], [0, 0, 1, 1], [], []>} : vector<1x128xf32>, vector<128x32xf32>, vector<1x32xf32> -> vector<1x32xf32>
    %c0_34 = arith.constant 0 : index
    %c0_35 = arith.constant 0 : index
    %50 = vector.load %arg9[%c0_34, %c0_35] : memref<1x32xf32, #tpu.memory_space<vmem>>, vector<1x32xf32>
    %51 = arith.addf %49, %50 : vector<1x32xf32>
    %cst_36 = arith.constant 0.000000e+00 : f32
    %52 = vector.broadcast %cst_36 : f32 to vector<1x32xf32>
    %53 = arith.cmpf ogt, %51, %52 : vector<1x32xf32>
    %cst_37 = arith.constant 2.000000e-01 : f32
    %54 = vector.broadcast %cst_37 : f32 to vector<1x32xf32>
    %55 = arith.mulf %54, %51 : vector<1x32xf32>
    %56 = arith.select %53, %51, %55 : vector<1x32xi1>, vector<1x32xf32>
    %c0_38 = arith.constant 0 : index
    %c0_39 = arith.constant 0 : index
    %57 = vector.load %arg10[%c0_38, %c0_39] : memref<32x1152xf32, #tpu.memory_space<vmem>>, vector<32x1152xf32>
    %cst_40 = arith.constant dense<0.000000e+00> : vector<1x1152xf32>
    %58 = tpu.matmul %56, %57, %cst_40 {dimension_numbers = #tpu.dot_dimension_numbers<[1], [0], [0], [1], [0, 0, 1, 1], [], []>} : vector<1x32xf32>, vector<32x1152xf32>, vector<1x1152xf32> -> vector<1x1152xf32>
    %c0_41 = arith.constant 0 : index
    %c0_42 = arith.constant 0 : index
    %59 = vector.load %arg11[%c0_41, %c0_42] : memref<1x1152xf32, #tpu.memory_space<vmem>>, vector<1x1152xf32>
    %60 = arith.addf %58, %59 : vector<1x1152xf32>
    %c0_43 = arith.constant 0 : index
    %c0_44 = arith.constant 0 : index
    %c0_45 = arith.constant 0 : index
    %61 = vector.load %arg12[%c0_43, %c0_44, %c0_45] : memref<1x1x1152xf32, #tpu.memory_space<vmem>>, vector<1x1x1152xf32>
    %62 = vector.shape_cast %61 : vector<1x1x1152xf32> to vector<1x1152xf32>
    %63 = vector.shape_cast %60 : vector<1x1152xf32> to vector<1x1x1152xf32>
    tpu.vector_store %arg12[%c0_43, %c0_44, %c0_45], %63 {strides = array<i32>} : memref<1x1x1152xf32, #tpu.memory_space<vmem>>, vector<1x1x1152xf32>,
    return
  }
  func.func @transform_0(%arg0: i32) -> (i32, i32, i32) {
    %c0_i32 = arith.constant 0 : i32
    %c0_i32_0 = arith.constant 0 : i32
    %c0_i32_1 = arith.constant 0 : i32
    return %arg0, %c0_i32, %c0_i32_0 : i32, i32, i32
  }
  func.func @transform_1(%arg0: i32) -> (i32, i32) {
    %c0_i32 = arith.constant 0 : i32
    %c0_i32_0 = arith.constant 0 : i32
    %c0_i32_1 = arith.constant 0 : i32
    return %c0_i32, %c0_i32_0 : i32, i32
  }
  func.func @transform_2(%arg0: i32) -> (i32, i32) {
    %c0_i32 = arith.constant 0 : i32
    %c0_i32_0 = arith.constant 0 : i32
    %c0_i32_1 = arith.constant 0 : i32
    return %c0_i32, %c0_i32_0 : i32, i32
  }
  func.func @transform_3(%arg0: i32) -> (i32, i32) {
    %c0_i32 = arith.constant 0 : i32
    %c0_i32_0 = arith.constant 0 : i32
    %c0_i32_1 = arith.constant 0 : i32
    return %c0_i32, %c0_i32_0 : i32, i32
  }
  func.func @transform_4(%arg0: i32) -> (i32, i32) {
    %c0_i32 = arith.constant 0 : i32
    %c0_i32_0 = arith.constant 0 : i32
    %c0_i32_1 = arith.constant 0 : i32
    return %c0_i32, %c0_i32_0 : i32, i32
  }
  func.func @transform_5(%arg0: i32) -> (i32, i32) {
    %c0_i32 = arith.constant 0 : i32
    %c0_i32_0 = arith.constant 0 : i32
    %c0_i32_1 = arith.constant 0 : i32
    return %c0_i32, %c0_i32_0 : i32, i32
  }
  func.func @transform_6(%arg0: i32) -> (i32, i32) {
    %c0_i32 = arith.constant 0 : i32
    %c0_i32_0 = arith.constant 0 : i32
    %c0_i32_1 = arith.constant 0 : i32
    return %c0_i32, %c0_i32_0 : i32, i32
  }
  func.func @transform_7(%arg0: i32) -> (i32, i32) {
    %c0_i32 = arith.constant 0 : i32
    %c0_i32_0 = arith.constant 0 : i32
    %c0_i32_1 = arith.constant 0 : i32
    return %c0_i32, %c0_i32_0 : i32, i32
  }
  func.func @transform_8(%arg0: i32) -> (i32, i32) {
    %c0_i32 = arith.constant 0 : i32
    %c0_i32_0 = arith.constant 0 : i32
    %c0_i32_1 = arith.constant 0 : i32
    return %c0_i32, %c0_i32_0 : i32, i32
  }
  func.func @transform_9(%arg0: i32) -> (i32, i32) {
    %c0_i32 = arith.constant 0 : i32
    %c0_i32_0 = arith.constant 0 : i32
    %c0_i32_1 = arith.constant 0 : i32
    return %c0_i32, %c0_i32_0 : i32, i32
  }
  func.func @transform_10(%arg0: i32) -> (i32, i32) {
    %c0_i32 = arith.constant 0 : i32
    %c0_i32_0 = arith.constant 0 : i32
    %c0_i32_1 = arith.constant 0 : i32
    return %c0_i32, %c0_i32_0 : i32, i32
  }
  func.func @transform_11(%arg0: i32) -> (i32, i32, i32) {
    %c0_i32 = arith.constant 0 : i32
    %c0_i32_0 = arith.constant 0 : i32
    %c0_i32_1 = arith.constant 0 : i32
    return %arg0, %c0_i32, %c0_i32_0 : i32, i32, i32
  }
}

</mosaic_0001>

<bundles_post_ra>
// kernel: tpu_custom_call.1
= control target key start
LH: loop header
LB: loop body
LE: loop exit
PB: predicated region body
PF: predicated region fallthrough
CT: control target
= control target key end

     0   :  { %s6500_s0 = inlined_call_operand.hbm [shape: f32[2,1,768], index: 0, kind: input, shape index: {}]   ;;  %s6501_s1 = inlined_call_operand.hbm [shape: f32[768,512], index: 1, kind: input, shape index: {}]   ;;  %s6502_s2 = inlined_call_operand.hbm [shape: f32[1,512], index: 2, kind: input, shape index: {}]   ;;  %s6503_s3 = inlined_call_operand.hbm [shape: f32[512,512], index: 3, kind: input, shape index: {}]   ;;  %s6504_s4 = inlined_call_operand.hbm [shape: f32[512,128], index: 4, kind: input, shape index: {}]   ;;  %s6505_s5 = inlined_call_operand.hbm [shape: f32[1,128], index: 5, kind: input, shape index: {}]   ;;  %s6506_s6 = inlined_call_operand.hbm [shape: f32[128,128], index: 6, kind: input, shape index: {}]   ;;  %s6507_s7 = inlined_call_operand.vmem [shape: f32[128,32], index: 7, kind: input, shape index: {}]   ;;  %s6508_s8 = inlined_call_operand.hbm [shape: f32[1,32], index: 8, kind: input, shape index: {}]   ;;  %s6509_s9 = inlined_call_operand.hbm [shape: f32[32,1152], index: 9, kind: input, shape index: {}]   ;;  %s6510_s10 = inlined_call_operand.hbm [shape: f32[1,1152], index: 10, kind: input, shape index: {}]   ;;  %s6511_s11 = inlined_call_operand.hbm [shape: f32[2,1,1152], index: 11, kind: output, shape index: {}]  }
   0x1   :  { %6607 = sst [smem:[#allocation112_spill]] %s6501_s1 }
   0x2   :  { %6608 = sst [smem:[#allocation113_spill]] %s6502_s2 }
   0x3   :  { %6609 = sst [smem:[#allocation114_spill]] %s6507_s7 }
   0x4   :  { %6610 = sst [smem:[#allocation115_spill]] %s6511_s11 }
   0x5   :  { %16 = vsyncpa [#allocation3], 0 }
   0x6   :  { %18 = vsyncpa [#allocation3 + $0x1], 0 }
   0x7   :  { %19 = vsyncpa [#allocation6], 0 }
   0x8   :  { %20 = vsyncpa [#allocation9], 0 }
   0x9   :  { %21 = vsyncpa [#allocation12], 0 }
   0xa   :  { %22 = vsyncpa [#allocation15], 0 }
   0xb   :  { %23 = vsyncpa [#allocation18], 0 }
   0xc   :  { %24 = vsyncpa [#allocation4], 0 }
   0xd   :  { %26 = vsyncpa [#allocation4 + $0x1], 0  ;;  %s5392_s17 = smov 0   ;;  %s5394_s18 = smov 0  }
   0xe   :  { %s5396_s19 = smov 0   ;;  %s5398_s20 = smov 0  }
   0xf LB: > { %s5311_s21 = smov [#allocation5]   ;;  %s5413_s23 = sadd.s32 4294967295, %s5309_s20   ;;  %s5309_s20 = sphi %s5398_s20, %s6813_s20   ;;  %s5305_s19 = sphi %s5396_s19, %s6812_s19   ;;  %s5301_s18 = sphi %s5394_s18, %s6811_s18   ;;  %s5297_s17 = sphi %s5392_s17, %s6810_s17  }
  0x10   : > { %s311_s22 = sshll.u32 %s5311_s21, 4  ;;  %p3415_p0 = scmp.ge.s32.totalorder %s5309_s20, 1  ;;  %s5418_s22 = int_to_ptr.vmem [resolvable:$true] %s311_s22 }
  0x11   : > { %p6515_p1 = scmp.eq.s32.totalorder %s5413_s23, 0  ;;  %p299_p2 = scmp.lt.s32.totalorder %s5309_s20, 3 }
  0x12   : > { %s5312_s25 = smov [#allocation8]   ;;  %s5313_s28 = smov [#allocation11]  }
  0x13   : > { %p5420_p3 = pnand %p3415_p0, %p299_p2  ;;  %s335_s26 = sshll.u32 %s5312_s25, 4  ;;  %s5433_s26 = int_to_ptr.vmem [resolvable:$true] %s335_s26 }
  0x14   : > { %s362_s29 = sshll.u32 %s5313_s28, 4  ;;  %s6614_s1 = sld [smem:[#allocation112_spill]]  ;;  %s5435_s29 = int_to_ptr.vmem [resolvable:$true] %s362_s29 }
  0x15   : > { %s6611_s24 = scalar_select %p5420_p3, 1, 0 }
  0x16   : > { %p4823_p5 = pneg %p5420_p3 }
  0x17   : > { %6612 = sst [smem:[#allocation27_spill]] %s6611_s24 }
  0x18   : > { %p5429_p6 = pnand %p4823_p5, %p6515_p1 }
  0x1a   : > { %s4941_s13 = scalar_lea.hbm %s6614_s1, 49152  ;;  %p5445_p8 = pneg %p5429_p6 }
  0x1b   : > { %p4942_p7 = scmp.ne.s32.totalorder %s6614_s1, %s4941_s13  ;;  %p4948_p11 = scmp.lt.u32.totalorder %s4941_s13, %s6614_s1 }
  0x1d   : > { %p4944_p9 = pnand %p5445_p8, %p4942_p7 }
  0x1f   : > { %p4945_p10 = pneg %p4944_p9 }
  0x21   : > { %p4950_p12 = pnand %p4948_p11, %p4945_p10 }
  0x23   : > { %4953 = shalt.err (!%p4950_p12)
}
  0x24   : > { %s4954_s28 = scalar_lea.vmem %s5418_s22, 49152  ;;  %p4962_p5 = scmp.lt.s32.totalorder %s5418_s22, %s5418_s22 }
  0x25   : > { %p4955_p13 = scmp.ne.s32.totalorder %s5418_s22, %s4954_s28  ;;  %p4963_p4 = scmp.lt.s32.totalorder %s4954_s28, %s4954_s28 }
  0x27   : > { %p4957_p0 = pnand %p4955_p13, %p5445_p8  ;;  %p4964_p7 = por %p4963_p4, %p4962_p5 }
  0x29   : > { %p4958_p2 = pneg %p4957_p0 }
  0x2b   : > { %p4965_p9 = pnand %p4964_p7, %p4958_p2 }
  0x2d   : > { %4968 = shalt.err (!%p4965_p9)
}
  0x2e   : > { %s5314_s30 = smov 512   ;;  %s5315_s12 = smov 32  }
  0x2f   : > { %4826 = dma.hbm_to_vmem [thread:$0]  (!%p5429_p6), %s6614_s1, 49152, %s5418_s22, [#allocation6], %s5314_s30, %s5314_s30, %s5315_s12  }
  0x30   : > { %s4969_s25 = scalar_lea.hbm %s6503_s3, 32768 }
  0x31   : > { %p4970_p4 = scmp.ne.s32.totalorder %s6503_s3, %s4969_s25  ;;  %p4976_p12 = scmp.lt.u32.totalorder %s4969_s25, %s6503_s3 }
  0x33   : > { %p4972_p10 = pnand %p4970_p4, %p5445_p8 }
  0x35   : > { %p4973_p11 = pneg %p4972_p10 }
  0x37   : > { %p4978_p13 = pnand %p4976_p12, %p4973_p11 }
  0x39   : > { %4981 = shalt.err (!%p4978_p13)
}
  0x3a   : > { %s4982_s22 = scalar_lea.vmem %s5433_s26, 32768  ;;  %p4990_p7 = scmp.lt.s32.totalorder %s5433_s26, %s5433_s26 }
  0x3b   : > { %p4983_p0 = scmp.ne.s32.totalorder %s5433_s26, %s4982_s22  ;;  %p4991_p9 = scmp.lt.s32.totalorder %s4982_s22, %s4982_s22 }
  0x3d   : > { %p4985_p2 = pnand %p4983_p0, %p5445_p8  ;;  %p4992_p4 = por %p4991_p9, %p4990_p7 }
  0x3f   : > { %p4986_p5 = pneg %p4985_p2 }
  0x41   : > { %p4993_p10 = pnand %p4992_p4, %p4986_p5 }
  0x43   : > { %4996 = shalt.err (!%p4993_p10)
}
  0x44   : > { %4832 = dma.hbm_to_vmem [thread:$0]  (!%p5429_p6), %s6503_s3, 32768, %s5433_s26, [#allocation9], %s5314_s30, %s5314_s30, %s5315_s12  }
  0x45   : > { %s4997_s14 = scalar_lea.hbm %s6505_s5, 16 }
  0x46   : > { %p4998_p11 = scmp.ne.s32.totalorder %s6505_s5, %s4997_s14  ;;  %p5004_p0 = scmp.lt.u32.totalorder %s4997_s14, %s6505_s5 }
  0x48   : > { %p5000_p12 = pnand %p4998_p11, %p5445_p8 }
  0x4a   : > { %p5001_p13 = pneg %p5000_p12 }
  0x4c   : > { %p5006_p2 = pnand %p5004_p0, %p5001_p13 }
  0x4e   : > { %5009 = shalt.err (!%p5006_p2)
}
  0x4f   : > { %s5010_s26 = scalar_lea.vmem %s5435_s29, 16  ;;  %s5017_s30 = scalar_lea.vmem %s5435_s29, 32 }
  0x50   : > { %p5011_p5 = scmp.ne.s32.totalorder %s5435_s29, %s5010_s26  ;;  %p5018_p4 = scmp.lt.s32.totalorder %s5435_s29, %s5435_s29 }
  0x51   : > { %p5019_p10 = scmp.lt.s32.totalorder %s5017_s30, %s5010_s26 }
  0x52   : > { %p5013_p7 = pnand %p5011_p5, %p5445_p8 }
  0x53   : > { %p5020_p11 = por %p5019_p10, %p5018_p4 }
  0x54   : > { %p5014_p9 = pneg %p5013_p7 }
  0x56   : > { %p5021_p12 = pnand %p5020_p11, %p5014_p9 }
  0x58   : > { %5024 = shalt.err (!%p5021_p12)
}
  0x59   : > { %4838 = dma.hbm_to_vmem [thread:$0]  (!%p5429_p6), %s6505_s5, 16, %s5435_s29, [#allocation12]  }
  0x5a   : > { %s5316_s7 = smov [#allocation14]   ;;  %s5317_s24 = smov [#allocation7]  }
  0x5b   : > { %s389_s11 = sshll.u32 %s5316_s7, 4  ;;  %s325_s13 = sshll.u32 %s5317_s24, 4  ;;  %s390_s11 = int_to_ptr.vmem [resolvable:$true] %s389_s11  ;;  %s326_s13 = int_to_ptr.vmem [resolvable:$true] %s325_s13 }
  0x5c   : > { %s5025_s21 = scalar_lea.hbm %s6508_s8, 16 }
  0x5d   : > { %p5026_p13 = scmp.ne.s32.totalorder %s6508_s8, %s5025_s21  ;;  %p5032_p5 = scmp.lt.u32.totalorder %s5025_s21, %s6508_s8 }
  0x5f   : > { %p5028_p0 = pnand %p5026_p13, %p5445_p8 }
  0x61   : > { %p5029_p2 = pneg %p5028_p0 }
  0x63   : > { %p5034_p7 = pnand %p5032_p5, %p5029_p2 }
  0x65   : > { %5037 = shalt.err (!%p5034_p7)
}
  0x66   : > { %s5038_s29 = scalar_lea.vmem %s390_s11, 16  ;;  %s5045_s12 = scalar_lea.vmem %s390_s11, 32 }
  0x67   : > { %p5039_p9 = scmp.ne.s32.totalorder %s390_s11, %s5038_s29  ;;  %p5046_p11 = scmp.lt.s32.totalorder %s390_s11, %s390_s11 }
  0x68   : > { %p5047_p12 = scmp.lt.s32.totalorder %s5045_s12, %s5038_s29 }
  0x69   : > { %p5041_p4 = pnand %p5039_p9, %p5445_p8 }
  0x6a   : > { %p5048_p1 = por %p5047_p12, %p5046_p11 }
  0x6b   : > { %p5042_p10 = pneg %p5041_p4 }
  0x6d   : > { %p5049_p3 = pnand %p5048_p1, %p5042_p10 }
  0x6f   : > { %5052 = shalt.err (!%p5049_p3)
}
  0x70   : > { %4844 = dma.hbm_to_vmem [thread:$0]  (!%p5429_p6), %s6508_s8, 16, %s390_s11, [#allocation15]  }
  0x71   : > { %s6616_s2 = sld [smem:[#allocation113_spill]] }
  0x77   : > { %s5053_s15 = scalar_lea.hbm %s6616_s2, 64 }
  0x78   : > { %p5054_p13 = scmp.ne.s32.totalorder %s6616_s2, %s5053_s15  ;;  %p5060_p3 = scmp.lt.u32.totalorder %s5053_s15, %s6616_s2 }
  0x7a   : > { %p5056_p0 = pnand %p5054_p13, %p5445_p8 }
  0x7c   : > { %p5057_p1 = pneg %p5056_p0 }
  0x7e   : > { %p5062_p2 = pnand %p5060_p3, %p5057_p1 }
  0x80   : > { %5065 = shalt.err (!%p5062_p2)
}
  0x81   : > { %s5066_s30 = scalar_lea.vmem %s326_s13, 64  ;;  %p5074_p4 = scmp.lt.s32.totalorder %s326_s13, %s326_s13 }
  0x82   : > { %p5067_p5 = scmp.ne.s32.totalorder %s326_s13, %s5066_s30  ;;  %p5075_p10 = scmp.lt.s32.totalorder %s5066_s30, %s5066_s30 }
  0x84   : > { %p5069_p7 = pnand %p5067_p5, %p5445_p8  ;;  %p5076_p11 = por %p5075_p10, %p5074_p4 }
  0x86   : > { %p5070_p9 = pneg %p5069_p7 }
  0x88   : > { %p5077_p12 = pnand %p5076_p11, %p5070_p9 }
  0x8a   : > { %5080 = shalt.err (!%p5077_p12)
}
  0x8b   : > { %4829 = dma.hbm_to_vmem [thread:$0]  (!%p5429_p6), %s6616_s2, 64, %s326_s13, [#allocation6]  }
  0x8c   : > { %s5318_s12 = smov [#allocation10]   ;;  %s5081_s14 = scalar_lea.hbm %s6504_s4, 8192 }
  0x8d   : > { %s348_s22 = sshll.u32 %s5318_s12, 4  ;;  %p5082_p13 = scmp.ne.s32.totalorder %s6504_s4, %s5081_s14  ;;  %s349_s22 = int_to_ptr.vmem [resolvable:$true] %s348_s22 }
  0x8e   : > { %p5088_p3 = scmp.lt.u32.totalorder %s5081_s14, %s6504_s4 }
  0x8f   : > { %p5084_p0 = pnand %p5082_p13, %p5445_p8 }
  0x91   : > { %p5085_p1 = pneg %p5084_p0 }
  0x93   : > { %p5090_p2 = pnand %p5088_p3, %p5085_p1 }
  0x95   : > { %5093 = shalt.err (!%p5090_p2)
}
  0x96   : > { %s5094_s13 = scalar_lea.vmem %s349_s22, 8192  ;;  %p5102_p4 = scmp.lt.s32.totalorder %s349_s22, %s349_s22 }
  0x97   : > { %p5095_p5 = scmp.ne.s32.totalorder %s349_s22, %s5094_s13  ;;  %p5103_p10 = scmp.lt.s32.totalorder %s5094_s13, %s5094_s13 }
  0x99   : > { %p5097_p7 = pnand %p5095_p5, %p5445_p8  ;;  %p5104_p11 = por %p5103_p10, %p5102_p4 }
  0x9b   : > { %p5098_p9 = pneg %p5097_p7 }
  0x9d   : > { %p5105_p12 = pnand %p5104_p11, %p5098_p9 }
  0x9f   : > { %5108 = shalt.err (!%p5105_p12)
}
  0xa0   : > { %s5319_s26 = smov 128   ;;  %s5320_s30 = smov 8  }
  0xa1   : > { %4835 = dma.hbm_to_vmem [thread:$0]  (!%p5429_p6), %s6504_s4, 8192, %s349_s22, [#allocation9], %s5319_s26, %s5319_s26, %s5320_s30  }
  0xa2   : > { %s5321_s12 = smov [#allocation13]   ;;  %s5322_s24 = smov [#allocation16]  }
  0xa3   : > { %s372_s7 = sshll.u32 %s5321_s12, 4  ;;  %s399_s14 = sshll.u32 %s5322_s24, 4  ;;  %s373_s7 = int_to_ptr.vmem [resolvable:$true] %s372_s7  ;;  %s5567_s14 = int_to_ptr.vmem [resolvable:$true] %s399_s14 }
  0xa4   : > { %s5109_s25 = scalar_lea.hbm %s6506_s6, 2048 }
  0xa5   : > { %p5110_p13 = scmp.ne.s32.totalorder %s6506_s6, %s5109_s25  ;;  %p5116_p3 = scmp.lt.u32.totalorder %s5109_s25, %s6506_s6 }
  0xa7   : > { %p5112_p0 = pnand %p5110_p13, %p5445_p8 }
  0xa9   : > { %p5113_p1 = pneg %p5112_p0 }
  0xab   : > { %p5118_p2 = pnand %p5116_p3, %p5113_p1 }
  0xad   : > { %5121 = shalt.err (!%p5118_p2)
}
  0xae   : > { %s5122_s29 = scalar_lea.vmem %s373_s7, 2048  ;;  %p5130_p4 = scmp.lt.s32.totalorder %s373_s7, %s373_s7 }
  0xaf   : > { %p5123_p5 = scmp.ne.s32.totalorder %s373_s7, %s5122_s29  ;;  %p5131_p10 = scmp.lt.s32.totalorder %s5122_s29, %s5122_s29 }
  0xb1   : > { %p5125_p7 = pnand %p5123_p5, %p5445_p8  ;;  %p5132_p11 = por %p5131_p10, %p5130_p4 }
  0xb3   : > { %p5126_p9 = pneg %p5125_p7 }
  0xb5   : > { %p5133_p12 = pnand %p5132_p11, %p5126_p9 }
  0xb7   : > { %5136 = shalt.err (!%p5133_p12)
}
  0xb8   : > { %4841 = dma.hbm_to_vmem [thread:$0]  (!%p5429_p6), %s6506_s6, 2048, %s373_s7, [#allocation12], %s5319_s26, %s5319_s26, %s5320_s30  }
  0xb9   : > { %s5137_s25 = scalar_lea.hbm %s6509_s9, 4608 }
  0xba   : > { %p5138_p13 = scmp.ne.s32.totalorder %s6509_s9, %s5137_s25  ;;  %p5144_p3 = scmp.lt.u32.totalorder %s5137_s25, %s6509_s9 }
  0xbc   : > { %p5140_p0 = pnand %p5138_p13, %p5445_p8 }
  0xbe   : > { %p5141_p1 = pneg %p5140_p0 }
  0xc0   : > { %p5146_p2 = pnand %p5144_p3, %p5141_p1 }
  0xc2   : > { %5149 = shalt.err (!%p5146_p2)
}
  0xc3   : > { %s5150_s26 = scalar_lea.vmem %s5567_s14, 4608  ;;  %p5158_p4 = scmp.lt.s32.totalorder %s5567_s14, %s5567_s14 }
  0xc4   : > { %p5151_p5 = scmp.ne.s32.totalorder %s5567_s14, %s5150_s26  ;;  %p5159_p10 = scmp.lt.s32.totalorder %s5150_s26, %s5150_s26 }
  0xc6   : > { %p5153_p7 = pnand %p5151_p5, %p5445_p8  ;;  %p5160_p11 = por %p5159_p10, %p5158_p4 }
  0xc8   : > { %p5154_p9 = pneg %p5153_p7 }
  0xca   : > { %p5161_p12 = pnand %p5160_p11, %p5154_p9 }
  0xcc   : > { %5164 = shalt.err (!%p5161_p12)
}
  0xcd   : > { %s5323_s30 = smov 1152   ;;  %s5324_s7 = smov 72  }
  0xce   : > { %4847 = dma.hbm_to_vmem [thread:$0]  (!%p5429_p6), %s6509_s9, 4608, %s5567_s14, [#allocation15], %s5323_s30, %s5323_s30, %s5324_s7  }
  0xcf   : > { %s5325_s24 = smov [#allocation17]   ;;  %s5165_s28 = scalar_lea.hbm %s6510_s10, 144 }
  0xd0   : > { %s413_s15 = sshll.u32 %s5325_s24, 4  ;;  %p5166_p13 = scmp.ne.s32.totalorder %s6510_s10, %s5165_s28  ;;  %s414_s15 = int_to_ptr.vmem [resolvable:$true] %s413_s15 }
  0xd1   : > { %p5172_p3 = scmp.lt.u32.totalorder %s5165_s28, %s6510_s10 }
  0xd2   : > { %p5168_p0 = pnand %p5166_p13, %p5445_p8 }
  0xd4   : > { %p5169_p1 = pneg %p5168_p0 }
  0xd6   : > { %p5174_p2 = pnand %p5172_p3, %p5169_p1 }
  0xd8   : > { %5177 = shalt.err (!%p5174_p2)
}
  0xd9   : > { %s5178_s14 = scalar_lea.vmem %s414_s15, 144  ;;  %s5185_s30 = scalar_lea.vmem %s414_s15, 160 }
  0xda   : > { %p5179_p5 = scmp.ne.s32.totalorder %s414_s15, %s5178_s14  ;;  %p5186_p4 = scmp.lt.s32.totalorder %s414_s15, %s414_s15 }
  0xdb   : > { %p5187_p10 = scmp.lt.s32.totalorder %s5185_s30, %s5178_s14 }
  0xdc   : > { %p5181_p7 = pnand %p5179_p5, %p5445_p8 }
  0xdd   : > { %p5188_p11 = por %p5187_p10, %p5186_p4 }
  0xde   : > { %p5182_p9 = pneg %p5181_p7 }
  0xe0   : > { %p5189_p12 = pnand %p5188_p11, %p5182_p9 }
  0xe2   : > { %5192 = shalt.err (!%p5189_p12)
}
  0xe3   : > { %4850 = dma.hbm_to_vmem [thread:$0]  (!%p5429_p6), %s6510_s10, 144, %s414_s15, [#allocation18]  }
  0xe4   : > { %s3414_s16 = sadd.s32 4294967294, %s5309_s20   ;;  %s5630_s27 = sadd.s32 1, %s5309_s20  }
  0xe5   : > { %s39_s12 = sadd.s32 1, %s5305_s19  ;;  %s36_s24 = ssub.s32 %s5309_s20, %s5630_s27 }
  0xe6   : > { %p46_p8 = scmp.ne.s32.totalorder %s5305_s19, %s5301_s18  ;;  %p37_p13 = scmp.eq.s32.totalorder %s36_s24, 0 }
  0xe7   : > { %p47_p0 = scmp.eq.s32.totalorder %s5309_s20, 0  ;;  %p52_p1 = scmp.ne.s32.totalorder %s5301_s18, %s5297_s17 }
  0xe8   : > { %p286_p3 = scmp.eq.s32.totalorder %s5413_s23, 1  ;;  %p6617_p5 = scmp.eq.s32.totalorder %s5413_s23, 0 }
  0xe9   : > { %s5642_s21 = scalar_select %p37_p13, %s5305_s19, %s39_s12  }
  0xea   : > { %p48_p2 = por %p47_p0, %p46_p8  ;;  %p5646_p7 = por %p6617_p5, %p52_p1 }
  0xeb   : > { %p5650_p6 = por %p286_p3, %p46_p8  ;;  %p292_p9 = scmp.eq.s32.totalorder %s3414_s16, 1 }
  0xec   : > { %p4868_p4 = scmp.lt.s32.totalorder %s5309_s20, 2  ;;  %s424_s28 = sand.u32 1, %s5305_s19  }
  0xed   : > { %s6619_s15 = scalar_select %p5650_p6, 1, 0 }
  0xee   : > { %p5656_p10 = por %p292_p9, %p52_p1  ;;  %s4778_s11 = smul.u32 6, %s424_s28 }
  0xef   : > { %p5660_p11 = pnand %p4868_p4, %p48_p2  ;;  %s4779_s26 = smul.u32 96, %s5309_s20 }
  0xf0   : > { %s6620_s13 = scalar_select %p5656_p10, 1, 0 }
  0xf1   : > { %s5668_s7 = scalar_lea.hbm %s6500_s0, %s4779_s26  ;;  %s428_s29 = scalar_lea.vmem [#allocation2], %s4778_s11 }
  0xf2   : > { %s436_s16 = sshll.u32 %s428_s29, 4  ;;  %s425_s12 = scalar_lea.sflag [#allocation3], %s424_s28  ;;  %s5670_s16 = int_to_ptr.vmem [resolvable:$true] %s436_s16 }
  0xf3   : > { %s5193_s24 = scalar_lea.hbm %s5668_s7, 96  ;;  %p5195_p8 = pneg %p5660_p11 }
  0xf4   : > { %p5194_p12 = scmp.ne.s32.totalorder %s5668_s7, %s5193_s24  ;;  %s5198_s30 = scalar_lea.hbm %s6500_s0, 192 }
  0xf5   : > { %p5199_p1 = scmp.lt.u32.totalorder %s5668_s7, %s6500_s0  ;;  %p5200_p3 = scmp.lt.u32.totalorder %s5198_s30, %s5193_s24 }
  0xf6   : > { %p5196_p13 = pnand %p5195_p8, %p5194_p12  ;;  %p5202_p5 = scmp.lt.u32.totalorder %s5193_s24, %s5668_s7 }
  0xf7   : > { %p5201_p2 = por %p5200_p3, %p5199_p1 }
  0xf8   : > { %p5197_p0 = pneg %p5196_p13 }
  0xf9   : > { %p5203_p9 = por %p5202_p5, %p5201_p2 }
  0xfb   : > { %p5204_p4 = pnand %p5203_p9, %p5197_p0 }
  0xfd   : > { %5207 = shalt.err (!%p5204_p4)
}
  0xfe   : > { %s5208_s28 = scalar_lea.vmem %s5670_s16, 96  ;;  %s5326_s11 = smov [#allocation2]  }
  0xff   : > { %p5209_p12 = scmp.ne.s32.totalorder %s5670_s16, %s5208_s28  ;;  %s5213_s29 = sshll.u32 %s5326_s11, 4  ;;  %s5214_s29 = int_to_ptr.vmem [resolvable:$false] %s5213_s29 }
 0x100   : > { %s5215_s1 = scalar_lea.vmem %s5214_s29, 192  ;;  %p5216_p6 = scmp.lt.s32.totalorder %s5670_s16, %s5214_s29 }
 0x101   : > { %p5211_p13 = pnand %p5209_p12, %p5195_p8  ;;  %p5217_p1 = scmp.lt.s32.totalorder %s5215_s1, %s5208_s28 }
 0x103   : > { %p5212_p10 = pneg %p5211_p13  ;;  %p5218_p3 = por %p5217_p1, %p5216_p6 }
 0x105   : > { %p5219_p2 = pnand %p5218_p3, %p5212_p10 }
 0x107   : > { %5222 = shalt.err (!%p5219_p2)
}
 0x108   : > { %4854 = dma.hbm_to_vmem [thread:$0]  (!%p5660_p11), %s5668_s7, 96, %s5670_s16, %s425_s12  }
 0x109   : > { %s6622_s2 = sld [smem:[#allocation27_spill]] }
 0x10f   : > { %p6623_p0 = scmp.ne.s32.totalorder %s6622_s2, 0 }
 0x111   : > { %445 = sbr.rel (%p6623_p0) target bundleno = 2077 (0x81d), region = 64 }
 0x118   : > { %s5700_s24 = sand.u32 1, %s5301_s18  }
 0x119   : > { %s4780_s14 = smul.u32 6, %s5700_s24  ;;  %s448_s26 = scalar_lea.sflag [#allocation3], %s5700_s24 }
 0x11b   : > { %s5704_s30 = scalar_lea.vmem [#allocation2], %s4780_s14 }
 0x11c   : > { %5268 = dma.done.wait (%p5646_p7), %s448_s26, 96  }
 0x11d   : > { %5270 = vsyncadd (%p5646_p7), %s448_s26, 4294967200  ;;  %p6624_p6 = scmp.eq.s32.totalorder %s5413_s23, 0 }
 0x11f   : > { %5272 = dma.done.wait (%p6624_p6), [#allocation6], 49216   ;;  %p6625_p10 = pmov %p6624_p6 }
 0x120   : > { %p6626_p11 = pmov %p6624_p6 }
 0x121   : > { %5274 = vsyncadd (%p6625_p10), [#allocation6], 4294918080 }
 0x122   : > { %5276 = dma.done.wait (%p6626_p11), [#allocation9], 40960   ;;  %p6627_p8 = pmov %p6624_p6 }
 0x123   : > { %p6628_p5 = pmov %p6624_p6 }
 0x124   : > { %5278 = vsyncadd (%p6627_p8), [#allocation9], 4294926336 }
 0x125   : > { %5280 = dma.done.wait (%p6628_p5), [#allocation12], 2064   ;;  %p6629_p9 = pmov %p6628_p5 }
 0x126   : > { %p6630_p7 = pmov %p6628_p5 }
 0x127   : > { %5282 = vsyncadd (%p6629_p9), [#allocation12], 4294965232 }
 0x128   : > { %5284 = dma.done.wait (%p6630_p7), [#allocation15], 4624   ;;  %p6631_p4 = pmov %p6628_p5 }
 0x12a   : > { %5286 = vsyncadd (%p6631_p4), [#allocation15], 4294962672  ;;  %p6632_p12 = pmov %p6631_p4 }
 0x12b   : > { %p6633_p13 = pmov %p6631_p4 }
 0x12c   : > { %5288 = dma.done.wait (%p6632_p12), [#allocation18], 144  }
 0x12d   : > { %5290 = vsyncadd (%p6633_p13), [#allocation18], 4294967152  ;;  %v528_v0 = vld [vmem:[#allocation5 + $0x8] sm:$0xff]  ;;  %v530_v2 = vld [vmem:[#allocation5 + $0x18] sm:$0xff]  ;;  %vm5328_vm4 = vmmov 0   ;;  %s6798_s7 = sld [smem:[#allocation114_spill]] }
 0x12e   : > { %v532_v1 = vld [vmem:[#allocation5 + $0x28] sm:$0xff]  ;;  %v534_v4 = vld [vmem:[#allocation5 + $0x38] sm:$0xff]  ;;  %v527_v5 = vld [vmem:[#allocation5] sm:$0xff]  ;;  %vm2805_vm7 = vcmask 261120   ;;  %s4781_s2 = smul.u32 9, %s5700_s24  ;;  %s6806_s16 = sld [smem:[#allocation115_spill]] }
 0x12f   : > { %v3688_v3 = vpack.c.bf16 %v532_v1, %v528_v0  ;;  %v531_v6 = vld [vmem:[#allocation5 + $0x20] sm:$0xff]  ;;  %v3880_v7 = vpack.c.bf16 %v534_v4, %v530_v2  ;;  %v529_v9 = vld [vmem:[#allocation5 + $0x10] sm:$0xff]  ;;  %v536_v11 = vld [vmem:[#allocation5 + $0x48] sm:$0xff]  ;;  %s4782_s26 = smul.u32 144, %s5413_s23  ;;  %s3244_s28 = scalar_lea.sflag [#allocation4], %s5700_s24 }
 0x130   : > { %v3690_v8 = vpack.c.bf16 %v531_v6, %v527_v5  ;;  %v533_v10 = vld [vmem:[#allocation5 + $0x30] sm:$0xff]  ;;  %v540_v13 = vld [vmem:[#allocation5 + $0x68] sm:$0xff]  ;;  %v538_v14 = vld [vmem:[#allocation5 + $0x58] sm:$0xff]  ;;  %s6441_s14 = scalar_lea.vmem [#allocation19], %s4781_s2  ;;  %p6807_p3 = scmp.ne.s32.totalorder %s6619_s15, 0 }
 0x131   : > { %3689 = vmatprep.subr.bf16.mxu0 %v3688_v3  ;;  %v3882_v12 = vpack.c.bf16 %v533_v10, %v529_v9  ;;  %v542_v15 = vld [vmem:[#allocation5 + $0x78] sm:$0xff]  ;;  %3881 = vmatprep.subr.bf16.mxu1 %v3880_v7  ;;  %v3692_v16 = vpack.c.bf16 %v540_v13, %v536_v11  ;;  %v535_v18 = vld [vmem:[#allocation5 + $0x40] sm:$0xff]  ;;  %v537_v20 = vld [vmem:[#allocation5 + $0x50] sm:$0xff]  ;;  %s5331_s23 = smov [#allocation19]  }
 0x132   : > { %3691 = vmatpush1.bf16.msra.mxu0 %v3690_v8  ;;  %v3884_v17 = vpack.c.bf16 %v542_v15, %v538_v14  ;;  %v539_v19 = vld [vmem:[#allocation5 + $0x60] sm:$0xff]  ;;  %v541_v22 = vld [vmem:[#allocation5 + $0x70] sm:$0xff]  ;;  %v544_v23 = vld [vmem:[#allocation5 + $0x88] sm:$0xff]  ;;  %s5227_s29 = sshll.u32 %s5331_s23, 4  ;;  %s5228_s29 = int_to_ptr.vmem [resolvable:$false] %s5227_s29 }
 0x133   : > { %3883 = vmatpush1.bf16.msra.mxu1 %v3882_v12  ;;  %v3694_v21 = vpack.c.bf16 %v539_v19, %v535_v18  ;;  %v548_v24 = vld [vmem:[#allocation5 + $0xa8] sm:$0xff]  ;;  %3693 = vmatprep.subr.bf16.mxu0 %v3692_v16  ;;  %v3886_v25 = vpack.c.bf16 %v541_v22, %v537_v20  ;;  %v546_v27 = vld [vmem:[#allocation5 + $0x98] sm:$0xff]  ;;  %v543_v29 = vld [vmem:[#allocation5 + $0x80] sm:$0xff]  ;;  %s5229_s1 = scalar_lea.vmem %s5228_s29, 288 }
 0x134   : > { %3885 = vmatprep.subr.bf16.mxu1 %v3884_v17  ;;  %v3696_v26 = vpack.c.bf16 %v548_v24, %v544_v23  ;;  %v550_v28 = vld [vmem:[#allocation5 + $0xb8] sm:$0xff]  ;;  %v547_v31 = vld [vmem:[#allocation5 + $0xa0] sm:$0xff]  ;;  %v545_v32 = vld [vmem:[#allocation5 + $0x90] sm:$0xff]  ;;  %s6455_s12 = scalar_lea.hbm %s6806_s16, %s4782_s26 }
 0x135   : > { %v3888_v30 = vpack.c.bf16 %v550_v28, %v546_v27  ;;  %v549_v33 = vld [vmem:[#allocation5 + $0xb0] sm:$0xff]  ;;  %v3698_v34 = vpack.c.bf16 %v547_v31, %v543_v29  ;;  %v552_v35 = vld [vmem:[#allocation5 + $0xc8] sm:$0xff]  ;;  %v554_v37 = vld [vmem:[#allocation5 + $0xd8] sm:$0xff] }
 0x136   : > { %3695 = vmatpush1.bf16.msra.mxu0 %v3694_v21  ;;  %v556_v36 = vld [vmem:[#allocation5 + $0xe8] sm:$0xff]  ;;  %v3890_v38 = vpack.c.bf16 %v549_v33, %v545_v32  ;;  %v558_v40 = vld [vmem:[#allocation5 + $0xf8] sm:$0xff]  ;;  %v551_v41 = vld [vmem:[#allocation5 + $0xc0] sm:$0xff] }
 0x137   : > { %3887 = vmatpush1.bf16.msra.mxu1 %v3886_v25  ;;  %3697 = vmatprep.subr.bf16.mxu0 %v3696_v26  ;;  %v3700_v39 = vpack.c.bf16 %v556_v36, %v552_v35  ;;  %v555_v42 = vld [vmem:[#allocation5 + $0xe0] sm:$0xff]  ;;  %v3892_v43 = vpack.c.bf16 %v558_v40, %v554_v37  ;;  %v553_v44 = vld [vmem:[#allocation5 + $0xd0] sm:$0xff]  ;;  %v560_v46 = vld [vmem:[#allocation5 + $0x108] sm:$0xff] }
 0x138   : > { %3889 = vmatprep.subr.bf16.mxu1 %v3888_v30  ;;  %v557_v45 = vld [vmem:[#allocation5 + $0xf0] sm:$0xff]  ;;  %v564_v47 = vld [vmem:[#allocation5 + $0x128] sm:$0xff]  ;;  %v562_v48 = vld [vmem:[#allocation5 + $0x118] sm:$0xff]  ;;  %v3702_v50 = vpack.c.bf16 %v555_v42, %v551_v41 }
 0x139   : > { %v566_v49 = vld [vmem:[#allocation5 + $0x138] sm:$0xff]  ;;  %v3894_v51 = vpack.c.bf16 %v557_v45, %v553_v44  ;;  %v3704_v52 = vpack.c.bf16 %v564_v47, %v560_v46  ;;  %v559_v53 = vld [vmem:[#allocation5 + $0x100] sm:$0xff]  ;;  %v561_v55 = vld [vmem:[#allocation5 + $0x110] sm:$0xff]  ;;  %v6520_v46 = vlaneseq }
 0x13a   : > { %3699 = vmatpush1.bf16.msra.mxu0 %v3698_v34  ;;  %v563_v54 = vld [vmem:[#allocation5 + $0x120] sm:$0xff]  ;;  %v3896_v56 = vpack.c.bf16 %v566_v49, %v562_v48  ;;  %v565_v57 = vld [vmem:[#allocation5 + $0x130] sm:$0xff]  ;;  %v568_v58 = vld [vmem:[#allocation5 + $0x148] sm:$0xff] }
 0x13b   : > { %3891 = vmatpush1.bf16.msra.mxu1 %v3890_v38  ;;  %3701 = vmatprep.subr.bf16.mxu0 %v3700_v39  ;;  %v572_v59 = vld [vmem:[#allocation5 + $0x168] sm:$0xff]  ;;  %v570_v60 = vld [vmem:[#allocation5 + $0x158] sm:$0xff]  ;;  %v3706_v62 = vpack.c.bf16 %v563_v54, %v559_v53  ;;  %v3898_v63 = vpack.c.bf16 %v565_v57, %v561_v55  ;;  %v567_v1 = vld [vmem:[#allocation5 + $0x140] sm:$0xff] }
 0x13c   : > { %3893 = vmatprep.subr.bf16.mxu1 %v3892_v43  ;;  %v574_v61 = vld [vmem:[#allocation5 + $0x178] sm:$0xff]  ;;  %v3708_v0 = vpack.c.bf16 %v572_v59, %v568_v58  ;;  %v571_v2 = vld [vmem:[#allocation5 + $0x160] sm:$0xff]  ;;  %v569_v3 = vld [vmem:[#allocation5 + $0x150] sm:$0xff]  ;;  %v5731_v59 = vshrl.u32 %v6520_v46, 7 }
 0x13d   : > { %v3900_v4 = vpack.c.bf16 %v574_v61, %v570_v60  ;;  %v573_v5 = vld [vmem:[#allocation5 + $0x170] sm:$0xff]  ;;  %v576_v6 = vld [vmem:[#allocation5 + $0x188] sm:$0xff]  ;;  %v578_v8 = vld [vmem:[#allocation5 + $0x198] sm:$0xff]  ;;  %v3710_v10 = vpack.c.bf16 %v571_v2, %v567_v1 }
 0x13e   : > { %3703 = vmatpush1.bf16.msra.mxu0 %v3702_v50  ;;  %v580_v7 = vld [vmem:[#allocation5 + $0x1a8] sm:$0xff]  ;;  %v582_v9 = vld [vmem:[#allocation5 + $0x1b8] sm:$0xff]  ;;  %v3902_v11 = vpack.c.bf16 %v573_v5, %v569_v3  ;;  %v575_v13 = vld [vmem:[#allocation5 + $0x180] sm:$0xff]  ;;  %6634 = vst [vmem:[#allocation28_spill] sm:$0xff] %v5731_v59 }
 0x13f   : > { %3895 = vmatpush1.bf16.msra.mxu1 %v3894_v51  ;;  %3705 = vmatprep.subr.bf16.mxu0 %v3704_v52  ;;  %v3712_v12 = vpack.c.bf16 %v580_v7, %v576_v6  ;;  %v579_v14 = vld [vmem:[#allocation5 + $0x1a0] sm:$0xff]  ;;  %v577_v15 = vld [vmem:[#allocation5 + $0x190] sm:$0xff]  ;;  %v3904_v16 = vpack.c.bf16 %v582_v9, %v578_v8  ;;  %v584_v18 = vld [vmem:[#allocation5 + $0x1c8] sm:$0xff]  ;;  %v5734_v8 = vsub.s32 1, %v5731_v59 }
 0x140   : > { %3897 = vmatprep.subr.bf16.mxu1 %v3896_v56  ;;  %v581_v17 = vld [vmem:[#allocation5 + $0x1b0] sm:$0xff]  ;;  %v588_v19 = vld [vmem:[#allocation5 + $0x1e8] sm:$0xff]  ;;  %v586_v20 = vld [vmem:[#allocation5 + $0x1d8] sm:$0xff]  ;;  %v3714_v22 = vpack.c.bf16 %v579_v14, %v575_v13 }
 0x141   : > { %v590_v21 = vld [vmem:[#allocation5 + $0x1f8] sm:$0xff]  ;;  %v3906_v23 = vpack.c.bf16 %v581_v17, %v577_v15  ;;  %v3716_v24 = vpack.c.bf16 %v588_v19, %v584_v18  ;;  %v583_v25 = vld [vmem:[#allocation5 + $0x1c0] sm:$0xff]  ;;  %v585_v27 = vld [vmem:[#allocation5 + $0x1d0] sm:$0xff]  ;;  %6635 = vst [vmem:[#allocation29_spill] sm:$0xff] %v5734_v8 }
 0x142   : > { %3707 = vmatpush1.bf16.msra.mxu0 %v3706_v62  ;;  %v587_v26 = vld [vmem:[#allocation5 + $0x1e0] sm:$0xff]  ;;  %v3908_v28 = vpack.c.bf16 %v590_v21, %v586_v20  ;;  %v589_v29 = vld [vmem:[#allocation5 + $0x1f0] sm:$0xff]  ;;  %v592_v30 = vld [vmem:[#allocation5 + $0x208] sm:$0xff] }
 0x143   : > { %3899 = vmatpush1.bf16.msra.mxu1 %v3898_v63  ;;  %3709 = vmatprep.subr.bf16.mxu0 %v3708_v0  ;;  %v596_v31 = vld [vmem:[#allocation5 + $0x228] sm:$0xff]  ;;  %v594_v32 = vld [vmem:[#allocation5 + $0x218] sm:$0xff]  ;;  %v3718_v34 = vpack.c.bf16 %v587_v26, %v583_v25  ;;  %v3910_v35 = vpack.c.bf16 %v589_v29, %v585_v27  ;;  %v591_v37 = vld [vmem:[#allocation5 + $0x200] sm:$0xff] }
 0x144   : > { %3901 = vmatprep.subr.bf16.mxu1 %v3900_v4  ;;  %v598_v33 = vld [vmem:[#allocation5 + $0x238] sm:$0xff]  ;;  %v3720_v36 = vpack.c.bf16 %v596_v31, %v592_v30  ;;  %v595_v38 = vld [vmem:[#allocation5 + $0x220] sm:$0xff]  ;;  %v593_v39 = vld [vmem:[#allocation5 + $0x210] sm:$0xff] }
 0x145   : > { %v3912_v40 = vpack.c.bf16 %v598_v33, %v594_v32  ;;  %v597_v41 = vld [vmem:[#allocation5 + $0x230] sm:$0xff]  ;;  %v600_v42 = vld [vmem:[#allocation5 + $0x248] sm:$0xff]  ;;  %v602_v44 = vld [vmem:[#allocation5 + $0x258] sm:$0xff]  ;;  %v3722_v47 = vpack.c.bf16 %v595_v38, %v591_v37 }
 0x146   : > { %3711 = vmatpush1.bf16.msra.mxu0 %v3710_v10  ;;  %v604_v43 = vld [vmem:[#allocation5 + $0x268] sm:$0xff]  ;;  %v606_v45 = vld [vmem:[#allocation5 + $0x278] sm:$0xff]  ;;  %v3914_v48 = vpack.c.bf16 %v597_v41, %v593_v39  ;;  %v599_v50 = vld [vmem:[#allocation5 + $0x240] sm:$0xff] }
 0x147   : > { %3903 = vmatpush1.bf16.msra.mxu1 %v3902_v11  ;;  %3713 = vmatprep.subr.bf16.mxu0 %v3712_v12  ;;  %v3724_v49 = vpack.c.bf16 %v604_v43, %v600_v42  ;;  %v603_v51 = vld [vmem:[#allocation5 + $0x260] sm:$0xff]  ;;  %v601_v52 = vld [vmem:[#allocation5 + $0x250] sm:$0xff]  ;;  %v3916_v53 = vpack.c.bf16 %v606_v45, %v602_v44  ;;  %v608_v55 = vld [vmem:[#allocation5 + $0x288] sm:$0xff] }
 0x148   : > { %3905 = vmatprep.subr.bf16.mxu1 %v3904_v16  ;;  %v605_v54 = vld [vmem:[#allocation5 + $0x270] sm:$0xff]  ;;  %v612_v56 = vld [vmem:[#allocation5 + $0x2a8] sm:$0xff]  ;;  %v610_v57 = vld [vmem:[#allocation5 + $0x298] sm:$0xff]  ;;  %v3726_v60 = vpack.c.bf16 %v603_v51, %v599_v50 }
 0x149   : > { %v614_v58 = vld [vmem:[#allocation5 + $0x2b8] sm:$0xff]  ;;  %v3918_v61 = vpack.c.bf16 %v605_v54, %v601_v52  ;;  %v3728_v62 = vpack.c.bf16 %v612_v56, %v608_v55  ;;  %v607_v63 = vld [vmem:[#allocation5 + $0x280] sm:$0xff]  ;;  %v609_v1 = vld [vmem:[#allocation5 + $0x290] sm:$0xff] }
 0x14a   : > { %3715 = vmatpush1.bf16.msra.mxu0 %v3714_v22  ;;  %v611_v0 = vld [vmem:[#allocation5 + $0x2a0] sm:$0xff]  ;;  %v3920_v2 = vpack.c.bf16 %v614_v58, %v610_v57  ;;  %v613_v3 = vld [vmem:[#allocation5 + $0x2b0] sm:$0xff]  ;;  %v616_v4 = vld [vmem:[#allocation5 + $0x2c8] sm:$0xff] }
 0x14b   : > { %3907 = vmatpush1.bf16.msra.mxu1 %v3906_v23  ;;  %3717 = vmatprep.subr.bf16.mxu0 %v3716_v24  ;;  %v620_v5 = vld [vmem:[#allocation5 + $0x2e8] sm:$0xff]  ;;  %v618_v6 = vld [vmem:[#allocation5 + $0x2d8] sm:$0xff]  ;;  %v3730_v9 = vpack.c.bf16 %v611_v0, %v607_v63  ;;  %v615_v10 = vld [vmem:[#allocation5 + $0x2c0] sm:$0xff]  ;;  %v3922_v11 = vpack.c.bf16 %v613_v3, %v609_v1 }
 0x14c   : > { %3909 = vmatprep.subr.bf16.mxu1 %v3908_v28  ;;  %v622_v7 = vld [vmem:[#allocation5 + $0x2f8] sm:$0xff]  ;;  %v3732_v12 = vpack.c.bf16 %v620_v5, %v616_v4  ;;  %v619_v13 = vld [vmem:[#allocation5 + $0x2e0] sm:$0xff]  ;;  %v617_v14 = vld [vmem:[#allocation5 + $0x2d0] sm:$0xff] }
 0x14d   : > { %v621_v15 = vld [vmem:[#allocation5 + $0x2f0] sm:$0xff]  ;;  %v3924_v16 = vpack.c.bf16 %v622_v7, %v618_v6  ;;  %v624_v17 = vld [vmem:[#allocation5 + $0x308] sm:$0xff]  ;;  %v626_v20 = vld [vmem:[#allocation5 + $0x318] sm:$0xff]  ;;  %v3734_v23 = vpack.c.bf16 %v619_v13, %v615_v10  ;;  %v5742_v10 = vsub.s32 0, %v5731_v59 }
 0x14e   : > { %3719 = vmatpush1.bf16.msra.mxu0 %v3718_v34  ;;  %v628_v18 = vld [vmem:[#allocation5 + $0x328] sm:$0xff]  ;;  %v5737_v19 = vld [vmem:[%s5704_s30] sm:$0x3f]  ;;  %v3926_v24 = vpack.c.bf16 %v621_v15, %v617_v14  ;;  %v623_v26 = vld [vmem:[#allocation5 + $0x300] sm:$0xff] }
 0x14f   : > { %3911 = vmatpush1.bf16.msra.mxu1 %v3910_v35  ;;  %3721 = vmatprep.subr.bf16.mxu0 %v3720_v36  ;;  %v630_v21 = vld [vmem:[#allocation5 + $0x338] sm:$0xff]  ;;  %v920_v22 = vrot.slane %v5737_v19, %v5734_v8  ;;  %v3736_v25 = vpack.c.bf16 %v628_v18, %v624_v17  ;;  %v627_v27 = vld [vmem:[#allocation5 + $0x320] sm:$0xff]  ;;  %v625_v28 = vld [vmem:[#allocation5 + $0x310] sm:$0xff]  ;;  %6636 = vst [vmem:[#allocation30_spill] sm:$0xff] %v5742_v10 }
 0x150   : > { %3913 = vmatprep.subr.bf16.mxu1 %v3912_v40  ;;  %v3928_v29 = vpack.c.bf16 %v630_v21, %v626_v20  ;;  %v629_v30 = vld [vmem:[#allocation5 + $0x330] sm:$0xff]  ;;  %v632_v31 = vld [vmem:[#allocation5 + $0x348] sm:$0xff]  ;;  %v634_v33 = vld [vmem:[#allocation5 + $0x358] sm:$0xff]  ;;  %v3738_v35 = vpack.c.bf16 %v627_v27, %v623_v26 }
 0x151   : > { %v636_v32 = vld [vmem:[#allocation5 + $0x368] sm:$0xff]  ;;  %1028 = vmatprep.mubr.f32.mxu0 %v920_v22  ;;  %v638_v34 = vld [vmem:[#allocation5 + $0x378] sm:$0xff]  ;;  %1241 = vmatprep.mubr.f32.mxu1 %v920_v22  ;;  %v3930_v36 = vpack.c.bf16 %v629_v30, %v625_v28  ;;  %v631_v38 = vld [vmem:[#allocation5 + $0x340] sm:$0xff]  ;;  %v5745_v22 = vsub.s32 3, %v5731_v59 }
 0x152   : > { %3723 = vmatpush1.bf16.msra.mxu0 %v3722_v47  ;;  %v3740_v37 = vpack.c.bf16 %v636_v32, %v632_v31  ;;  %v635_v39 = vld [vmem:[#allocation5 + $0x360] sm:$0xff]  ;;  %v633_v40 = vld [vmem:[#allocation5 + $0x350] sm:$0xff]  ;;  %v3932_v41 = vpack.c.bf16 %v638_v34, %v634_v33  ;;  %v640_v43 = vld [vmem:[#allocation5 + $0x388] sm:$0xff] }
 0x153   : > { %3915 = vmatpush1.bf16.msra.mxu1 %v3914_v48  ;;  %3725 = vmatprep.subr.bf16.mxu0 %v3724_v49  ;;  %v637_v42 = vld [vmem:[#allocation5 + $0x370] sm:$0xff]  ;;  %v644_v44 = vld [vmem:[#allocation5 + $0x3a8] sm:$0xff]  ;;  %v642_v45 = vld [vmem:[#allocation5 + $0x398] sm:$0xff]  ;;  %v3742_v48 = vpack.c.bf16 %v635_v39, %v631_v38  ;;  %6637 = vst [vmem:[#allocation31_spill] sm:$0xff] %v5745_v22 }
 0x154   : > { %3917 = vmatprep.subr.bf16.mxu1 %v3916_v53  ;;  %v646_v47 = vld [vmem:[#allocation5 + $0x3b8] sm:$0xff]  ;;  %v3934_v49 = vpack.c.bf16 %v637_v42, %v633_v40  ;;  %v3744_v50 = vpack.c.bf16 %v644_v44, %v640_v43  ;;  %v639_v51 = vld [vmem:[#allocation5 + $0x380] sm:$0xff]  ;;  %v641_v53 = vld [vmem:[#allocation5 + $0x390] sm:$0xff] }
 0x155   : > { %v643_v52 = vld [vmem:[#allocation5 + $0x3a0] sm:$0xff]  ;;  %v3936_v54 = vpack.c.bf16 %v646_v47, %v642_v45  ;;  %v645_v55 = vld [vmem:[#allocation5 + $0x3b0] sm:$0xff]  ;;  %v648_v56 = vld [vmem:[#allocation5 + $0x3c8] sm:$0xff] }
 0x156   : > { %3727 = vmatpush1.bf16.msra.mxu0 %v3726_v60  ;;  %v652_v57 = vld [vmem:[#allocation5 + $0x3e8] sm:$0xff]  ;;  %v650_v58 = vld [vmem:[#allocation5 + $0x3d8] sm:$0xff]  ;;  %v647_v0 = vld [vmem:[#allocation5 + $0x3c0] sm:$0xff] }
 0x157   : > { %3919 = vmatpush1.bf16.msra.mxu1 %v3918_v61  ;;  %3729 = vmatprep.subr.bf16.mxu0 %v3728_v62  ;;  %v654_v60 = vld [vmem:[#allocation5 + $0x3f8] sm:$0xff]  ;;  %v3746_v61 = vpack.c.bf16 %v643_v52, %v639_v51  ;;  %v3938_v62 = vpack.c.bf16 %v645_v55, %v641_v53  ;;  %v3748_v63 = vpack.c.bf16 %v652_v57, %v648_v56  ;;  %v651_v1 = vld [vmem:[#allocation5 + $0x3e0] sm:$0xff]  ;;  %v653_v4 = vld [vmem:[#allocation5 + $0x3f0] sm:$0xff] }
 0x158   : > { %3921 = vmatprep.subr.bf16.mxu1 %v3920_v2  ;;  %v649_v2 = vld [vmem:[#allocation5 + $0x3d0] sm:$0xff]  ;;  %v3940_v3 = vpack.c.bf16 %v654_v60, %v650_v58  ;;  %v656_v5 = vld [vmem:[#allocation5 + $0x408] sm:$0xff]  ;;  %v658_v7 = vld [vmem:[#allocation5 + $0x418] sm:$0xff] }
 0x159   : > { %v660_v6 = vld [vmem:[#allocation5 + $0x428] sm:$0xff]  ;;  %v655_v14 = vld [vmem:[#allocation5 + $0x400] sm:$0xff]  ;;  %v661_v18 = vld [vmem:[#allocation5 + $0x430] sm:$0xff] }
 0x15a   : > { %3731 = vmatpush1.bf16.msra.mxu0 %v3730_v9  ;;  %v662_v9 = vld [vmem:[#allocation5 + $0x438] sm:$0xff]  ;;  %v3752_v13 = vpack.c.bf16 %v660_v6, %v656_v5  ;;  %v659_v15 = vld [vmem:[#allocation5 + $0x420] sm:$0xff]  ;;  %v664_v20 = vld [vmem:[#allocation5 + $0x448] sm:$0xff] }
 0x15b   : > { %3923 = vmatpush1.bf16.msra.mxu1 %v3922_v11  ;;  %3733 = vmatprep.subr.bf16.mxu0 %v3732_v12  ;;  %v3750_v11 = vpack.c.bf16 %v651_v1, %v647_v0  ;;  %v3942_v12 = vpack.c.bf16 %v653_v4, %v649_v2  ;;  %v3944_v17 = vpack.c.bf16 %v662_v9, %v658_v7  ;;  %v668_v21 = vld [vmem:[#allocation5 + $0x468] sm:$0xff]  ;;  %v667_v30 = vld [vmem:[#allocation5 + $0x460] sm:$0xff]  ;;  %v665_v31 = vld [vmem:[#allocation5 + $0x450] sm:$0xff] }
 0x15c   : > { %3925 = vmatprep.subr.bf16.mxu1 %v3924_v16  ;;  %v657_v16 = vld [vmem:[#allocation5 + $0x410] sm:$0xff]  ;;  %v3754_v26 = vpack.c.bf16 %v659_v15, %v655_v14  ;;  %v3756_v28 = vpack.c.bf16 %v668_v21, %v664_v20  ;;  %v672_v34 = vld [vmem:[#allocation5 + $0x488] sm:$0xff]  ;;  %v678_v38 = vld [vmem:[#allocation5 + $0x4b8] sm:$0xff] }
 0x15d   : > { %v3946_v27 = vpack.c.bf16 %v661_v18, %v657_v16  ;;  %v669_v33 = vld [vmem:[#allocation5 + $0x470] sm:$0xff]  ;;  %v671_v42 = vld [vmem:[#allocation5 + $0x480] sm:$0xff]  ;;  %v686_v51 = vld [vmem:[#allocation5 + $0x4f8] sm:$0xff] }
 0x15e   : > { %3735 = vmatpush1.bf16.msra.mxu0 %v3734_v23  ;;  %v916_v23 = vrot.slane %v5737_v19, %v5742_v10  ;;  %v3950_v40 = vpack.c.bf16 %v669_v33, %v665_v31  ;;  %v675_v43 = vld [vmem:[#allocation5 + $0x4a0] sm:$0xff]  ;;  %v673_v44 = vld [vmem:[#allocation5 + $0x490] sm:$0xff]  ;;  %v694_v0 = vld [vmem:[#allocation5 + $0x538] sm:$0xff] }
 0x15f   : > { %3927 = vmatpush1.bf16.msra.mxu1 %v3926_v24  ;;  %3737 = vmatprep.subr.bf16.mxu0 %v3736_v25  ;;  %v666_v24 = vld [vmem:[#allocation5 + $0x458] sm:$0xff]  ;;  %v677_v47 = vld [vmem:[#allocation5 + $0x4b0] sm:$0xff]  ;;  %v3762_v52 = vpack.c.bf16 %v675_v43, %v671_v42  ;;  %v679_v55 = vld [vmem:[#allocation5 + $0x4c0] sm:$0xff] }
 0x160   : > { %3929 = vmatprep.subr.bf16.mxu1 %v3928_v29  ;;  %v670_v25 = vld [vmem:[#allocation5 + $0x478] sm:$0xff]  ;;  %v663_v29 = vld [vmem:[#allocation5 + $0x440] sm:$0xff]  ;;  %v3954_v53 = vpack.c.bf16 %v677_v47, %v673_v44  ;;  %v681_v57 = vld [vmem:[#allocation5 + $0x4d0] sm:$0xff] }
 0x161   : > { %v3948_v32 = vpack.c.bf16 %v670_v25, %v666_v24  ;;  %v3758_v39 = vpack.c.bf16 %v667_v30, %v663_v29  ;;  %v683_v56 = vld [vmem:[#allocation5 + $0x4e0] sm:$0xff]  ;;  %v685_v60 = vld [vmem:[#allocation5 + $0x4f0] sm:$0xff]  ;;  %v702_v14 = vld [vmem:[#allocation5 + $0x578] sm:$0xff] }
 0x162   : > { %3739 = vmatpush1.bf16.msra.mxu0 %v3738_v35  ;;  %v676_v35 = vld [vmem:[#allocation5 + $0x4a8] sm:$0xff]  ;;  %v3766_v1 = vpack.c.bf16 %v683_v56, %v679_v55  ;;  %v3958_v2 = vpack.c.bf16 %v685_v60, %v681_v57  ;;  %v687_v4 = vld [vmem:[#allocation5 + $0x500] sm:$0xff]  ;;  %v689_v6 = vld [vmem:[#allocation5 + $0x510] sm:$0xff] }
 0x163   : > { %3931 = vmatpush1.bf16.msra.mxu1 %v3930_v36  ;;  %3741 = vmatprep.subr.bf16.mxu0 %v3740_v37  ;;  %v928_v36 = vrot.slane %v5737_v19, %v5745_v22  ;;  %v674_v37 = vld [vmem:[#allocation5 + $0x498] sm:$0xff]  ;;  %v691_v5 = vld [vmem:[#allocation5 + $0x520] sm:$0xff]  ;;  %v693_v9 = vld [vmem:[#allocation5 + $0x530] sm:$0xff] }
 0x164   : > { %3933 = vmatprep.subr.bf16.mxu1 %v3932_v41  ;;  %v3760_v41 = vpack.c.bf16 %v676_v35, %v672_v34  ;;  %v3952_v45 = vpack.c.bf16 %v678_v38, %v674_v37  ;;  %v3770_v15 = vpack.c.bf16 %v691_v5, %v687_v4  ;;  %v3962_v16 = vpack.c.bf16 %v693_v9, %v689_v6  ;;  %v695_v18 = vld [vmem:[#allocation5 + $0x540] sm:$0xff]  ;;  %v697_v21 = vld [vmem:[#allocation5 + $0x550] sm:$0xff]  ;;  %v704_v25 = vld [vmem:[#allocation5 + $0x588] sm:$0xff] }
 0x165   : > { %v699_v20 = vld [vmem:[#allocation5 + $0x560] sm:$0xff]  ;;  %v701_v24 = vld [vmem:[#allocation5 + $0x570] sm:$0xff]  ;;  %v712_v37 = vld [vmem:[#allocation5 + $0x5c8] sm:$0xff] }
 0x166   : > { %3743 = vmatpush1.bf16.msra.mxu0 %v3742_v48  ;;  %v680_v48 = vld [vmem:[#allocation5 + $0x4c8] sm:$0xff]  ;;  %v3774_v29 = vpack.c.bf16 %v699_v20, %v695_v18  ;;  %v3966_v30 = vpack.c.bf16 %v701_v24, %v697_v21  ;;  %v707_v33 = vld [vmem:[#allocation5 + $0x5a0] sm:$0xff]  ;;  %v705_v34 = vld [vmem:[#allocation5 + $0x590] sm:$0xff] }
 0x167   : > { %3935 = vmatpush1.bf16.msra.mxu1 %v3934_v49  ;;  %3745 = vmatprep.subr.bf16.mxu0 %v3744_v50  ;;  %v684_v49 = vld [vmem:[#allocation5 + $0x4e8] sm:$0xff]  ;;  %v682_v50 = vld [vmem:[#allocation5 + $0x4d8] sm:$0xff]  ;;  %v711_v44 = vld [vmem:[#allocation5 + $0x5c0] sm:$0xff] }
 0x168   : > { %3937 = vmatprep.subr.bf16.mxu1 %v3936_v54  ;;  %v3764_v54 = vpack.c.bf16 %v684_v49, %v680_v48  ;;  %v3956_v58 = vpack.c.bf16 %v686_v51, %v682_v50  ;;  %v716_v38 = vld [vmem:[#allocation5 + $0x5e8] sm:$0xff]  ;;  %v713_v47 = vld [vmem:[#allocation5 + $0x5d0] sm:$0xff]  ;;  %v719_v57 = vld [vmem:[#allocation5 + $0x600] sm:$0xff] }
 0x169   : > { %v3780_v43 = vpack.c.bf16 %v716_v38, %v712_v37  ;;  %v717_v49 = vld [vmem:[#allocation5 + $0x5f0] sm:$0xff]  ;;  %v720_v50 = vld [vmem:[#allocation5 + $0x608] sm:$0xff]  ;;  %v727_v6 = vld [vmem:[#allocation5 + $0x640] sm:$0xff] }
 0x16a   : > { %3747 = vmatpush1.bf16.msra.mxu0 %v3746_v61  ;;  %v688_v61 = vld [vmem:[#allocation5 + $0x508] sm:$0xff]  ;;  %v3974_v55 = vpack.c.bf16 %v717_v49, %v713_v47  ;;  %v721_v60 = vld [vmem:[#allocation5 + $0x610] sm:$0xff]  ;;  %v735_v21 = vld [vmem:[#allocation5 + $0x680] sm:$0xff] }
 0x16b   : > { %3939 = vmatpush1.bf16.msra.mxu1 %v3938_v62  ;;  %3749 = vmatprep.subr.bf16.mxu0 %v3748_v63  ;;  %v692_v62 = vld [vmem:[#allocation5 + $0x528] sm:$0xff]  ;;  %v690_v63 = vld [vmem:[#allocation5 + $0x518] sm:$0xff]  ;;  %v729_v9 = vld [vmem:[#allocation5 + $0x650] sm:$0xff] }
 0x16c   : > { %3941 = vmatprep.subr.bf16.mxu1 %v3940_v3  ;;  %v3768_v3 = vpack.c.bf16 %v692_v62, %v688_v61  ;;  %v3960_v7 = vpack.c.bf16 %v694_v0, %v690_v63  ;;  %v724_v51 = vld [vmem:[#allocation5 + $0x628] sm:$0xff]  ;;  %v725_v62 = vld [vmem:[#allocation5 + $0x630] sm:$0xff]  ;;  %v751_v47 = vld [vmem:[#allocation5 + $0x700] sm:$0xff] }
 0x16d   : > { %v3784_v56 = vpack.c.bf16 %v724_v51, %v720_v50  ;;  %v728_v63 = vld [vmem:[#allocation5 + $0x648] sm:$0xff]  ;;  %v3978_v4 = vpack.c.bf16 %v725_v62, %v721_v60  ;;  %v737_v24 = vld [vmem:[#allocation5 + $0x690] sm:$0xff]  ;;  %v759_v60 = vld [vmem:[#allocation5 + $0x740] sm:$0xff] }
 0x16e   : > { %3751 = vmatpush1.bf16.msra.mxu0 %v3750_v11  ;;  %v696_v11 = vld [vmem:[#allocation5 + $0x548] sm:$0xff]  ;;  %v749_v38 = vld [vmem:[#allocation5 + $0x6f0] sm:$0xff] }
 0x16f   : > { %3943 = vmatpush1.bf16.msra.mxu1 %v3942_v12  ;;  %3753 = vmatprep.subr.bf16.mxu0 %v3752_v13  ;;  %v700_v12 = vld [vmem:[#allocation5 + $0x568] sm:$0xff]  ;;  %v698_v13 = vld [vmem:[#allocation5 + $0x558] sm:$0xff]  ;;  %v753_v49 = vld [vmem:[#allocation5 + $0x710] sm:$0xff] }
 0x170   : > { %3945 = vmatprep.subr.bf16.mxu1 %v3944_v17  ;;  %v3772_v17 = vpack.c.bf16 %v700_v12, %v696_v11  ;;  %v732_v0 = vld [vmem:[#allocation5 + $0x668] sm:$0xff]  ;;  %v733_v12 = vld [vmem:[#allocation5 + $0x670] sm:$0xff] }
 0x171   : > { %1029 = vmatmul.mubr.f32.vlgmr.msra.gmra.mrb[0].mxu0 %v916_v23  ;;  %v3788_v5 = vpack.c.bf16 %v732_v0, %v728_v63  ;;  %v3982_v18 = vpack.c.bf16 %v733_v12, %v729_v9  ;;  %v757_v51 = vld [vmem:[#allocation5 + $0x730] sm:$0xff]  ;;  %v767_v9 = vld [vmem:[#allocation5 + $0x780] sm:$0xff] }
 0x172   : > { %3755 = vmatpush1.bf16.msra.mxu0 %v3754_v26  ;;  %1242 = vmatmul.mubr.f32.vlgmr.msra.gmra.mrb[0].mxu1 %v916_v23  ;;  %v3964_v23 = vpack.c.bf16 %v702_v14, %v698_v13  ;;  %v708_v26 = vld [vmem:[#allocation5 + $0x5a8] sm:$0xff]  ;;  %v761_v62 = vld [vmem:[#allocation5 + $0x750] sm:$0xff] }
 0x173   : > { %3947 = vmatpush1.bf16.msra.mxu1 %v3946_v27  ;;  %3757 = vmatprep.subr.bf16.mxu0 %v3756_v28  ;;  %v706_v27 = vld [vmem:[#allocation5 + $0x598] sm:$0xff]  ;;  %v3776_v31 = vpack.c.bf16 %v708_v26, %v704_v25  ;;  %v736_v13 = vld [vmem:[#allocation5 + $0x688] sm:$0xff]  ;;  %v741_v26 = vld [vmem:[#allocation5 + $0x6b0] sm:$0xff] }
 0x174   : > { %3949 = vmatprep.subr.bf16.mxu1 %v3948_v32  ;;  %1099 = vmatprep.mubr.f32.mxu0 %v928_v36  ;;  %v710_v28 = vld [vmem:[#allocation5 + $0x5b8] sm:$0xff]  ;;  %v703_v32 = vld [vmem:[#allocation5 + $0x580] sm:$0xff]  ;;  %v740_v14 = vld [vmem:[#allocation5 + $0x6a8] sm:$0xff] }
 0x175   : > { %1312 = vmatprep.mubr.f32.mxu1 %v928_v36  ;;  %v3968_v35 = vpack.c.bf16 %v710_v28, %v706_v27  ;;  %v709_v36 = vld [vmem:[#allocation5 + $0x5b0] sm:$0xff]  ;;  %v3792_v20 = vpack.c.bf16 %v740_v14, %v736_v13  ;;  %v744_v27 = vld [vmem:[#allocation5 + $0x6c8] sm:$0xff] }
 0x176   : > { %3759 = vmatpush1.bf16.msra.mxu0 %v3758_v39  ;;  %v714_v39 = vld [vmem:[#allocation5 + $0x5d8] sm:$0xff]  ;;  %v3970_v42 = vpack.c.bf16 %v709_v36, %v705_v34  ;;  %v748_v28 = vld [vmem:[#allocation5 + $0x6e8] sm:$0xff]  ;;  %v743_v34 = vld [vmem:[#allocation5 + $0x6c0] sm:$0xff] }
 0x177   : > { %3951 = vmatpush1.bf16.msra.mxu1 %v3950_v40  ;;  %3761 = vmatprep.subr.bf16.mxu0 %v3760_v41  ;;  %v718_v40 = vld [vmem:[#allocation5 + $0x5f8] sm:$0xff]  ;;  %v3778_v41 = vpack.c.bf16 %v707_v33, %v703_v32  ;;  %v3986_v32 = vpack.c.bf16 %v741_v26, %v737_v24  ;;  %v3796_v33 = vpack.c.bf16 %v748_v28, %v744_v27  ;;  %v745_v36 = vld [vmem:[#allocation5 + $0x6d0] sm:$0xff]  ;;  %v775_v24 = vld [vmem:[#allocation5 + $0x7c0] sm:$0xff] }
 0x178   : > { %3953 = vmatprep.subr.bf16.mxu1 %v3952_v45  ;;  %v715_v45 = vld [vmem:[#allocation5 + $0x5e0] sm:$0xff]  ;;  %v3972_v48 = vpack.c.bf16 %v718_v40, %v714_v39  ;;  %v752_v39 = vld [vmem:[#allocation5 + $0x708] sm:$0xff]  ;;  %v765_v0 = vld [vmem:[#allocation5 + $0x770] sm:$0xff] }
 0x179   : > { %v756_v40 = vld [vmem:[#allocation5 + $0x728] sm:$0xff]  ;;  %v769_v12 = vld [vmem:[#allocation5 + $0x790] sm:$0xff] }
 0x17a   : > { %3763 = vmatpush1.bf16.msra.mxu0 %v3762_v52  ;;  %v722_v52 = vld [vmem:[#allocation5 + $0x618] sm:$0xff]  ;;  %v773_v14 = vld [vmem:[#allocation5 + $0x7b0] sm:$0xff] }
 0x17b   : > { %3955 = vmatpush1.bf16.msra.mxu1 %v3954_v53  ;;  %3765 = vmatprep.subr.bf16.mxu0 %v3764_v54  ;;  %v726_v53 = vld [vmem:[#allocation5 + $0x638] sm:$0xff]  ;;  %v3782_v54 = vpack.c.bf16 %v715_v45, %v711_v44  ;;  %v3990_v44 = vpack.c.bf16 %v749_v38, %v745_v36  ;;  %v3800_v45 = vpack.c.bf16 %v756_v40, %v752_v39  ;;  %v777_v26 = vld [vmem:[#allocation5 + $0x7d0] sm:$0xff]  ;;  %v787_v38 = vld [vmem:[#allocation5 + $0x820] sm:$0xff] }
 0x17c   : > { %3957 = vmatprep.subr.bf16.mxu1 %v3956_v58  ;;  %v723_v58 = vld [vmem:[#allocation5 + $0x620] sm:$0xff]  ;;  %v3976_v61 = vpack.c.bf16 %v726_v53, %v722_v52  ;;  %v760_v52 = vld [vmem:[#allocation5 + $0x748] sm:$0xff]  ;;  %v781_v28 = vld [vmem:[#allocation5 + $0x7f0] sm:$0xff] }
 0x17d   : > { %v764_v53 = vld [vmem:[#allocation5 + $0x768] sm:$0xff]  ;;  %v785_v39 = vld [vmem:[#allocation5 + $0x810] sm:$0xff] }
 0x17e   : > { %3767 = vmatpush1.bf16.msra.mxu0 %v3766_v1  ;;  %v730_v1 = vld [vmem:[#allocation5 + $0x658] sm:$0xff]  ;;  %v1487_v46 = vld [vmem:[#allocation8 + $0x308] sm:$0xff] }
 0x17f   : > { %3959 = vmatpush1.bf16.msra.mxu1 %v3958_v2  ;;  %3769 = vmatprep.subr.bf16.mxu0 %v3768_v3  ;;  %v734_v2 = vld [vmem:[#allocation5 + $0x678] sm:$0xff]  ;;  %v3786_v3 = vpack.c.bf16 %v723_v58, %v719_v57  ;;  %v3994_v57 = vpack.c.bf16 %v757_v51, %v753_v49  ;;  %v3804_v58 = vpack.c.bf16 %v764_v53, %v760_v52  ;;  %v791_v52 = vld [vmem:[#allocation5 + $0x840] sm:$0xff] }
 0x180   : > { %3961 = vmatprep.subr.bf16.mxu1 %v3960_v7  ;;  %v731_v7 = vld [vmem:[#allocation5 + $0x660] sm:$0xff]  ;;  %v3980_v11 = vpack.c.bf16 %v734_v2, %v730_v1  ;;  %v768_v1 = vld [vmem:[#allocation5 + $0x788] sm:$0xff] }
 0x181   : > { %v772_v2 = vld [vmem:[#allocation5 + $0x7a8] sm:$0xff]  ;;  %v795_v53 = vld [vmem:[#allocation5 + $0x860] sm:$0xff] }
 0x182   : > { %3771 = vmatpush1.bf16.msra.mxu0 %v3770_v15  ;;  %v738_v15 = vld [vmem:[#allocation5 + $0x698] sm:$0xff] }
 0x183   : > { %3963 = vmatpush1.bf16.msra.mxu1 %v3962_v16  ;;  %3773 = vmatprep.subr.bf16.mxu0 %v3772_v17  ;;  %v742_v16 = vld [vmem:[#allocation5 + $0x6b8] sm:$0xff]  ;;  %v3790_v17 = vpack.c.bf16 %v731_v7, %v727_v6  ;;  %v3998_v6 = vpack.c.bf16 %v765_v0, %v761_v62  ;;  %v3808_v7 = vpack.c.bf16 %v772_v2, %v768_v1  ;;  %v799_v2 = vld [vmem:[#allocation5 + $0x880] sm:$0xff] }
 0x184   : > { %3965 = vmatprep.subr.bf16.mxu1 %v3964_v23  ;;  %v739_v23 = vld [vmem:[#allocation5 + $0x6a0] sm:$0xff]  ;;  %v3984_v25 = vpack.c.bf16 %v742_v16, %v738_v15  ;;  %v776_v15 = vld [vmem:[#allocation5 + $0x7c8] sm:$0xff]  ;;  %v806_v62 = vld [vmem:[#allocation5 + $0x8b8] sm:$0xff] }
 0x185   : > { %v780_v16 = vld [vmem:[#allocation5 + $0x7e8] sm:$0xff] }
 0x186   : > { %3775 = vmatpush1.bf16.msra.mxu0 %v3774_v29  ;;  %v746_v29 = vld [vmem:[#allocation5 + $0x6d8] sm:$0xff] }
 0x187   : > { %3967 = vmatpush1.bf16.msra.mxu1 %v3966_v30  ;;  %3777 = vmatprep.subr.bf16.mxu0 %v3776_v31  ;;  %v750_v30 = vld [vmem:[#allocation5 + $0x6f8] sm:$0xff]  ;;  %v3794_v31 = vpack.c.bf16 %v739_v23, %v735_v21  ;;  %v4002_v21 = vpack.c.bf16 %v773_v14, %v769_v12  ;;  %v3812_v23 = vpack.c.bf16 %v780_v16, %v776_v15  ;;  %v807_v15 = vld [vmem:[#allocation5 + $0x8c0] sm:$0xff] }
 0x188   : > { %3969 = vmatprep.subr.bf16.mxu1 %v3968_v35  ;;  %v747_v35 = vld [vmem:[#allocation5 + $0x6e0] sm:$0xff]  ;;  %v3988_v37 = vpack.c.bf16 %v750_v30, %v746_v29  ;;  %v784_v29 = vld [vmem:[#allocation5 + $0x808] sm:$0xff] }
 0x189   : > { %v788_v30 = vld [vmem:[#allocation5 + $0x828] sm:$0xff]  ;;  %v811_v16 = vld [vmem:[#allocation5 + $0x8e0] sm:$0xff] }
 0x18a   : > { %3779 = vmatpush1.bf16.msra.mxu0 %v3778_v41  ;;  %v754_v41 = vld [vmem:[#allocation5 + $0x718] sm:$0xff]  ;;  %v3816_v36 = vpack.c.bf16 %v788_v30, %v784_v29  ;;  %v815_v29 = vld [vmem:[#allocation5 + $0x900] sm:$0xff] }
 0x18b   : > { %3971 = vmatpush1.bf16.msra.mxu1 %v3970_v42  ;;  %3781 = vmatprep.subr.bf16.mxu0 %v3780_v43  ;;  %v758_v42 = vld [vmem:[#allocation5 + $0x738] sm:$0xff]  ;;  %v3798_v43 = vpack.c.bf16 %v747_v35, %v743_v34  ;;  %v4006_v35 = vpack.c.bf16 %v781_v28, %v777_v26  ;;  %v3830_v26 = vpack.c.bf16 %v811_v16, %v807_v15  ;;  %v819_v30 = vld [vmem:[#allocation5 + $0x920] sm:$0xff] }
 0x18c   : > { %3973 = vmatprep.subr.bf16.mxu1 %v3972_v48  ;;  %v755_v48 = vld [vmem:[#allocation5 + $0x720] sm:$0xff]  ;;  %v3992_v50 = vpack.c.bf16 %v758_v42, %v754_v41  ;;  %v789_v41 = vld [vmem:[#allocation5 + $0x830] sm:$0xff]  ;;  %v792_v42 = vld [vmem:[#allocation5 + $0x848] sm:$0xff] }
 0x18e   : > { %3783 = vmatpush1.bf16.msra.mxu0 %v3782_v54  ;;  %v762_v54 = vld [vmem:[#allocation5 + $0x758] sm:$0xff] }
 0x18f   : > { %3975 = vmatpush1.bf16.msra.mxu1 %v3974_v55  ;;  %3785 = vmatprep.subr.bf16.mxu0 %v3784_v56  ;;  %v766_v55 = vld [vmem:[#allocation5 + $0x778] sm:$0xff]  ;;  %v3802_v56 = vpack.c.bf16 %v755_v48, %v751_v47 }
 0x190   : > { %3977 = vmatprep.subr.bf16.mxu1 %v3976_v61  ;;  %v763_v61 = vld [vmem:[#allocation5 + $0x760] sm:$0xff]  ;;  %v3996_v63 = vpack.c.bf16 %v766_v55, %v762_v54  ;;  %v794_v47 = vld [vmem:[#allocation5 + $0x858] sm:$0xff]  ;;  %v793_v54 = vld [vmem:[#allocation5 + $0x850] sm:$0xff] }
 0x191   : > { %v798_v48 = vld [vmem:[#allocation5 + $0x878] sm:$0xff] }
 0x192   : > { %3787 = vmatpush1.bf16.msra.mxu0 %v3786_v3  ;;  %v770_v3 = vld [vmem:[#allocation5 + $0x798] sm:$0xff]  ;;  %v4012_v55 = vpack.c.bf16 %v798_v48, %v794_v47  ;;  %v829_v48 = vld [vmem:[#allocation5 + $0x970] sm:$0xff] }
 0x193   : > { %3979 = vmatpush1.bf16.msra.mxu1 %v3978_v4  ;;  %3789 = vmatprep.subr.bf16.mxu0 %v3788_v5  ;;  %v774_v4 = vld [vmem:[#allocation5 + $0x7b8] sm:$0xff]  ;;  %v3806_v5 = vpack.c.bf16 %v763_v61, %v759_v60 }
 0x194   : > { %3981 = vmatprep.subr.bf16.mxu1 %v3980_v11  ;;  %v771_v11 = vld [vmem:[#allocation5 + $0x7a0] sm:$0xff]  ;;  %v4000_v13 = vpack.c.bf16 %v774_v4, %v770_v3  ;;  %v802_v61 = vld [vmem:[#allocation5 + $0x898] sm:$0xff]  ;;  %v801_v4 = vld [vmem:[#allocation5 + $0x890] sm:$0xff] }
 0x195   : > { %v803_v3 = vld [vmem:[#allocation5 + $0x8a0] sm:$0xff] }
 0x196   : > { %3791 = vmatpush1.bf16.msra.mxu0 %v3790_v17  ;;  %v778_v17 = vld [vmem:[#allocation5 + $0x7d8] sm:$0xff]  ;;  %v3826_v12 = vpack.c.bf16 %v803_v3, %v799_v2 }
 0x197   : > { %3983 = vmatpush1.bf16.msra.mxu1 %v3982_v18  ;;  %3793 = vmatprep.subr.bf16.mxu0 %v3792_v20  ;;  %v782_v18 = vld [vmem:[#allocation5 + $0x7f8] sm:$0xff]  ;;  %v3810_v20 = vpack.c.bf16 %v771_v11, %v767_v9  ;;  %v812_v9 = vld [vmem:[#allocation5 + $0x8e8] sm:$0xff] }
 0x198   : > { %3985 = vmatprep.subr.bf16.mxu1 %v3984_v25  ;;  %v779_v25 = vld [vmem:[#allocation5 + $0x7e0] sm:$0xff]  ;;  %v4004_v27 = vpack.c.bf16 %v782_v18, %v778_v17  ;;  %v814_v11 = vld [vmem:[#allocation5 + $0x8f8] sm:$0xff]  ;;  %v809_v17 = vld [vmem:[#allocation5 + $0x8d0] sm:$0xff] }
 0x199   : > { %v3814_v34 = vpack.c.bf16 %v779_v25, %v775_v24  ;;  %v818_v24 = vld [vmem:[#allocation5 + $0x918] sm:$0xff] }
 0x19a   : > { %3795 = vmatpush1.bf16.msra.mxu0 %v3794_v31  ;;  %v786_v31 = vld [vmem:[#allocation5 + $0x818] sm:$0xff] }
 0x19b   : > { %3987 = vmatpush1.bf16.msra.mxu1 %v3986_v32  ;;  %3797 = vmatprep.subr.bf16.mxu0 %v3796_v33  ;;  %v790_v32 = vld [vmem:[#allocation5 + $0x838] sm:$0xff]  ;;  %v5752_v33 = vsub.s32 2, %v5731_v59 }
 0x19c   : > { %3989 = vmatprep.subr.bf16.mxu1 %v3988_v37  ;;  %v783_v37 = vld [vmem:[#allocation5 + $0x800] sm:$0xff]  ;;  %v4008_v40 = vpack.c.bf16 %v790_v32, %v786_v31  ;;  %v822_v25 = vld [vmem:[#allocation5 + $0x938] sm:$0xff]  ;;  %v817_v31 = vld [vmem:[#allocation5 + $0x910] sm:$0xff] }
 0x19d   : > { %v3818_v49 = vpack.c.bf16 %v787_v38, %v783_v37  ;;  %v4024_v32 = vpack.c.bf16 %v822_v25, %v818_v24  ;;  %v826_v37 = vld [vmem:[#allocation5 + $0x958] sm:$0xff]  ;;  %v853_v24 = vld [vmem:[#allocation5 + $0xa30] sm:$0xff]  ;;  %v856_v25 = vld [vmem:[#allocation5 + $0xa48] sm:$0xff] }
 0x19e   : > { %3799 = vmatpush1.bf16.msra.mxu0 %v3798_v43  ;;  %v796_v43 = vld [vmem:[#allocation5 + $0x868] sm:$0xff]  ;;  %v830_v38 = vld [vmem:[#allocation5 + $0x978] sm:$0xff] }
 0x19f   : > { %3991 = vmatpush1.bf16.msra.mxu1 %v3990_v44  ;;  %3801 = vmatprep.subr.bf16.mxu0 %v3800_v45  ;;  %v6518_v44 = vsub.s32 5, %v5731_v59  ;;  %v924_v45 = vrot.slane %v5737_v19, %v5752_v33  ;;  %v3820_v51 = vpack.c.bf16 %v796_v43, %v792_v42  ;;  %v823_v42 = vld [vmem:[#allocation5 + $0x940] sm:$0xff]  ;;  %v4028_v47 = vpack.c.bf16 %v830_v38, %v826_v37  ;;  %v861_v37 = vld [vmem:[#allocation5 + $0xa70] sm:$0xff]  ;;  %v864_v38 = vld [vmem:[#allocation5 + $0xa88] sm:$0xff] }
 0x1a0   : > { %3993 = vmatprep.subr.bf16.mxu1 %v3992_v50  ;;  %v4010_v50 = vpack.c.bf16 %v789_v41, %v785_v39  ;;  %v3834_v39 = vpack.c.bf16 %v819_v30, %v815_v29  ;;  %v827_v43 = vld [vmem:[#allocation5 + $0x960] sm:$0xff] }
 0x1a1   : > { %v936_v60 = vrot.slane %v5737_v19, %v6518_v44  ;;  %v810_v19 = vld [vmem:[#allocation5 + $0x8d8] sm:$0xff] }
 0x1a2   : > { %3803 = vmatpush1.bf16.msra.mxu0 %v3802_v56  ;;  %v797_v56 = vld [vmem:[#allocation5 + $0x870] sm:$0xff]  ;;  %v4020_v18 = vpack.c.bf16 %v814_v11, %v810_v19  ;;  %v848_v11 = vld [vmem:[#allocation5 + $0xa08] sm:$0xff] }
 0x1a3   : > { %3995 = vmatpush1.bf16.msra.mxu1 %v3994_v57  ;;  %3805 = vmatprep.subr.bf16.mxu0 %v3804_v58  ;;  %v800_v57 = vld [vmem:[#allocation5 + $0x888] sm:$0xff]  ;;  %v4014_v0 = vpack.c.bf16 %v797_v56, %v793_v54  ;;  %v831_v56 = vld [vmem:[#allocation5 + $0x980] sm:$0xff]  ;;  %v845_v19 = vld [vmem:[#allocation5 + $0x9f0] sm:$0xff] }
 0x1a4   : > { %3997 = vmatprep.subr.bf16.mxu1 %v3996_v63  ;;  %v804_v58 = vld [vmem:[#allocation5 + $0x8a8] sm:$0xff]  ;;  %v3822_v63 = vpack.c.bf16 %v795_v53, %v791_v52  ;;  %v838_v52 = vld [vmem:[#allocation5 + $0x9b8] sm:$0xff]  ;;  %v3838_v53 = vpack.c.bf16 %v827_v43, %v823_v42 }
 0x1a5   : > { %v3824_v1 = vpack.c.bf16 %v804_v58, %v800_v57  ;;  %v835_v57 = vld [vmem:[#allocation5 + $0x9a0] sm:$0xff]  ;;  %v833_v58 = vld [vmem:[#allocation5 + $0x990] sm:$0xff] }
 0x1a6   : > { %3807 = vmatpush1.bf16.msra.mxu0 %v3806_v5  ;;  %v4016_v5 = vpack.c.bf16 %v806_v62, %v802_v61  ;;  %v837_v61 = vld [vmem:[#allocation5 + $0x9b0] sm:$0xff]  ;;  %v840_v62 = vld [vmem:[#allocation5 + $0x9c8] sm:$0xff]  ;;  %v3842_v2 = vpack.c.bf16 %v835_v57, %v831_v56 }
 0x1a7   : > { %3999 = vmatpush1.bf16.msra.mxu1 %v3998_v6  ;;  %3809 = vmatprep.subr.bf16.mxu0 %v3808_v7  ;;  %v805_v6 = vld [vmem:[#allocation5 + $0x8b0] sm:$0xff]  ;;  %v808_v7 = vld [vmem:[#allocation5 + $0x8c8] sm:$0xff]  ;;  %v4034_v3 = vpack.c.bf16 %v837_v61, %v833_v58  ;;  %v875_v61 = vld [vmem:[#allocation5 + $0xae0] sm:$0xff] }
 0x1a8   : > { %4001 = vmatprep.subr.bf16.mxu1 %v4000_v13  ;;  %v4018_v13 = vpack.c.bf16 %v805_v6, %v801_v4  ;;  %v3828_v14 = vpack.c.bf16 %v812_v9, %v808_v7  ;;  %v843_v6 = vld [vmem:[#allocation5 + $0x9e0] sm:$0xff]  ;;  %v841_v7 = vld [vmem:[#allocation5 + $0x9d0] sm:$0xff] }
 0x1a9   : > { %v4038_v16 = vpack.c.bf16 %v845_v19, %v841_v7  ;;  %v883_v19 = vld [vmem:[#allocation5 + $0xb20] sm:$0xff] }
 0x1aa   : > { %3811 = vmatpush1.bf16.msra.mxu0 %v3810_v20  ;;  %v813_v20 = vld [vmem:[#allocation5 + $0x8f0] sm:$0xff] }
 0x1ab   : > { %4003 = vmatpush1.bf16.msra.mxu1 %v4002_v21  ;;  %3813 = vmatprep.subr.bf16.mxu0 %v3812_v23  ;;  %v816_v21 = vld [vmem:[#allocation5 + $0x908] sm:$0xff] }
 0x1ac   : > { %4005 = vmatprep.subr.bf16.mxu1 %v4004_v27  ;;  %v820_v23 = vld [vmem:[#allocation5 + $0x928] sm:$0xff]  ;;  %v4022_v27 = vpack.c.bf16 %v813_v20, %v809_v17  ;;  %v851_v20 = vld [vmem:[#allocation5 + $0xa20] sm:$0xff] }
 0x1ad   : > { %v3832_v28 = vpack.c.bf16 %v820_v23, %v816_v21  ;;  %v849_v21 = vld [vmem:[#allocation5 + $0xa10] sm:$0xff] }
 0x1ae   : > { %3815 = vmatpush1.bf16.msra.mxu0 %v3814_v34  ;;  %v821_v34 = vld [vmem:[#allocation5 + $0x930] sm:$0xff]  ;;  %v4042_v30 = vpack.c.bf16 %v853_v24, %v849_v21  ;;  %v891_v24 = vld [vmem:[#allocation5 + $0xb60] sm:$0xff] }
 0x1af   : > { %4007 = vmatpush1.bf16.msra.mxu1 %v4006_v35  ;;  %3817 = vmatprep.subr.bf16.mxu0 %v3816_v36  ;;  %v824_v35 = vld [vmem:[#allocation5 + $0x948] sm:$0xff] }
 0x1b0   : > { %4009 = vmatprep.subr.bf16.mxu1 %v4008_v40  ;;  %v828_v36 = vld [vmem:[#allocation5 + $0x968] sm:$0xff]  ;;  %v4026_v40 = vpack.c.bf16 %v821_v34, %v817_v31  ;;  %v859_v34 = vld [vmem:[#allocation5 + $0xa60] sm:$0xff] }
 0x1b1   : > { %1100 = vmatmul.mubr.f32.vlgmr.msra.gmra.mrb[0].mxu0 %v924_v45  ;;  %v3836_v41 = vpack.c.bf16 %v828_v36, %v824_v35  ;;  %v857_v35 = vld [vmem:[#allocation5 + $0xa50] sm:$0xff] }
 0x1b2   : > { %3819 = vmatpush1.bf16.msra.mxu0 %v3818_v49  ;;  %1313 = vmatmul.mubr.f32.vlgmr.msra.gmra.mrb[0].mxu1 %v924_v45  ;;  %v825_v45 = vld [vmem:[#allocation5 + $0x950] sm:$0xff]  ;;  %v832_v49 = vld [vmem:[#allocation5 + $0x988] sm:$0xff]  ;;  %v4046_v43 = vpack.c.bf16 %v861_v37, %v857_v35  ;;  %v899_v37 = vld [vmem:[#allocation5 + $0xba0] sm:$0xff] }
 0x1b3   : > { %4011 = vmatpush1.bf16.msra.mxu1 %v4010_v50  ;;  %3821 = vmatprep.subr.bf16.mxu0 %v3820_v51  ;;  %v836_v50 = vld [vmem:[#allocation5 + $0x9a8] sm:$0xff]  ;;  %v834_v51 = vld [vmem:[#allocation5 + $0x998] sm:$0xff]  ;;  %v4030_v54 = vpack.c.bf16 %v829_v48, %v825_v45  ;;  %v867_v48 = vld [vmem:[#allocation5 + $0xaa0] sm:$0xff] }
 0x1b4   : > { %4013 = vmatprep.subr.bf16.mxu1 %v4012_v55  ;;  %1170 = vmatprep.mubr.f32.mxu0 %v936_v60  ;;  %v3840_v55 = vpack.c.bf16 %v836_v50, %v832_v49  ;;  %v865_v49 = vld [vmem:[#allocation5 + $0xa90] sm:$0xff] }
 0x1b5   : > { %1383 = vmatprep.mubr.f32.mxu1 %v936_v60  ;;  %v4032_v60 = vpack.c.bf16 %v838_v52, %v834_v51  ;;  %v869_v51 = vld [vmem:[#allocation5 + $0xab0] sm:$0xff]  ;;  %v872_v52 = vld [vmem:[#allocation5 + $0xac8] sm:$0xff] }
 0x1b6   : > { %3823 = vmatpush1.bf16.msra.mxu0 %v3822_v63  ;;  %v844_v63 = vld [vmem:[#allocation5 + $0x9e8] sm:$0xff]  ;;  %v4050_v57 = vpack.c.bf16 %v869_v51, %v865_v49  ;;  %v907_v51 = vld [vmem:[#allocation5 + $0xbe0] sm:$0xff] }
 0x1b7   : > { %4015 = vmatpush1.bf16.msra.mxu1 %v4014_v0  ;;  %3825 = vmatprep.subr.bf16.mxu0 %v3824_v1  ;;  %v842_v0 = vld [vmem:[#allocation5 + $0x9d8] sm:$0xff]  ;;  %v3844_v4 = vpack.c.bf16 %v844_v63, %v840_v62  ;;  %v873_v62 = vld [vmem:[#allocation5 + $0xad0] sm:$0xff] }
 0x1b8   : > { %4017 = vmatprep.subr.bf16.mxu1 %v4016_v5  ;;  %v846_v1 = vld [vmem:[#allocation5 + $0x9f8] sm:$0xff]  ;;  %v839_v5 = vld [vmem:[#allocation5 + $0x9c0] sm:$0xff] }
 0x1b9   : > { %v4036_v9 = vpack.c.bf16 %v846_v1, %v842_v0  ;;  %v3846_v15 = vpack.c.bf16 %v843_v6, %v839_v5  ;;  %v877_v0 = vld [vmem:[#allocation5 + $0xaf0] sm:$0xff]  ;;  %v880_v1 = vld [vmem:[#allocation5 + $0xb08] sm:$0xff] }
 0x1ba   : > { %3827 = vmatpush1.bf16.msra.mxu0 %v3826_v12  ;;  %v852_v12 = vld [vmem:[#allocation5 + $0xa28] sm:$0xff]  ;;  %v4054_v6 = vpack.c.bf16 %v877_v0, %v873_v62 }
 0x1bb   : > { %4019 = vmatpush1.bf16.msra.mxu1 %v4018_v13  ;;  %3829 = vmatprep.subr.bf16.mxu0 %v3828_v14  ;;  %v850_v13 = vld [vmem:[#allocation5 + $0xa18] sm:$0xff]  ;;  %v3848_v17 = vpack.c.bf16 %v852_v12, %v848_v11  ;;  %v881_v11 = vld [vmem:[#allocation5 + $0xb10] sm:$0xff]  ;;  %v1390_v0 = vld [vmem:[#allocation8] sm:$0xff] }
 0x1bc   : > { %4021 = vmatprep.subr.bf16.mxu1 %v4020_v18  ;;  %v854_v14 = vld [vmem:[#allocation5 + $0xa38] sm:$0xff]  ;;  %v847_v18 = vld [vmem:[#allocation5 + $0xa00] sm:$0xff] }
 0x1bd   : > { %v4040_v23 = vpack.c.bf16 %v854_v14, %v850_v13  ;;  %v3850_v29 = vpack.c.bf16 %v851_v20, %v847_v18  ;;  %v885_v13 = vld [vmem:[#allocation5 + $0xb30] sm:$0xff]  ;;  %v888_v14 = vld [vmem:[#allocation5 + $0xb48] sm:$0xff] }
 0x1be   : > { %3831 = vmatpush1.bf16.msra.mxu0 %v3830_v26  ;;  %v860_v26 = vld [vmem:[#allocation5 + $0xa68] sm:$0xff]  ;;  %v4058_v20 = vpack.c.bf16 %v885_v13, %v881_v11  ;;  %v1405_v11 = vld [vmem:[#allocation8 + $0x78] sm:$0xff] }
 0x1bf   : > { %4023 = vmatpush1.bf16.msra.mxu1 %v4022_v27  ;;  %3833 = vmatprep.subr.bf16.mxu0 %v3832_v28  ;;  %v858_v27 = vld [vmem:[#allocation5 + $0xa58] sm:$0xff]  ;;  %v3852_v31 = vpack.c.bf16 %v860_v26, %v856_v25  ;;  %v889_v25 = vld [vmem:[#allocation5 + $0xb50] sm:$0xff] }
 0x1c0   : > { %4025 = vmatprep.subr.bf16.mxu1 %v4024_v32  ;;  %v862_v28 = vld [vmem:[#allocation5 + $0xa78] sm:$0xff]  ;;  %v855_v32 = vld [vmem:[#allocation5 + $0xa40] sm:$0xff] }
 0x1c1   : > { %v4044_v36 = vpack.c.bf16 %v862_v28, %v858_v27  ;;  %v3854_v42 = vpack.c.bf16 %v859_v34, %v855_v32  ;;  %v893_v27 = vld [vmem:[#allocation5 + $0xb70] sm:$0xff]  ;;  %v896_v28 = vld [vmem:[#allocation5 + $0xb88] sm:$0xff] }
 0x1c2   : > { %3835 = vmatpush1.bf16.msra.mxu0 %v3834_v39  ;;  %v868_v39 = vld [vmem:[#allocation5 + $0xaa8] sm:$0xff]  ;;  %v4062_v34 = vpack.c.bf16 %v893_v27, %v889_v25  ;;  %v1413_v25 = vld [vmem:[#allocation8 + $0xb8] sm:$0xff] }
 0x1c3   : > { %4027 = vmatpush1.bf16.msra.mxu1 %v4026_v40  ;;  %3837 = vmatprep.subr.bf16.mxu0 %v3836_v41  ;;  %v866_v40 = vld [vmem:[#allocation5 + $0xa98] sm:$0xff]  ;;  %v3856_v45 = vpack.c.bf16 %v868_v39, %v864_v38  ;;  %v897_v38 = vld [vmem:[#allocation5 + $0xb90] sm:$0xff] }
 0x1c4   : > { %4029 = vmatprep.subr.bf16.mxu1 %v4028_v47  ;;  %v870_v41 = vld [vmem:[#allocation5 + $0xab8] sm:$0xff]  ;;  %v863_v47 = vld [vmem:[#allocation5 + $0xa80] sm:$0xff] }
 0x1c5   : > { %v4048_v50 = vpack.c.bf16 %v870_v41, %v866_v40  ;;  %v3858_v56 = vpack.c.bf16 %v867_v48, %v863_v47  ;;  %v901_v40 = vld [vmem:[#allocation5 + $0xbb0] sm:$0xff]  ;;  %v904_v41 = vld [vmem:[#allocation5 + $0xbc8] sm:$0xff] }
 0x1c6   : > { %3839 = vmatpush1.bf16.msra.mxu0 %v3838_v53  ;;  %v876_v53 = vld [vmem:[#allocation5 + $0xae8] sm:$0xff]  ;;  %v4066_v48 = vpack.c.bf16 %v901_v40, %v897_v38  ;;  %v1421_v38 = vld [vmem:[#allocation8 + $0xf8] sm:$0xff] }
 0x1c7   : > { %4031 = vmatpush1.bf16.msra.mxu1 %v4030_v54  ;;  %3841 = vmatprep.subr.bf16.mxu0 %v3840_v55  ;;  %v874_v54 = vld [vmem:[#allocation5 + $0xad8] sm:$0xff]  ;;  %v3860_v58 = vpack.c.bf16 %v876_v53, %v872_v52  ;;  %v905_v52 = vld [vmem:[#allocation5 + $0xbd0] sm:$0xff] }
 0x1c8   : > { %4033 = vmatprep.subr.bf16.mxu1 %v4032_v60  ;;  %v878_v55 = vld [vmem:[#allocation5 + $0xaf8] sm:$0xff]  ;;  %v871_v60 = vld [vmem:[#allocation5 + $0xac0] sm:$0xff] }
 0x1c9   : > { %v4052_v63 = vpack.c.bf16 %v878_v55, %v874_v54  ;;  %v3862_v5 = vpack.c.bf16 %v875_v61, %v871_v60  ;;  %v909_v54 = vld [vmem:[#allocation5 + $0xbf0] sm:$0xff]  ;;  %v1397_v60 = vld [vmem:[#allocation8 + $0x38] sm:$0xff] }
 0x1ca   : > { %3843 = vmatpush1.bf16.msra.mxu0 %v3842_v2  ;;  %v884_v2 = vld [vmem:[#allocation5 + $0xb28] sm:$0xff]  ;;  %v4070_v62 = vpack.c.bf16 %v909_v54, %v905_v52  ;;  %v1429_v52 = vld [vmem:[#allocation8 + $0x138] sm:$0xff] }
 0x1cb   : > { %4035 = vmatpush1.bf16.msra.mxu1 %v4034_v3  ;;  %3845 = vmatprep.subr.bf16.mxu0 %v3844_v4  ;;  %v882_v3 = vld [vmem:[#allocation5 + $0xb18] sm:$0xff]  ;;  %v3864_v7 = vpack.c.bf16 %v884_v2, %v880_v1  ;;  %v1391_v55 = vld [vmem:[#allocation8 + $0x8] sm:$0xff]  ;;  %v1394_v1 = vld [vmem:[#allocation8 + $0x20] sm:$0xff] }
 0x1cc   : > { %4037 = vmatprep.subr.bf16.mxu1 %v4036_v9  ;;  %v886_v4 = vld [vmem:[#allocation5 + $0xb38] sm:$0xff]  ;;  %v879_v9 = vld [vmem:[#allocation5 + $0xb00] sm:$0xff] }
 0x1cd   : > { %v4056_v12 = vpack.c.bf16 %v886_v4, %v882_v3  ;;  %v3866_v18 = vpack.c.bf16 %v883_v19, %v879_v9  ;;  %v1392_v2 = vld [vmem:[#allocation8 + $0x10] sm:$0xff]  ;;  %v1401_v19 = vld [vmem:[#allocation8 + $0x58] sm:$0xff] }
 0x1ce   : > { %3847 = vmatpush1.bf16.msra.mxu0 %v3846_v15  ;;  %v892_v15 = vld [vmem:[#allocation5 + $0xb68] sm:$0xff]  ;;  %v1396_v4 = vld [vmem:[#allocation8 + $0x30] sm:$0xff] }
 0x1cf   : > { %4039 = vmatpush1.bf16.msra.mxu1 %v4038_v16  ;;  %3849 = vmatprep.subr.bf16.mxu0 %v3848_v17  ;;  %v890_v16 = vld [vmem:[#allocation5 + $0xb58] sm:$0xff]  ;;  %v3868_v21 = vpack.c.bf16 %v892_v15, %v888_v14  ;;  %v5771_v13 = vpack.c.bf16 %v1396_v4, %v1392_v2  ;;  %v1398_v15 = vld [vmem:[#allocation8 + $0x40] sm:$0xff] }
 0x1d0   : > { %4041 = vmatprep.subr.bf16.mxu1 %v4040_v23  ;;  %v894_v17 = vld [vmem:[#allocation5 + $0xb78] sm:$0xff]  ;;  %v887_v23 = vld [vmem:[#allocation5 + $0xb40] sm:$0xff] }
 0x1d1   : > { %v4060_v26 = vpack.c.bf16 %v894_v17, %v890_v16  ;;  %v3870_v32 = vpack.c.bf16 %v891_v24, %v887_v23  ;;  %v1402_v16 = vld [vmem:[#allocation8 + $0x60] sm:$0xff]  ;;  %v1400_v17 = vld [vmem:[#allocation8 + $0x50] sm:$0xff]  ;;  %v1411_v23 = vld [vmem:[#allocation8 + $0xa8] sm:$0xff] }
 0x1d2   : > { %3851 = vmatpush1.bf16.msra.mxu0 %v3850_v29  ;;  %v900_v29 = vld [vmem:[#allocation5 + $0xba8] sm:$0xff]  ;;  %v1409_v24 = vld [vmem:[#allocation8 + $0x98] sm:$0xff] }
 0x1d3   : > { %4043 = vmatpush1.bf16.msra.mxu1 %v4042_v30  ;;  %3853 = vmatprep.subr.bf16.mxu0 %v3852_v31  ;;  %v898_v30 = vld [vmem:[#allocation5 + $0xb98] sm:$0xff]  ;;  %v3872_v35 = vpack.c.bf16 %v900_v29, %v896_v28  ;;  %v1406_v29 = vld [vmem:[#allocation8 + $0x80] sm:$0xff] }
 0x1d4   : > { %4045 = vmatprep.subr.bf16.mxu1 %v4044_v36  ;;  %v902_v31 = vld [vmem:[#allocation5 + $0xbb8] sm:$0xff]  ;;  %v895_v36 = vld [vmem:[#allocation5 + $0xb80] sm:$0xff] }
 0x1d5   : > { %v4064_v39 = vpack.c.bf16 %v902_v31, %v898_v30  ;;  %v3874_v47 = vpack.c.bf16 %v899_v37, %v895_v36  ;;  %v1410_v30 = vld [vmem:[#allocation8 + $0xa0] sm:$0xff]  ;;  %v1408_v31 = vld [vmem:[#allocation8 + $0x90] sm:$0xff]  ;;  %v1419_v36 = vld [vmem:[#allocation8 + $0xe8] sm:$0xff] }
 0x1d6   : > { %3855 = vmatpush1.bf16.msra.mxu0 %v3854_v42  ;;  %v908_v42 = vld [vmem:[#allocation5 + $0xbe8] sm:$0xff]  ;;  %v1417_v37 = vld [vmem:[#allocation8 + $0xd8] sm:$0xff] }
 0x1d7   : > { %4047 = vmatpush1.bf16.msra.mxu1 %v4046_v43  ;;  %3857 = vmatprep.subr.bf16.mxu0 %v3856_v45  ;;  %v906_v43 = vld [vmem:[#allocation5 + $0xbd8] sm:$0xff]  ;;  %v3876_v49 = vpack.c.bf16 %v908_v42, %v904_v41  ;;  %v1414_v42 = vld [vmem:[#allocation8 + $0xc0] sm:$0xff] }
 0x1d8   : > { %4049 = vmatprep.subr.bf16.mxu1 %v4048_v50  ;;  %v910_v45 = vld [vmem:[#allocation5 + $0xbf8] sm:$0xff]  ;;  %v903_v50 = vld [vmem:[#allocation5 + $0xbc0] sm:$0xff] }
 0x1d9   : > { %v4068_v53 = vpack.c.bf16 %v910_v45, %v906_v43  ;;  %v3878_v61 = vpack.c.bf16 %v907_v51, %v903_v50  ;;  %v1418_v43 = vld [vmem:[#allocation8 + $0xe0] sm:$0xff]  ;;  %v1416_v45 = vld [vmem:[#allocation8 + $0xd0] sm:$0xff]  ;;  %v1427_v50 = vld [vmem:[#allocation8 + $0x128] sm:$0xff] }
 0x1da   : > { %3859 = vmatpush1.bf16.msra.mxu0 %v3858_v56  ;;  %v1395_v56 = vld [vmem:[#allocation8 + $0x28] sm:$0xff]  ;;  %v1425_v51 = vld [vmem:[#allocation8 + $0x118] sm:$0xff] }
 0x1db   : > { %4051 = vmatpush1.bf16.msra.mxu1 %v4050_v57  ;;  %3861 = vmatprep.subr.bf16.mxu0 %v3860_v58  ;;  %v6519_v57 = vsub.s32 4, %v5731_v59  ;;  %v1393_v58 = vld [vmem:[#allocation8 + $0x18] sm:$0xff]  ;;  %v1491_v59 = vld [vmem:[#allocation8 + $0x328] sm:$0xff] }
 0x1dc   : > { %4053 = vmatprep.subr.bf16.mxu1 %v4052_v63  ;;  %v5761_v63 = vpack.c.bf16 %v1395_v56, %v1391_v55  ;;  %v5763_v3 = vpack.c.bf16 %v1397_v60, %v1393_v58  ;;  %v1422_v56 = vld [vmem:[#allocation8 + $0x100] sm:$0xff]  ;;  %v1424_v60 = vld [vmem:[#allocation8 + $0x110] sm:$0xff]  ;;  %v1433_v2 = vld [vmem:[#allocation8 + $0x158] sm:$0xff] }
 0x1dd   : > { %v1426_v58 = vld [vmem:[#allocation8 + $0x120] sm:$0xff]  ;;  %v1437_v4 = vld [vmem:[#allocation8 + $0x178] sm:$0xff] }
 0x1de   : > { %3863 = vmatpush1.bf16.msra.mxu0 %v3862_v5  ;;  %v1399_v5 = vld [vmem:[#allocation8 + $0x48] sm:$0xff] }
 0x1df   : > { %4055 = vmatpush1.bf16.msra.mxu1 %v4054_v6  ;;  %3865 = vmatprep.subr.bf16.mxu0 %v3864_v7  ;;  %v1403_v6 = vld [vmem:[#allocation8 + $0x68] sm:$0xff]  ;;  %v4940_v7 = vld [vmem:[%s5704_s30] sm:$0x3f]  ;;  %s3258_s30 = sshll.u32 %s6441_s14, 4  ;;  %s6457_s30 = int_to_ptr.vmem [resolvable:$true] %s3258_s30 }
 0x1e0   : > { %4057 = vmatprep.subr.bf16.mxu1 %v4056_v12  ;;  %v932_v9 = vrot.slane %v4940_v7, %v6519_v57  ;;  %v5768_v12 = vpack.c.bf16 %v1394_v1, %v1390_v0  ;;  %v5773_v14 = vpack.c.bf16 %v1403_v6, %v1399_v5  ;;  %v1431_v0 = vld [vmem:[#allocation8 + $0x148] sm:$0xff]  ;;  %v5815_v5 = vpack.c.bf16 %v1426_v58, %v1422_v56  ;;  %v1452_v58 = vld [vmem:[#allocation8 + $0x1f0] sm:$0xff]  ;;  %s5223_s11 = scalar_lea.vmem %s6457_s30, 144  ;;  %p5230_p6 = scmp.lt.s32.totalorder %s6457_s30, %s5228_s29 }
 0x1e1   : > { %v1435_v1 = vld [vmem:[#allocation8 + $0x168] sm:$0xff]  ;;  %v1484_v57 = vld [vmem:[#allocation8 + $0x2f0] sm:$0xff]  ;;  %p5224_p1 = scmp.ne.s32.totalorder %s6457_s30, %s5223_s11  ;;  %p5231_p10 = scmp.lt.s32.totalorder %s5229_s1, %s5223_s11 }
 0x1e2   : > { %3867 = vmatpush1.bf16.msra.mxu0 %v3866_v18  ;;  %v5776_v18 = vpack.c.bf16 %v1405_v11, %v1401_v19  ;;  %v5821_v7 = vpack.c.bf16 %v1435_v1, %v1431_v0  ;;  %v1434_v19 = vld [vmem:[#allocation8 + $0x160] sm:$0xff]  ;;  %v1432_v11 = vld [vmem:[#allocation8 + $0x150] sm:$0xff]  ;;  %v1457_v0 = vld [vmem:[#allocation8 + $0x218] sm:$0xff] }
 0x1e3   : > { %4059 = vmatpush1.bf16.msra.mxu1 %v4058_v20  ;;  %3869 = vmatprep.subr.bf16.mxu0 %v3868_v21  ;;  %v1404_v20 = vld [vmem:[#allocation8 + $0x70] sm:$0xff]  ;;  %v1407_v21 = vld [vmem:[#allocation8 + $0x88] sm:$0xff]  ;;  %v1461_v1 = vld [vmem:[#allocation8 + $0x238] sm:$0xff]  ;;  %p5225_p2 = pnand %p5224_p1, %p6807_p3  ;;  %p5232_p11 = por %p5231_p10, %p5230_p6 }
 0x1e4   : > { %4061 = vmatprep.subr.bf16.mxu1 %v4060_v26  ;;  %v5779_v26 = vpack.c.bf16 %v1402_v16, %v1398_v15  ;;  %v5783_v27 = vpack.c.bf16 %v1404_v20, %v1400_v17  ;;  %v5785_v28 = vpack.c.bf16 %v1411_v23, %v1407_v21  ;;  %v5824_v15 = vpack.c.bf16 %v1437_v4, %v1433_v2  ;;  %v1436_v16 = vld [vmem:[#allocation8 + $0x170] sm:$0xff]  ;;  %v1439_v17 = vld [vmem:[#allocation8 + $0x188] sm:$0xff]  ;;  %v1441_v21 = vld [vmem:[#allocation8 + $0x198] sm:$0xff] }
 0x1e5   : > { %v1443_v20 = vld [vmem:[#allocation8 + $0x1a8] sm:$0xff]  ;;  %v1445_v23 = vld [vmem:[#allocation8 + $0x1b8] sm:$0xff]  ;;  %p5226_p0 = pneg %p5225_p2 }
 0x1e6   : > { %3871 = vmatpush1.bf16.msra.mxu0 %v3870_v32  ;;  %v5788_v32 = vpack.c.bf16 %v1413_v25, %v1409_v24  ;;  %v5831_v25 = vpack.c.bf16 %v1436_v16, %v1432_v11  ;;  %v1458_v11 = vld [vmem:[#allocation8 + $0x220] sm:$0xff]  ;;  %v1456_v16 = vld [vmem:[#allocation8 + $0x210] sm:$0xff] }
 0x1e7   : > { %4063 = vmatpush1.bf16.msra.mxu1 %v4062_v34  ;;  %3873 = vmatprep.subr.bf16.mxu0 %v3872_v35  ;;  %v1412_v34 = vld [vmem:[#allocation8 + $0xb0] sm:$0xff]  ;;  %v1415_v35 = vld [vmem:[#allocation8 + $0xc8] sm:$0xff]  ;;  %p5233_p8 = pnand %p5232_p11, %p5226_p0 }
 0x1e8   : > { %4065 = vmatprep.subr.bf16.mxu1 %v4064_v39  ;;  %v5791_v39 = vpack.c.bf16 %v1410_v30, %v1406_v29  ;;  %v5795_v40 = vpack.c.bf16 %v1412_v34, %v1408_v31  ;;  %v5797_v41 = vpack.c.bf16 %v1419_v36, %v1415_v35  ;;  %v5833_v29 = vpack.c.bf16 %v1443_v20, %v1439_v17  ;;  %v1438_v30 = vld [vmem:[#allocation8 + $0x180] sm:$0xff]  ;;  %v1440_v34 = vld [vmem:[#allocation8 + $0x190] sm:$0xff] }
 0x1e9   : > { %v1442_v31 = vld [vmem:[#allocation8 + $0x1a0] sm:$0xff]  ;;  %v5836_v35 = vpack.c.bf16 %v1445_v23, %v1441_v21  ;;  %v1444_v36 = vld [vmem:[#allocation8 + $0x1b0] sm:$0xff]  ;;  %v5860_v17 = vpack.c.bf16 %v1461_v1, %v1457_v0  ;;  %v1463_v21 = vld [vmem:[#allocation8 + $0x248] sm:$0xff] }
 0x1ea   : > { %3875 = vmatpush1.bf16.msra.mxu0 %v3874_v47  ;;  %v5800_v47 = vpack.c.bf16 %v1421_v38, %v1417_v37  ;;  %v1447_v37 = vld [vmem:[#allocation8 + $0x1c8] sm:$0xff]  ;;  %v1460_v20 = vld [vmem:[#allocation8 + $0x230] sm:$0xff] }
 0x1eb   : > { %4067 = vmatpush1.bf16.msra.mxu1 %v4066_v48  ;;  %3877 = vmatprep.subr.bf16.mxu0 %v3876_v49  ;;  %v1420_v48 = vld [vmem:[#allocation8 + $0xf0] sm:$0xff]  ;;  %v1423_v49 = vld [vmem:[#allocation8 + $0x108] sm:$0xff] }
 0x1ec   : > { %4069 = vmatprep.subr.bf16.mxu1 %v4068_v53  ;;  %v5803_v53 = vpack.c.bf16 %v1418_v43, %v1414_v42  ;;  %v5807_v54 = vpack.c.bf16 %v1420_v48, %v1416_v45  ;;  %v5809_v55 = vpack.c.bf16 %v1427_v50, %v1423_v49  ;;  %v1451_v38 = vld [vmem:[#allocation8 + $0x1e8] sm:$0xff]  ;;  %v1449_v42 = vld [vmem:[#allocation8 + $0x1d8] sm:$0xff]  ;;  %v5839_v45 = vpack.c.bf16 %v1442_v31, %v1438_v30  ;;  %v1446_v50 = vld [vmem:[#allocation8 + $0x1c0] sm:$0xff] }
 0x1ed   : > { %v1453_v43 = vld [vmem:[#allocation8 + $0x1f8] sm:$0xff]  ;;  %v5843_v48 = vpack.c.bf16 %v1444_v36, %v1440_v34  ;;  %v5845_v49 = vpack.c.bf16 %v1451_v38, %v1447_v37  ;;  %v1467_v23 = vld [vmem:[#allocation8 + $0x268] sm:$0xff]  ;;  %v5867_v36 = vpack.c.bf16 %v1460_v20, %v1456_v16  ;;  %v1462_v38 = vld [vmem:[#allocation8 + $0x240] sm:$0xff] }
 0x1ee   : > { %3879 = vmatpush1.bf16.msra.mxu0 %v3878_v61  ;;  %v5812_v61 = vpack.c.bf16 %v1429_v52, %v1425_v51  ;;  %v1450_v51 = vld [vmem:[#allocation8 + $0x1e0] sm:$0xff]  ;;  %v1448_v52 = vld [vmem:[#allocation8 + $0x1d0] sm:$0xff]  ;;  %v5848_v56 = vpack.c.bf16 %v1453_v43, %v1449_v42  ;;  %v1465_v30 = vld [vmem:[#allocation8 + $0x258] sm:$0xff]  ;;  %v5869_v37 = vpack.c.bf16 %v1467_v23, %v1463_v21 }
 0x1ef   : > { %4071 = vmatpush1.bf16.msra.mxu1 %v4070_v62  ;;  %4073 = vmatprep.subr.bf16.mxu0 %v5761_v63  ;;  %v1428_v62 = vld [vmem:[#allocation8 + $0x130] sm:$0xff]  ;;  %v5851_v2 = vpack.c.bf16 %v1450_v51, %v1446_v50  ;;  %v5855_v4 = vpack.c.bf16 %v1452_v58, %v1448_v52  ;;  %v1469_v31 = vld [vmem:[#allocation8 + $0x278] sm:$0xff]  ;;  %v1466_v42 = vld [vmem:[#allocation8 + $0x260] sm:$0xff] }
 0x1f0   : > { %4201 = vmatprep.subr.bf16.mxu1 %v5763_v3  ;;  %v5819_v6 = vpack.c.bf16 %v1428_v62, %v1424_v60  ;;  %v1455_v60 = vld [vmem:[#allocation8 + $0x208] sm:$0xff]  ;;  %v1464_v43 = vld [vmem:[#allocation8 + $0x250] sm:$0xff]  ;;  %v5872_v50 = vpack.c.bf16 %v1469_v31, %v1465_v30  ;;  %v5875_v0 = vpack.c.bf16 %v1466_v42, %v1462_v38  ;;  %v1474_v16 = vld [vmem:[#allocation8 + $0x2a0] sm:$0xff] }
 0x1f1   : > { %1171 = vmatmul.mubr.f32.vlgmr.msra.gmra.mrb[0].mxu0 %v932_v9  ;;  %v1459_v62 = vld [vmem:[#allocation8 + $0x228] sm:$0xff]  ;;  %v1468_v51 = vld [vmem:[#allocation8 + $0x270] sm:$0xff]  ;;  %v1481_v38 = vld [vmem:[#allocation8 + $0x2d8] sm:$0xff] }
 0x1f2   : > { %1384 = vmatmul.mubr.f32.vlgmr.msra.gmra.mrb[0].mxu1 %v932_v9  ;;  %4075 = vmatpush1.bf16.msra.mxu0 %v5768_v12  ;;  %v1430_v9 = vld [vmem:[#allocation8 + $0x140] sm:$0xff]  ;;  %6638 = vst [vmem:[#allocation32_spill] sm:$0xff] %v5872_v50  ;;  %v1471_v52 = vld [vmem:[#allocation8 + $0x288] sm:$0xff]  ;;  %6639 = vst [vmem:[#allocation33_spill] sm:$0xff] %v5875_v0  ;;  %v5879_v1 = vpack.c.bf16 %v1468_v51, %v1464_v43 }
 0x1f3   : > { %4203 = vmatpush1.bf16.msra.mxu1 %v5771_v13  ;;  %4077 = vmatprep.subr.bf16.mxu0 %v5773_v14  ;;  %v5827_v24 = vpack.c.bf16 %v1434_v19, %v1430_v9  ;;  %v5857_v9 = vpack.c.bf16 %v1459_v62, %v1455_v60  ;;  %v1454_v19 = vld [vmem:[#allocation8 + $0x200] sm:$0xff]  ;;  %v1475_v58 = vld [vmem:[#allocation8 + $0x2a8] sm:$0xff]  ;;  %v1473_v60 = vld [vmem:[#allocation8 + $0x298] sm:$0xff] }
 0x1f4   : > { %4205 = vmatprep.subr.bf16.mxu1 %v5776_v18  ;;  %v5863_v34 = vpack.c.bf16 %v1458_v11, %v1454_v19  ;;  %v1477_v62 = vld [vmem:[#allocation8 + $0x2b8] sm:$0xff]  ;;  %6640 = vst [vmem:[#allocation34_spill] sm:$0xff] %v5879_v1  ;;  %v5881_v19 = vpack.c.bf16 %v1475_v58, %v1471_v52  ;;  %v1470_v11 = vld [vmem:[#allocation8 + $0x280] sm:$0xff]  ;;  %v1472_v20 = vld [vmem:[#allocation8 + $0x290] sm:$0xff] }
 0x1f5   : > { %v5884_v21 = vpack.c.bf16 %v1477_v62, %v1473_v60  ;;  %v1476_v23 = vld [vmem:[#allocation8 + $0x2b0] sm:$0xff]  ;;  %v1479_v30 = vld [vmem:[#allocation8 + $0x2c8] sm:$0xff]  ;;  %v1485_v42 = vld [vmem:[#allocation8 + $0x2f8] sm:$0xff]  ;;  %v5887_v44 = vpack.c.bf16 %v1474_v16, %v1470_v11 }
 0x1f6   : > { %4079 = vmatpush1.bf16.msra.mxu0 %v5779_v26  ;;  %6641 = vst [vmem:[#allocation35_spill] sm:$0xff] %v5881_v19  ;;  %v1483_v31 = vld [vmem:[#allocation8 + $0x2e8] sm:$0xff]  ;;  %v5891_v43 = vpack.c.bf16 %v1476_v23, %v1472_v20  ;;  %v1478_v52 = vld [vmem:[#allocation8 + $0x2c0] sm:$0xff]  ;;  %v1480_v60 = vld [vmem:[#allocation8 + $0x2d0] sm:$0xff]  ;;  %v5896_v62 = vpack.c.bf16 %v1485_v42, %v1481_v38  ;;  %v5905_v23 = vpack.c.bf16 %v1491_v59, %v1487_v46 }
 0x1f7   : > { %4207 = vmatpush1.bf16.msra.mxu1 %v5783_v27  ;;  %4081 = vmatprep.subr.bf16.mxu0 %v5785_v28  ;;  %6642 = vst [vmem:[#allocation36_spill] sm:$0xff] %v5884_v21  ;;  %6643 = vst [vmem:[#allocation37_spill] sm:$0xff] %v5887_v44  ;;  %v5893_v51 = vpack.c.bf16 %v1483_v31, %v1479_v30  ;;  %v1482_v58 = vld [vmem:[#allocation8 + $0x2e0] sm:$0xff]  ;;  %v1489_v11 = vld [vmem:[#allocation8 + $0x318] sm:$0xff]  ;;  %v5903_v20 = vpack.c.bf16 %v1484_v57, %v1480_v60 }
 0x1f8   : > { %4209 = vmatprep.subr.bf16.mxu1 %v5788_v32  ;;  %6644 = vst [vmem:[#allocation38_spill] sm:$0xff] %v5891_v43  ;;  %6646 = vst [vmem:[#allocation40_spill] sm:$0xff] %v5896_v62  ;;  %v1493_v16 = vld [vmem:[#allocation8 + $0x338] sm:$0xff]  ;;  %v1486_v30 = vld [vmem:[#allocation8 + $0x300] sm:$0xff] }
 0x1f9   : > { %6645 = vst [vmem:[#allocation39_spill] sm:$0xff] %v5893_v51  ;;  %6648 = vst [vmem:[#allocation42_spill] sm:$0xff] %v5903_v20  ;;  %v1490_v31 = vld [vmem:[#allocation8 + $0x320] sm:$0xff]  ;;  %v1488_v38 = vld [vmem:[#allocation8 + $0x310] sm:$0xff]  ;;  %v5908_v42 = vpack.c.bf16 %v1493_v16, %v1489_v11 }
 0x1fa   : > { %4083 = vmatpush1.bf16.msra.mxu0 %v5791_v39  ;;  %6649 = vst [vmem:[#allocation43_spill] sm:$0xff] %v5905_v23  ;;  %v1494_v57 = vld [vmem:[#allocation8 + $0x340] sm:$0xff]  ;;  %v1496_v11 = vld [vmem:[#allocation8 + $0x350] sm:$0xff] }
 0x1fb   : > { %4211 = vmatpush1.bf16.msra.mxu1 %v5795_v40  ;;  %4085 = vmatprep.subr.bf16.mxu0 %v5797_v41  ;;  %6650 = vst [vmem:[#allocation44_spill] sm:$0xff] %v5908_v42  ;;  %v1498_v60 = vld [vmem:[#allocation8 + $0x360] sm:$0xff] }
 0x1fc   : > { %4213 = vmatprep.subr.bf16.mxu1 %v5800_v47 }
 0x1fe   : > { %4087 = vmatpush1.bf16.msra.mxu0 %v5803_v53 }
 0x1ff   : > { %4215 = vmatpush1.bf16.msra.mxu1 %v5807_v54  ;;  %4089 = vmatprep.subr.bf16.mxu0 %v5809_v55 }
 0x200   : > { %4217 = vmatprep.subr.bf16.mxu1 %v5812_v61 }
 0x202   : > { %4091 = vmatpush1.bf16.msra.mxu0 %v5815_v5 }
 0x203   : > { %4219 = vmatpush1.bf16.msra.mxu1 %v5819_v6  ;;  %4093 = vmatprep.subr.bf16.mxu0 %v5821_v7 }
 0x204   : > { %4221 = vmatprep.subr.bf16.mxu1 %v5824_v15 }
 0x206   : > { %4095 = vmatpush1.bf16.msra.mxu0 %v5827_v24 }
 0x207   : > { %4223 = vmatpush1.bf16.msra.mxu1 %v5831_v25  ;;  %4097 = vmatprep.subr.bf16.mxu0 %v5833_v29 }
 0x208   : > { %4225 = vmatprep.subr.bf16.mxu1 %v5836_v35 }
 0x20a   : > { %4099 = vmatpush1.bf16.msra.mxu0 %v5839_v45 }
 0x20b   : > { %4227 = vmatpush1.bf16.msra.mxu1 %v5843_v48  ;;  %4101 = vmatprep.subr.bf16.mxu0 %v5845_v49 }
 0x20c   : > { %4229 = vmatprep.subr.bf16.mxu1 %v5848_v56 }
 0x20e   : > { %4103 = vmatpush1.bf16.msra.mxu0 %v5851_v2 }
 0x20f   : > { %4231 = vmatpush1.bf16.msra.mxu1 %v5855_v4  ;;  %4105 = vmatprep.subr.bf16.mxu0 %v5857_v9 }
 0x210   : > { %4233 = vmatprep.subr.bf16.mxu1 %v5860_v17 }
 0x212   : > { %4107 = vmatpush1.bf16.msra.mxu0 %v5863_v34 }
 0x213   : > { %4235 = vmatpush1.bf16.msra.mxu1 %v5867_v36  ;;  %4109 = vmatprep.subr.bf16.mxu0 %v5869_v37 }
 0x214   : > { %4237 = vmatprep.subr.bf16.mxu1 %v5872_v50  ;;  %v1535_v50 = vld [vmem:[#allocation8 + $0x488] sm:$0xff] }
 0x216   : > { %4111 = vmatpush1.bf16.msra.mxu0 %v5875_v0  ;;  %v1532_v0 = vld [vmem:[#allocation8 + $0x470] sm:$0xff] }
 0x217   : > { %4239 = vmatpush1.bf16.msra.mxu1 %v5879_v1  ;;  %4113 = vmatprep.subr.bf16.mxu0 %v5881_v19  ;;  %v5899_v1 = vpack.c.bf16 %v1482_v58, %v1478_v52  ;;  %v1495_v19 = vld [vmem:[#allocation8 + $0x348] sm:$0xff]  ;;  %v1497_v52 = vld [vmem:[#allocation8 + $0x358] sm:$0xff] }
 0x218   : > { %4241 = vmatprep.subr.bf16.mxu1 %v5884_v21  ;;  %v1492_v21 = vld [vmem:[#allocation8 + $0x330] sm:$0xff]  ;;  %v1501_v58 = vld [vmem:[#allocation8 + $0x378] sm:$0xff] }
 0x219   : > { %6647 = vst [vmem:[#allocation41_spill] sm:$0xff] %v5899_v1  ;;  %v5915_v46 = vpack.c.bf16 %v1492_v21, %v1488_v38  ;;  %v5920_v16 = vpack.c.bf16 %v1501_v58, %v1497_v52  ;;  %v1502_v21 = vld [vmem:[#allocation8 + $0x380] sm:$0xff]  ;;  %v1504_v58 = vld [vmem:[#allocation8 + $0x390] sm:$0xff] }
 0x21a   : > { %4115 = vmatpush1.bf16.msra.mxu0 %v5887_v44  ;;  %v1499_v44 = vld [vmem:[#allocation8 + $0x368] sm:$0xff]  ;;  %v1506_v38 = vld [vmem:[#allocation8 + $0x3a0] sm:$0xff] }
 0x21b   : > { %4243 = vmatpush1.bf16.msra.mxu1 %v5891_v43  ;;  %4117 = vmatprep.subr.bf16.mxu0 %v5893_v51  ;;  %v5911_v43 = vpack.c.bf16 %v1490_v31, %v1486_v30  ;;  %6652 = vst [vmem:[#allocation46_spill] sm:$0xff] %v5915_v46  ;;  %v5917_v59 = vpack.c.bf16 %v1499_v44, %v1495_v19  ;;  %6654 = vst [vmem:[#allocation48_spill] sm:$0xff] %v5920_v16  ;;  %v1503_v51 = vld [vmem:[#allocation8 + $0x388] sm:$0xff]  ;;  %v1505_v30 = vld [vmem:[#allocation8 + $0x398] sm:$0xff] }
 0x21c   : > { %4245 = vmatprep.subr.bf16.mxu1 %v5896_v62  ;;  %v1500_v62 = vld [vmem:[#allocation8 + $0x370] sm:$0xff]  ;;  %v1509_v31 = vld [vmem:[#allocation8 + $0x3b8] sm:$0xff] }
 0x21d   : > { %6651 = vst [vmem:[#allocation45_spill] sm:$0xff] %v5911_v43  ;;  %6653 = vst [vmem:[#allocation47_spill] sm:$0xff] %v5917_v59  ;;  %v5927_v44 = vpack.c.bf16 %v1500_v62, %v1496_v11  ;;  %v5932_v52 = vpack.c.bf16 %v1509_v31, %v1505_v30  ;;  %v1517_v30 = vld [vmem:[#allocation8 + $0x3f8] sm:$0xff]  ;;  %v1510_v31 = vld [vmem:[#allocation8 + $0x3c0] sm:$0xff] }
 0x21e   : > { %4119 = vmatpush1.bf16.msra.mxu0 %v5899_v1  ;;  %v1507_v1 = vld [vmem:[#allocation8 + $0x3a8] sm:$0xff] }
 0x21f   : > { %4247 = vmatpush1.bf16.msra.mxu1 %v5903_v20  ;;  %4121 = vmatprep.subr.bf16.mxu0 %v5905_v23  ;;  %v5923_v20 = vpack.c.bf16 %v1498_v60, %v1494_v57  ;;  %6656 = vst [vmem:[#allocation50_spill] sm:$0xff] %v5927_v44  ;;  %v5929_v19 = vpack.c.bf16 %v1507_v1, %v1503_v51  ;;  %6658 = vst [vmem:[#allocation52_spill] sm:$0xff] %v5932_v52  ;;  %v1511_v1 = vld [vmem:[#allocation8 + $0x3c8] sm:$0xff]  ;;  %v1513_v60 = vld [vmem:[#allocation8 + $0x3d8] sm:$0xff] }
 0x220   : > { %4249 = vmatprep.subr.bf16.mxu1 %v5908_v42  ;;  %v1508_v42 = vld [vmem:[#allocation8 + $0x3b0] sm:$0xff]  ;;  %v5935_v57 = vpack.c.bf16 %v1506_v38, %v1502_v21  ;;  %v1515_v51 = vld [vmem:[#allocation8 + $0x3e8] sm:$0xff]  ;;  %v1514_v21 = vld [vmem:[#allocation8 + $0x3e0] sm:$0xff]  ;;  %v5946_v38 = vpack.c.bf16 %v1517_v30, %v1513_v60 }
 0x221   : > { %6655 = vst [vmem:[#allocation49_spill] sm:$0xff] %v5923_v20  ;;  %6657 = vst [vmem:[#allocation51_spill] sm:$0xff] %v5929_v19  ;;  %v5939_v62 = vpack.c.bf16 %v1508_v42, %v1504_v58  ;;  %v5944_v11 = vpack.c.bf16 %v1515_v51, %v1511_v1  ;;  %v1512_v42 = vld [vmem:[#allocation8 + $0x3d0] sm:$0xff]  ;;  %v1523_v1 = vld [vmem:[#allocation8 + $0x428] sm:$0xff] }
 0x222   : > { %4123 = vmatpush1.bf16.msra.mxu0 %v5911_v43  ;;  %6659 = vst [vmem:[#allocation53_spill] sm:$0xff] %v5935_v57  ;;  %6662 = vst [vmem:[#allocation56_spill] sm:$0xff] %v5946_v38  ;;  %v1516_v58 = vld [vmem:[#allocation8 + $0x3f0] sm:$0xff]  ;;  %v1521_v51 = vld [vmem:[#allocation8 + $0x418] sm:$0xff] }
 0x223   : > { %4251 = vmatpush1.bf16.msra.mxu1 %v5915_v46  ;;  %4125 = vmatprep.subr.bf16.mxu0 %v5917_v59  ;;  %6660 = vst [vmem:[#allocation54_spill] sm:$0xff] %v5939_v62  ;;  %6661 = vst [vmem:[#allocation55_spill] sm:$0xff] %v5944_v11  ;;  %v1525_v60 = vld [vmem:[#allocation8 + $0x438] sm:$0xff]  ;;  %v1526_v59 = vld [vmem:[#allocation8 + $0x440] sm:$0xff] }
 0x224   : > { %4253 = vmatprep.subr.bf16.mxu1 %v5920_v16  ;;  %v5958_v30 = vpack.c.bf16 %v1525_v60, %v1521_v51  ;;  %v1530_v46 = vld [vmem:[#allocation8 + $0x460] sm:$0xff]  ;;  %v1528_v23 = vld [vmem:[#allocation8 + $0x450] sm:$0xff] }
 0x226   : > { %4127 = vmatpush1.bf16.msra.mxu0 %v5923_v20  ;;  %6666 = vst [vmem:[#allocation60_spill] sm:$0xff] %v5958_v30 }
 0x227   : > { %4255 = vmatpush1.bf16.msra.mxu1 %v5927_v44  ;;  %4129 = vmatprep.subr.bf16.mxu0 %v5929_v19  ;;  %v5948_v44 = vpack.c.bf16 %v1514_v21, %v1510_v31  ;;  %v5962_v31 = vld [vmem:[#allocation7] sm:$0xf] }
 0x228   : > { %4257 = vmatprep.subr.bf16.mxu1 %v5932_v52  ;;  %v5951_v52 = vpack.c.bf16 %v1516_v58, %v1512_v42  ;;  %v951_v21 = vrot.slane %v5962_v31, %v5734_v8  ;;  %v1518_v42 = vld [vmem:[#allocation8 + $0x400] sm:$0xff]  ;;  %v947_v58 = vrot.slane %v5962_v31, %v5742_v10  ;;  %v1533_v19 = vld [vmem:[#allocation8 + $0x478] sm:$0xff] }
 0x229   : > { %6663 = vst [vmem:[#allocation57_spill] sm:$0xff] %v5948_v44 }
 0x22a   : > { %4131 = vmatpush1.bf16.msra.mxu0 %v5935_v57  ;;  %6664 = vst [vmem:[#allocation58_spill] sm:$0xff] %v5951_v52 }
 0x22b   : > { %4259 = vmatpush1.bf16.msra.mxu1 %v5939_v62  ;;  %4133 = vmatprep.subr.bf16.mxu0 %v5944_v11  ;;  %v1519_v62 = vld [vmem:[#allocation8 + $0x408] sm:$0xff]  ;;  %v1529_v11 = vld [vmem:[#allocation8 + $0x458] sm:$0xff] }
 0x22c   : > { %4261 = vmatprep.subr.bf16.mxu1 %v5946_v38  ;;  %v5956_v57 = vpack.c.bf16 %v1523_v1, %v1519_v62  ;;  %v1524_v62 = vld [vmem:[#allocation8 + $0x430] sm:$0xff]  ;;  %v1527_v38 = vld [vmem:[#allocation8 + $0x448] sm:$0xff] }
 0x22e   : > { %4135 = vmatpush1.bf16.msra.mxu0 %v5948_v44  ;;  %6665 = vst [vmem:[#allocation59_spill] sm:$0xff] %v5956_v57  ;;  %v1522_v44 = vld [vmem:[#allocation8 + $0x420] sm:$0xff] }
 0x22f   : > { %4263 = vmatpush1.bf16.msra.mxu1 %v5951_v52  ;;  %4137 = vmatprep.subr.bf16.mxu0 %v5956_v57  ;;  %v1520_v52 = vld [vmem:[#allocation8 + $0x410] sm:$0xff]  ;;  %v1531_v57 = vld [vmem:[#allocation8 + $0x468] sm:$0xff]  ;;  %v5974_v16 = vpack.c.bf16 %v1522_v44, %v1518_v42  ;;  %v1537_v44 = vld [vmem:[#allocation8 + $0x498] sm:$0xff] }
 0x230   : > { %4265 = vmatprep.subr.bf16.mxu1 %v5958_v30  ;;  %v959_v30 = vrot.slane %v5962_v31, %v5745_v22  ;;  %v5976_v10 = vpack.c.bf16 %v1524_v62, %v1520_v52  ;;  %v5982_v22 = vpack.c.bf16 %v1531_v57, %v1527_v38  ;;  %v1541_v42 = vld [vmem:[#allocation8 + $0x4b8] sm:$0xff]  ;;  %v5994_v62 = vpack.c.bf16 %v1532_v0, %v1528_v23  ;;  %v1534_v57 = vld [vmem:[#allocation8 + $0x480] sm:$0xff]  ;;  %v1536_v38 = vld [vmem:[#allocation8 + $0x490] sm:$0xff] }
 0x231   : > { %6667 = vst [vmem:[#allocation61_spill] sm:$0xff] %v5974_v16  ;;  %v1545_v0 = vld [vmem:[#allocation8 + $0x4d8] sm:$0xff] }
 0x232   : > { %6668 = vst [vmem:[#allocation62_spill] sm:$0xff] %v5976_v10  ;;  %6669 = vst [vmem:[#allocation63_spill] sm:$0xff] %v5982_v22  ;;  %v1549_v23 = vld [vmem:[#allocation8 + $0x4f8] sm:$0xff] }
 0x233   : > { %6673 = vst [vmem:[#allocation67_spill] sm:$0xff] %v5994_v62 }
 0x2c4   : > { %v1172_v1 = vpop.f32.mrb[0].mxu0 }
 0x2c5   : > { %v5968_v51 = vpop.f32.mrb[0].mxu1  ;;  %v1174_v60 = vpop.f32.mrb[1].mxu0  ;;  %v5978_v43 = vadd.f32 %v1172_v1, %v947_v58  ;;  %v5992_v58 = vpack.c.bf16 %v1530_v46, %v1526_v59  ;;  %v1543_v1 = vld [vmem:[#allocation8 + $0x4c8] sm:$0xff] }
 0x2c6   : > { %v5972_v20 = vadd.f32 %v1174_v60, %v951_v21  ;;  %v1387_v8 = vpop.f32.mrb[1].mxu1  ;;  %v5984_v21 = vpack.c.bf16 %v1533_v19, %v1529_v11  ;;  %v1539_v60 = vld [vmem:[#allocation8 + $0x4a8] sm:$0xff]  ;;  %v1538_v19 = vld [vmem:[#allocation8 + $0x4a0] sm:$0xff]  ;;  %v6000_v11 = vpack.c.bf16 %v1541_v42, %v1537_v44 }
 0x2c7   : > { %v5986_v52 = vadd.f32 %v1387_v8, %v959_v30  ;;  %6672 = vst [vmem:[#allocation66_spill] sm:$0xff] %v5992_v58  ;;  %v5998_v8 = vpack.c.bf16 %v1539_v60, %v1535_v50  ;;  %v1540_v30 = vld [vmem:[#allocation8 + $0x4b0] sm:$0xff]  ;;  %v1547_v46 = vld [vmem:[#allocation8 + $0x4e8] sm:$0xff]  ;;  %v6006_v59 = vpack.c.bf16 %v1538_v19, %v1534_v57  ;;  %v1542_v60 = vld [vmem:[#allocation8 + $0x4c0] sm:$0xff] }
 0x2c8   : > { %1710 = vmatprep.mubr.f32.mxu0 %v5972_v20  ;;  %1852 = vmatprep.mubr.f32.mxu1 %v5972_v20  ;;  %6670 = vst [vmem:[#allocation64_spill] sm:$0xff] %v5984_v21  ;;  %6675 = vst [vmem:[#allocation69_spill] sm:$0xff] %v6000_v11  ;;  %v6008_v50 = vpack.c.bf16 %v1540_v30, %v1536_v38  ;;  %v1546_v44 = vld [vmem:[#allocation8 + $0x4e0] sm:$0xff]  ;;  %v6012_v42 = vpack.c.bf16 %v1547_v46, %v1543_v1 }
 0x2c9   : > { %6671 = vst [vmem:[#allocation65_spill] sm:$0xff] %v5986_v52  ;;  %1711 = vmatmul.mubr.f32.vlgmr.msra.gmra.mrb[2].mxu0 %v5978_v43  ;;  %1853 = vmatmul.mubr.f32.vlgmr.msra.gmra.mrb[2].mxu1 %v5978_v43  ;;  %6674 = vst [vmem:[#allocation68_spill] sm:$0xff] %v5998_v8  ;;  %v6018_v57 = vpack.c.bf16 %v1546_v44, %v1542_v60  ;;  %v1550_v38 = vld [vmem:[#allocation8 + $0x500] sm:$0xff] }
 0x2ca   : > { %4139 = vmatpush1.bf16.msra.mxu0 %v5974_v16  ;;  %4267 = vmatpush1.bf16.msra.mxu1 %v5976_v10  ;;  %6676 = vst [vmem:[#allocation70_spill] sm:$0xff] %v6006_v59  ;;  %6677 = vst [vmem:[#allocation71_spill] sm:$0xff] %v6008_v50  ;;  %v1548_v10 = vld [vmem:[#allocation8 + $0x4f0] sm:$0xff]  ;;  %v1551_v16 = vld [vmem:[#allocation8 + $0x508] sm:$0xff] }
 0x2cb   : > { %1781 = vmatprep.mubr.f32.mxu0 %v5986_v52  ;;  %1923 = vmatprep.mubr.f32.mxu1 %v5986_v52  ;;  %6678 = vst [vmem:[#allocation72_spill] sm:$0xff] %v6012_v42  ;;  %v1553_v52 = vld [vmem:[#allocation8 + $0x518] sm:$0xff]  ;;  %6680 = vst [vmem:[#allocation74_spill] sm:$0xff] %v6018_v57  ;;  %v1554_v30 = vld [vmem:[#allocation8 + $0x520] sm:$0xff] }
 0x2cc   : > { %4141 = vmatprep.subr.bf16.mxu0 %v5982_v22  ;;  %4269 = vmatprep.subr.bf16.mxu1 %v5984_v21  ;;  %v6014_v21 = vpack.c.bf16 %v1549_v23, %v1545_v0  ;;  %v1544_v22 = vld [vmem:[#allocation8 + $0x4d0] sm:$0xff]  ;;  %v1558_v60 = vld [vmem:[#allocation8 + $0x540] sm:$0xff] }
 0x2cd   : > { %v6020_v19 = vpack.c.bf16 %v1548_v10, %v1544_v22  ;;  %v1552_v0 = vld [vmem:[#allocation8 + $0x510] sm:$0xff]  ;;  %v6030_v10 = vpack.c.bf16 %v1554_v30, %v1550_v38  ;;  %v1562_v44 = vld [vmem:[#allocation8 + $0x560] sm:$0xff] }
 0x2ce   : > { %4143 = vmatpush1.bf16.msra.mxu0 %v5992_v58  ;;  %4271 = vmatpush1.bf16.msra.mxu1 %v5994_v62  ;;  %6679 = vst [vmem:[#allocation73_spill] sm:$0xff] %v6014_v21  ;;  %v1555_v58 = vld [vmem:[#allocation8 + $0x528] sm:$0xff]  ;;  %v1557_v62 = vld [vmem:[#allocation8 + $0x538] sm:$0xff]  ;;  %v1556_v23 = vld [vmem:[#allocation8 + $0x530] sm:$0xff]  ;;  %v6042_v38 = vpack.c.bf16 %v1562_v44, %v1558_v60 }
 0x2cf   : > { %4145 = vmatprep.subr.bf16.mxu0 %v5998_v8  ;;  %4273 = vmatprep.subr.bf16.mxu1 %v6000_v11  ;;  %6681 = vst [vmem:[#allocation75_spill] sm:$0xff] %v6020_v19  ;;  %v6024_v1 = vpack.c.bf16 %v1555_v58, %v1551_v16  ;;  %v6026_v46 = vpack.c.bf16 %v1557_v62, %v1553_v52  ;;  %v1559_v11 = vld [vmem:[#allocation8 + $0x548] sm:$0xff]  ;;  %v1561_v8 = vld [vmem:[#allocation8 + $0x558] sm:$0xff]  ;;  %6684 = vst [vmem:[#allocation78_spill] sm:$0xff] %v6030_v10 }
 0x2d0   : > { %v6032_v22 = vpack.c.bf16 %v1556_v23, %v1552_v0  ;;  %v1560_v58 = vld [vmem:[#allocation8 + $0x550] sm:$0xff]  ;;  %6688 = vst [vmem:[#allocation82_spill] sm:$0xff] %v6042_v38  ;;  %v1566_v0 = vld [vmem:[#allocation8 + $0x580] sm:$0xff] }
 0x2d1   : > { %6682 = vst [vmem:[#allocation76_spill] sm:$0xff] %v6024_v1  ;;  %6683 = vst [vmem:[#allocation77_spill] sm:$0xff] %v6026_v46  ;;  %v1564_v62 = vld [vmem:[#allocation8 + $0x570] sm:$0xff]  ;;  %v1570_v23 = vld [vmem:[#allocation8 + $0x5a0] sm:$0xff] }
 0x2d2   : > { %4147 = vmatpush1.bf16.msra.mxu0 %v6006_v59  ;;  %4275 = vmatpush1.bf16.msra.mxu1 %v6008_v50  ;;  %v1563_v59 = vld [vmem:[#allocation8 + $0x568] sm:$0xff]  ;;  %v1565_v50 = vld [vmem:[#allocation8 + $0x578] sm:$0xff]  ;;  %6685 = vst [vmem:[#allocation79_spill] sm:$0xff] %v6032_v22  ;;  %v6044_v30 = vpack.c.bf16 %v1564_v62, %v1560_v58  ;;  %v6054_v60 = vpack.c.bf16 %v1570_v23, %v1566_v0  ;;  %v1574_v58 = vld [vmem:[#allocation8 + $0x5c0] sm:$0xff] }
 0x2d3   : > { %4149 = vmatprep.subr.bf16.mxu0 %v6012_v42  ;;  %4277 = vmatprep.subr.bf16.mxu1 %v6014_v21  ;;  %v6036_v16 = vpack.c.bf16 %v1563_v59, %v1559_v11  ;;  %v6038_v52 = vpack.c.bf16 %v1565_v50, %v1561_v8  ;;  %v1567_v21 = vld [vmem:[#allocation8 + $0x588] sm:$0xff]  ;;  %v1569_v42 = vld [vmem:[#allocation8 + $0x598] sm:$0xff]  ;;  %v1568_v59 = vld [vmem:[#allocation8 + $0x590] sm:$0xff] }
 0x2d4   : > { %6689 = vst [vmem:[#allocation83_spill] sm:$0xff] %v6044_v30  ;;  %v1572_v50 = vld [vmem:[#allocation8 + $0x5b0] sm:$0xff]  ;;  %6692 = vst [vmem:[#allocation86_spill] sm:$0xff] %v6054_v60  ;;  %v1578_v62 = vld [vmem:[#allocation8 + $0x5e0] sm:$0xff] }
 0x2d5   : > { %6686 = vst [vmem:[#allocation80_spill] sm:$0xff] %v6036_v16  ;;  %6687 = vst [vmem:[#allocation81_spill] sm:$0xff] %v6038_v52  ;;  %v6056_v44 = vpack.c.bf16 %v1572_v50, %v1568_v59  ;;  %v6066_v0 = vpack.c.bf16 %v1578_v62, %v1574_v58  ;;  %v1582_v59 = vld [vmem:[#allocation8 + $0x600] sm:$0xff] }
 0x2d6   : > { %4151 = vmatpush1.bf16.msra.mxu0 %v6018_v57  ;;  %4279 = vmatpush1.bf16.msra.mxu1 %v6020_v19  ;;  %v1571_v57 = vld [vmem:[#allocation8 + $0x5a8] sm:$0xff]  ;;  %v1573_v19 = vld [vmem:[#allocation8 + $0x5b8] sm:$0xff]  ;;  %v1586_v50 = vld [vmem:[#allocation8 + $0x620] sm:$0xff] }
 0x2d7   : > { %4153 = vmatprep.subr.bf16.mxu0 %v6024_v1  ;;  %4281 = vmatprep.subr.bf16.mxu1 %v6026_v46  ;;  %v6048_v8 = vpack.c.bf16 %v1571_v57, %v1567_v21  ;;  %v6050_v11 = vpack.c.bf16 %v1573_v19, %v1569_v42  ;;  %v1575_v46 = vld [vmem:[#allocation8 + $0x5c8] sm:$0xff]  ;;  %v1577_v1 = vld [vmem:[#allocation8 + $0x5d8] sm:$0xff]  ;;  %6693 = vst [vmem:[#allocation87_spill] sm:$0xff] %v6056_v44  ;;  %v1576_v57 = vld [vmem:[#allocation8 + $0x5d0] sm:$0xff] }
 0x2d8   : > { %v1580_v19 = vld [vmem:[#allocation8 + $0x5f0] sm:$0xff]  ;;  %6696 = vst [vmem:[#allocation90_spill] sm:$0xff] %v6066_v0  ;;  %v6078_v58 = vpack.c.bf16 %v1586_v50, %v1582_v59 }
 0x2d9   : > { %6690 = vst [vmem:[#allocation84_spill] sm:$0xff] %v6048_v8  ;;  %6691 = vst [vmem:[#allocation85_spill] sm:$0xff] %v6050_v11  ;;  %v6068_v23 = vpack.c.bf16 %v1580_v19, %v1576_v57  ;;  %v1590_v57 = vld [vmem:[#allocation8 + $0x640] sm:$0xff] }
 0x2da   : > { %4155 = vmatpush1.bf16.msra.mxu0 %v6030_v10  ;;  %4283 = vmatpush1.bf16.msra.mxu1 %v6032_v22  ;;  %v1579_v10 = vld [vmem:[#allocation8 + $0x5e8] sm:$0xff]  ;;  %v1581_v22 = vld [vmem:[#allocation8 + $0x5f8] sm:$0xff]  ;;  %6700 = vst [vmem:[#allocation94_spill] sm:$0xff] %v6078_v58  ;;  %v1594_v19 = vld [vmem:[#allocation8 + $0x660] sm:$0xff] }
 0x2db   : > { %4157 = vmatprep.subr.bf16.mxu0 %v6036_v16  ;;  %4285 = vmatprep.subr.bf16.mxu1 %v6038_v52  ;;  %v6060_v21 = vpack.c.bf16 %v1579_v10, %v1575_v46  ;;  %v6062_v42 = vpack.c.bf16 %v1581_v22, %v1577_v1  ;;  %v1583_v52 = vld [vmem:[#allocation8 + $0x608] sm:$0xff]  ;;  %v1585_v16 = vld [vmem:[#allocation8 + $0x618] sm:$0xff]  ;;  %6697 = vst [vmem:[#allocation91_spill] sm:$0xff] %v6068_v23  ;;  %v1584_v10 = vld [vmem:[#allocation8 + $0x610] sm:$0xff] }
 0x2dc   : > { %v1588_v22 = vld [vmem:[#allocation8 + $0x630] sm:$0xff]  ;;  %v6090_v59 = vpack.c.bf16 %v1594_v19, %v1590_v57 }
 0x2dd   : > { %6694 = vst [vmem:[#allocation88_spill] sm:$0xff] %v6060_v21  ;;  %6695 = vst [vmem:[#allocation89_spill] sm:$0xff] %v6062_v42  ;;  %v6080_v62 = vpack.c.bf16 %v1588_v22, %v1584_v10  ;;  %v1598_v10 = vld [vmem:[#allocation8 + $0x680] sm:$0xff] }
 0x2de   : > { %4159 = vmatpush1.bf16.msra.mxu0 %v6042_v38  ;;  %4287 = vmatpush1.bf16.msra.mxu1 %v6044_v30  ;;  %v1587_v38 = vld [vmem:[#allocation8 + $0x628] sm:$0xff]  ;;  %v1589_v30 = vld [vmem:[#allocation8 + $0x638] sm:$0xff]  ;;  %6704 = vst [vmem:[#allocation98_spill] sm:$0xff] %v6090_v59  ;;  %v1602_v22 = vld [vmem:[#allocation8 + $0x6a0] sm:$0xff] }
 0x2df   : > { %4161 = vmatprep.subr.bf16.mxu0 %v6048_v8  ;;  %4289 = vmatprep.subr.bf16.mxu1 %v6050_v11  ;;  %v6072_v1 = vpack.c.bf16 %v1587_v38, %v1583_v52  ;;  %v6074_v46 = vpack.c.bf16 %v1589_v30, %v1585_v16  ;;  %v1591_v11 = vld [vmem:[#allocation8 + $0x648] sm:$0xff]  ;;  %v1593_v8 = vld [vmem:[#allocation8 + $0x658] sm:$0xff]  ;;  %6701 = vst [vmem:[#allocation95_spill] sm:$0xff] %v6080_v62  ;;  %v1592_v38 = vld [vmem:[#allocation8 + $0x650] sm:$0xff] }
 0x2e0   : > { %v1596_v30 = vld [vmem:[#allocation8 + $0x670] sm:$0xff]  ;;  %v6102_v57 = vpack.c.bf16 %v1602_v22, %v1598_v10 }
 0x2e1   : > { %6698 = vst [vmem:[#allocation92_spill] sm:$0xff] %v6072_v1  ;;  %6699 = vst [vmem:[#allocation93_spill] sm:$0xff] %v6074_v46  ;;  %v6092_v50 = vpack.c.bf16 %v1596_v30, %v1592_v38  ;;  %v1606_v38 = vld [vmem:[#allocation8 + $0x6c0] sm:$0xff] }
 0x2e2   : > { %4163 = vmatpush1.bf16.msra.mxu0 %v6054_v60  ;;  %4291 = vmatpush1.bf16.msra.mxu1 %v6056_v44  ;;  %v1595_v60 = vld [vmem:[#allocation8 + $0x668] sm:$0xff]  ;;  %v1597_v44 = vld [vmem:[#allocation8 + $0x678] sm:$0xff]  ;;  %6708 = vst [vmem:[#allocation102_spill] sm:$0xff] %v6102_v57  ;;  %v1610_v30 = vld [vmem:[#allocation8 + $0x6e0] sm:$0xff] }
 0x2e3   : > { %4165 = vmatprep.subr.bf16.mxu0 %v6060_v21  ;;  %4293 = vmatprep.subr.bf16.mxu1 %v6062_v42  ;;  %v6084_v16 = vpack.c.bf16 %v1595_v60, %v1591_v11  ;;  %v6086_v52 = vpack.c.bf16 %v1597_v44, %v1593_v8  ;;  %v1599_v42 = vld [vmem:[#allocation8 + $0x688] sm:$0xff]  ;;  %v1601_v21 = vld [vmem:[#allocation8 + $0x698] sm:$0xff]  ;;  %6705 = vst [vmem:[#allocation99_spill] sm:$0xff] %v6092_v50  ;;  %v1600_v60 = vld [vmem:[#allocation8 + $0x690] sm:$0xff] }
 0x2e4   : > { %v1604_v44 = vld [vmem:[#allocation8 + $0x6b0] sm:$0xff]  ;;  %v6114_v10 = vpack.c.bf16 %v1610_v30, %v1606_v38 }
 0x2e5   : > { %6702 = vst [vmem:[#allocation96_spill] sm:$0xff] %v6084_v16  ;;  %6703 = vst [vmem:[#allocation97_spill] sm:$0xff] %v6086_v52  ;;  %v6104_v19 = vpack.c.bf16 %v1604_v44, %v1600_v60  ;;  %v1614_v60 = vld [vmem:[#allocation8 + $0x700] sm:$0xff] }
 0x2e6   : > { %4167 = vmatpush1.bf16.msra.mxu0 %v6066_v0  ;;  %4295 = vmatpush1.bf16.msra.mxu1 %v6068_v23  ;;  %v1603_v0 = vld [vmem:[#allocation8 + $0x6a8] sm:$0xff]  ;;  %v1605_v23 = vld [vmem:[#allocation8 + $0x6b8] sm:$0xff]  ;;  %6712 = vst [vmem:[#allocation106_spill] sm:$0xff] %v6114_v10  ;;  %v1618_v44 = vld [vmem:[#allocation8 + $0x720] sm:$0xff] }
 0x2e7   : > { %4169 = vmatprep.subr.bf16.mxu0 %v6072_v1  ;;  %4297 = vmatprep.subr.bf16.mxu1 %v6074_v46  ;;  %v6096_v8 = vpack.c.bf16 %v1603_v0, %v1599_v42  ;;  %v6098_v11 = vpack.c.bf16 %v1605_v23, %v1601_v21  ;;  %v1607_v46 = vld [vmem:[#allocation8 + $0x6c8] sm:$0xff]  ;;  %v1609_v1 = vld [vmem:[#allocation8 + $0x6d8] sm:$0xff]  ;;  %6709 = vst [vmem:[#allocation103_spill] sm:$0xff] %v6104_v19  ;;  %v1608_v0 = vld [vmem:[#allocation8 + $0x6d0] sm:$0xff] }
 0x2e8   : > { %v1612_v23 = vld [vmem:[#allocation8 + $0x6f0] sm:$0xff]  ;;  %v6126_v38 = vpack.c.bf16 %v1618_v44, %v1614_v60 }
 0x2e9   : > { %6706 = vst [vmem:[#allocation100_spill] sm:$0xff] %v6096_v8  ;;  %6707 = vst [vmem:[#allocation101_spill] sm:$0xff] %v6098_v11  ;;  %v6116_v22 = vpack.c.bf16 %v1612_v23, %v1608_v0  ;;  %v1622_v0 = vld [vmem:[#allocation8 + $0x740] sm:$0xff] }
 0x2ea   : > { %4171 = vmatpush1.bf16.msra.mxu0 %v6078_v58  ;;  %4299 = vmatpush1.bf16.msra.mxu1 %v6080_v62  ;;  %v1611_v58 = vld [vmem:[#allocation8 + $0x6e8] sm:$0xff]  ;;  %v1613_v62 = vld [vmem:[#allocation8 + $0x6f8] sm:$0xff]  ;;  %6716 = vst [vmem:[#allocation110_spill] sm:$0xff] %v6126_v38  ;;  %v1626_v23 = vld [vmem:[#allocation8 + $0x760] sm:$0xff] }
 0x2eb   : > { %4173 = vmatprep.subr.bf16.mxu0 %v6084_v16  ;;  %4301 = vmatprep.subr.bf16.mxu1 %v6086_v52  ;;  %v6108_v21 = vpack.c.bf16 %v1611_v58, %v1607_v46  ;;  %v6110_v42 = vpack.c.bf16 %v1613_v62, %v1609_v1  ;;  %v1615_v52 = vld [vmem:[#allocation8 + $0x708] sm:$0xff]  ;;  %v1617_v16 = vld [vmem:[#allocation8 + $0x718] sm:$0xff]  ;;  %6713 = vst [vmem:[#allocation107_spill] sm:$0xff] %v6116_v22  ;;  %v1616_v58 = vld [vmem:[#allocation8 + $0x710] sm:$0xff] }
 0x2ec   : > { %v1620_v62 = vld [vmem:[#allocation8 + $0x730] sm:$0xff]  ;;  %v6138_v60 = vpack.c.bf16 %v1626_v23, %v1622_v0 }
 0x2ed   : > { %6710 = vst [vmem:[#allocation104_spill] sm:$0xff] %v6108_v21  ;;  %6711 = vst [vmem:[#allocation105_spill] sm:$0xff] %v6110_v42  ;;  %v6128_v30 = vpack.c.bf16 %v1620_v62, %v1616_v58  ;;  %v1630_v58 = vld [vmem:[#allocation8 + $0x780] sm:$0xff] }
 0x2ee   : > { %4175 = vmatpush1.bf16.msra.mxu0 %v6090_v59  ;;  %4303 = vmatpush1.bf16.msra.mxu1 %v6092_v50  ;;  %v1619_v59 = vld [vmem:[#allocation8 + $0x728] sm:$0xff]  ;;  %v1621_v50 = vld [vmem:[#allocation8 + $0x738] sm:$0xff]  ;;  %v1634_v62 = vld [vmem:[#allocation8 + $0x7a0] sm:$0xff] }
 0x2ef   : > { %4177 = vmatprep.subr.bf16.mxu0 %v6096_v8  ;;  %4305 = vmatprep.subr.bf16.mxu1 %v6098_v11  ;;  %v6120_v1 = vpack.c.bf16 %v1619_v59, %v1615_v52  ;;  %v6122_v46 = vpack.c.bf16 %v1621_v50, %v1617_v16  ;;  %v1623_v11 = vld [vmem:[#allocation8 + $0x748] sm:$0xff]  ;;  %v1625_v8 = vld [vmem:[#allocation8 + $0x758] sm:$0xff]  ;;  %6717 = vst [vmem:[#allocation111_spill] sm:$0xff] %v6128_v30  ;;  %v1624_v59 = vld [vmem:[#allocation8 + $0x750] sm:$0xff] }
 0x2f0   : > { %v1628_v50 = vld [vmem:[#allocation8 + $0x770] sm:$0xff]  ;;  %v6150_v0 = vpack.c.bf16 %v1634_v62, %v1630_v58 }
 0x2f1   : > { %6714 = vst [vmem:[#allocation108_spill] sm:$0xff] %v6120_v1  ;;  %6715 = vst [vmem:[#allocation109_spill] sm:$0xff] %v6122_v46  ;;  %v6140_v44 = vpack.c.bf16 %v1628_v50, %v1624_v59  ;;  %v1638_v59 = vld [vmem:[#allocation8 + $0x7c0] sm:$0xff]  ;;  %v1644_v50 = vld [vmem:[#allocation8 + $0x7f0] sm:$0xff] }
 0x2f2   : > { %4179 = vmatpush1.bf16.msra.mxu0 %v6102_v57  ;;  %4307 = vmatpush1.bf16.msra.mxu1 %v6104_v19  ;;  %v1627_v57 = vld [vmem:[#allocation8 + $0x768] sm:$0xff]  ;;  %v1629_v19 = vld [vmem:[#allocation8 + $0x778] sm:$0xff] }
 0x2f3   : > { %4181 = vmatprep.subr.bf16.mxu0 %v6108_v21  ;;  %4309 = vmatprep.subr.bf16.mxu1 %v6110_v42  ;;  %v6132_v16 = vpack.c.bf16 %v1627_v57, %v1623_v11  ;;  %v6134_v52 = vpack.c.bf16 %v1629_v19, %v1625_v8  ;;  %v1631_v42 = vld [vmem:[#allocation8 + $0x788] sm:$0xff]  ;;  %v1633_v21 = vld [vmem:[#allocation8 + $0x798] sm:$0xff]  ;;  %v1632_v57 = vld [vmem:[#allocation8 + $0x790] sm:$0xff] }
 0x2f4   : > { %v1636_v19 = vld [vmem:[#allocation8 + $0x7b0] sm:$0xff] }
 0x2f5   : > { %v6152_v23 = vpack.c.bf16 %v1636_v19, %v1632_v57  ;;  %v955_v57 = vrot.slane %v5962_v31, %v5752_v33  ;;  %v6753_v31 = vld [vmem:[#allocation67_spill] sm:$0xff] }
 0x2f6   : > { %4183 = vmatpush1.bf16.msra.mxu0 %v6114_v10  ;;  %4311 = vmatpush1.bf16.msra.mxu1 %v6116_v22  ;;  %v1635_v10 = vld [vmem:[#allocation8 + $0x7a8] sm:$0xff]  ;;  %v1637_v22 = vld [vmem:[#allocation8 + $0x7b8] sm:$0xff] }
 0x2f7   : > { %4185 = vmatprep.subr.bf16.mxu0 %v6120_v1  ;;  %4313 = vmatprep.subr.bf16.mxu1 %v6122_v46  ;;  %v6144_v8 = vpack.c.bf16 %v1635_v10, %v1631_v42  ;;  %v6146_v11 = vpack.c.bf16 %v1637_v22, %v1633_v21  ;;  %v1639_v46 = vld [vmem:[#allocation8 + $0x7c8] sm:$0xff]  ;;  %v1641_v1 = vld [vmem:[#allocation8 + $0x7d8] sm:$0xff]  ;;  %v1642_v10 = vld [vmem:[#allocation8 + $0x7e0] sm:$0xff] }
 0x2f8   : > { %v1640_v22 = vld [vmem:[#allocation8 + $0x7d0] sm:$0xff]  ;;  %v6162_v58 = vpack.c.bf16 %v1642_v10, %v1638_v59  ;;  %v6757_v19 = vld [vmem:[#allocation71_spill] sm:$0xff]  ;;  %v6758_v59 = vld [vmem:[#allocation72_spill] sm:$0xff] }
 0x2f9   : > { %v6164_v62 = vpack.c.bf16 %v1644_v50, %v1640_v22  ;;  %v6759_v10 = vld [vmem:[#allocation73_spill] sm:$0xff]  ;;  %v6760_v22 = vld [vmem:[#allocation74_spill] sm:$0xff]  ;;  %v6761_v50 = vld [vmem:[#allocation75_spill] sm:$0xff] }
 0x2fa   : > { %4187 = vmatpush1.bf16.msra.mxu0 %v6126_v38  ;;  %4315 = vmatpush1.bf16.msra.mxu1 %v6128_v30  ;;  %v1643_v38 = vld [vmem:[#allocation8 + $0x7e8] sm:$0xff]  ;;  %v1645_v30 = vld [vmem:[#allocation8 + $0x7f8] sm:$0xff] }
 0x2fb   : > { %4189 = vmatprep.subr.bf16.mxu0 %v6132_v16  ;;  %4317 = vmatprep.subr.bf16.mxu1 %v6134_v52  ;;  %v6156_v21 = vpack.c.bf16 %v1643_v38, %v1639_v46  ;;  %v6158_v42 = vpack.c.bf16 %v1645_v30, %v1641_v1  ;;  %v6173_v1 = vadd.f32 %v5968_v51, %v955_v57  ;;  %v6754_v51 = vld [vmem:[#allocation68_spill] sm:$0xff]  ;;  %v6755_v38 = vld [vmem:[#allocation69_spill] sm:$0xff]  ;;  %v6756_v30 = vld [vmem:[#allocation70_spill] sm:$0xff] }
 0x2fc   : > { %v1931_v46 = vmul.f32 %v5972_v20, %v5972_v20  ;;  %v6762_v57 = vld [vmem:[#allocation76_spill] sm:$0xff] }
 0x2fe   : > { %4191 = vmatpush1.bf16.msra.mxu0 %v6138_v60  ;;  %4319 = vmatpush1.bf16.msra.mxu1 %v6140_v44 }
 0x2ff   : > { %4193 = vmatprep.subr.bf16.mxu0 %v6144_v8  ;;  %4321 = vmatprep.subr.bf16.mxu1 %v6146_v11 }
 0x302   : > { %4195 = vmatpush1.bf16.msra.mxu0 %v6150_v0  ;;  %4323 = vmatpush1.bf16.msra.mxu1 %v6152_v23 }
 0x303   : > { %4197 = vmatprep.subr.bf16.mxu0 %v6156_v21  ;;  %4325 = vmatprep.subr.bf16.mxu1 %v6158_v42 }
 0x306   : > { %4199 = vmatpush1.bf16.msra.mxu0 %v6162_v58  ;;  %4327 = vmatpush1.bf16.msra.mxu1 %v6164_v62 }
 0x307   : > { %4329 = vmatprep.subr.bf16.mxu0 %v5761_v63  ;;  %4457 = vmatprep.subr.bf16.mxu1 %v5763_v3  ;;  %v6718_v63 = vld [vmem:[#allocation32_spill] sm:$0xff]  ;;  %v6719_v3 = vld [vmem:[#allocation33_spill] sm:$0xff] }
 0x309   : > { %1782 = vmatmul.mubr.f32.vlgmr.msra.gmra.mrb[2].mxu0 %v6173_v1  ;;  %1924 = vmatmul.mubr.f32.vlgmr.msra.gmra.mrb[2].mxu1 %v6173_v1 }
 0x30a   : > { %4331 = vmatpush1.bf16.msra.mxu0 %v5768_v12  ;;  %1998 = vmatprep.mubr.f32.mxu0 %v1931_v46  ;;  %v6720_v12 = vld [vmem:[#allocation34_spill] sm:$0xff] }
 0x30b   : > { %4459 = vmatpush1.bf16.msra.mxu1 %v5771_v13  ;;  %2140 = vmatprep.mubr.f32.mxu1 %v1931_v46  ;;  %v6721_v13 = vld [vmem:[#allocation35_spill] sm:$0xff]  ;;  %v6763_v46 = vld [vmem:[#allocation77_spill] sm:$0xff] }
 0x30c   : > { %4333 = vmatprep.subr.bf16.mxu0 %v5773_v14  ;;  %4461 = vmatprep.subr.bf16.mxu1 %v5776_v18  ;;  %v6722_v14 = vld [vmem:[#allocation36_spill] sm:$0xff]  ;;  %v6723_v18 = vld [vmem:[#allocation37_spill] sm:$0xff] }
 0x30e   : > { %4335 = vmatpush1.bf16.msra.mxu0 %v5779_v26  ;;  %v6724_v26 = vld [vmem:[#allocation38_spill] sm:$0xff] }
 0x30f   : > { %4463 = vmatpush1.bf16.msra.mxu1 %v5783_v27  ;;  %4337 = vmatprep.subr.bf16.mxu0 %v5785_v28  ;;  %v6725_v27 = vld [vmem:[#allocation39_spill] sm:$0xff]  ;;  %v6726_v28 = vld [vmem:[#allocation40_spill] sm:$0xff] }
 0x310   : > { %4465 = vmatprep.subr.bf16.mxu1 %v5788_v32  ;;  %v6727_v32 = vld [vmem:[#allocation41_spill] sm:$0xff] }
 0x312   : > { %4339 = vmatpush1.bf16.msra.mxu0 %v5791_v39  ;;  %v6728_v39 = vld [vmem:[#allocation42_spill] sm:$0xff] }
 0x313   : > { %4467 = vmatpush1.bf16.msra.mxu1 %v5795_v40  ;;  %4341 = vmatprep.subr.bf16.mxu0 %v5797_v41  ;;  %v6729_v40 = vld [vmem:[#allocation43_spill] sm:$0xff]  ;;  %v6730_v41 = vld [vmem:[#allocation44_spill] sm:$0xff] }
 0x314   : > { %4469 = vmatprep.subr.bf16.mxu1 %v5800_v47  ;;  %v6731_v47 = vld [vmem:[#allocation45_spill] sm:$0xff] }
 0x316   : > { %4343 = vmatpush1.bf16.msra.mxu0 %v5803_v53  ;;  %v6732_v53 = vld [vmem:[#allocation46_spill] sm:$0xff] }
 0x317   : > { %4471 = vmatpush1.bf16.msra.mxu1 %v5807_v54  ;;  %4345 = vmatprep.subr.bf16.mxu0 %v5809_v55  ;;  %v6733_v54 = vld [vmem:[#allocation47_spill] sm:$0xff]  ;;  %v6734_v55 = vld [vmem:[#allocation48_spill] sm:$0xff] }
 0x318   : > { %4473 = vmatprep.subr.bf16.mxu1 %v5812_v61  ;;  %v6735_v61 = vld [vmem:[#allocation49_spill] sm:$0xff] }
 0x31a   : > { %4347 = vmatpush1.bf16.msra.mxu0 %v5815_v5  ;;  %v6736_v5 = vld [vmem:[#allocation50_spill] sm:$0xff] }
 0x31b   : > { %4475 = vmatpush1.bf16.msra.mxu1 %v5819_v6  ;;  %4349 = vmatprep.subr.bf16.mxu0 %v5821_v7  ;;  %v6737_v6 = vld [vmem:[#allocation51_spill] sm:$0xff]  ;;  %v6738_v7 = vld [vmem:[#allocation52_spill] sm:$0xff] }
 0x31c   : > { %4477 = vmatprep.subr.bf16.mxu1 %v5824_v15  ;;  %v6739_v15 = vld [vmem:[#allocation53_spill] sm:$0xff] }
 0x31e   : > { %4351 = vmatpush1.bf16.msra.mxu0 %v5827_v24  ;;  %v6740_v24 = vld [vmem:[#allocation54_spill] sm:$0xff] }
 0x31f   : > { %4479 = vmatpush1.bf16.msra.mxu1 %v5831_v25  ;;  %4353 = vmatprep.subr.bf16.mxu0 %v5833_v29  ;;  %v6741_v25 = vld [vmem:[#allocation55_spill] sm:$0xff]  ;;  %v6742_v29 = vld [vmem:[#allocation56_spill] sm:$0xff] }
 0x320   : > { %4481 = vmatprep.subr.bf16.mxu1 %v5836_v35  ;;  %v6743_v35 = vld [vmem:[#allocation57_spill] sm:$0xff] }
 0x322   : > { %4355 = vmatpush1.bf16.msra.mxu0 %v5839_v45  ;;  %v6744_v45 = vld [vmem:[#allocation58_spill] sm:$0xff] }
 0x323   : > { %4483 = vmatpush1.bf16.msra.mxu1 %v5843_v48  ;;  %4357 = vmatprep.subr.bf16.mxu0 %v5845_v49  ;;  %v1930_v48 = vmul.f32 %v5978_v43, %v5978_v43  ;;  %v6745_v49 = vld [vmem:[#allocation59_spill] sm:$0xff] }
 0x324   : > { %4485 = vmatprep.subr.bf16.mxu1 %v5848_v56  ;;  %v6746_v56 = vld [vmem:[#allocation60_spill] sm:$0xff] }
 0x326   : > { %4359 = vmatpush1.bf16.msra.mxu0 %v5851_v2  ;;  %v6747_v2 = vld [vmem:[#allocation65_spill] sm:$0xff] }
 0x327   : > { %4487 = vmatpush1.bf16.msra.mxu1 %v5855_v4  ;;  %4361 = vmatprep.subr.bf16.mxu0 %v5857_v9  ;;  %v1933_v4 = vmul.f32 %v6747_v2, %v6747_v2  ;;  %v6748_v9 = vld [vmem:[#allocation61_spill] sm:$0xff] }
 0x328   : > { %4489 = vmatprep.subr.bf16.mxu1 %v5860_v17  ;;  %v6749_v17 = vld [vmem:[#allocation62_spill] sm:$0xff] }
 0x32a   : > { %4363 = vmatpush1.bf16.msra.mxu0 %v5863_v34  ;;  %v6750_v34 = vld [vmem:[#allocation63_spill] sm:$0xff] }
 0x32b   : > { %4491 = vmatpush1.bf16.msra.mxu1 %v5867_v36  ;;  %4365 = vmatprep.subr.bf16.mxu0 %v5869_v37  ;;  %v6751_v36 = vld [vmem:[#allocation64_spill] sm:$0xff]  ;;  %v6752_v37 = vld [vmem:[#allocation66_spill] sm:$0xff] }
 0x32c   : > { %4493 = vmatprep.subr.bf16.mxu1 %v6718_v63  ;;  %v6764_v63 = vld [vmem:[#allocation78_spill] sm:$0xff] }
 0x32e   : > { %4367 = vmatpush1.bf16.msra.mxu0 %v6719_v3  ;;  %v6765_v3 = vld [vmem:[#allocation79_spill] sm:$0xff] }
 0x32f   : > { %4495 = vmatpush1.bf16.msra.mxu1 %v6720_v12  ;;  %4369 = vmatprep.subr.bf16.mxu0 %v6721_v13  ;;  %v6766_v12 = vld [vmem:[#allocation80_spill] sm:$0xff]  ;;  %v6767_v13 = vld [vmem:[#allocation81_spill] sm:$0xff] }
 0x330   : > { %4497 = vmatprep.subr.bf16.mxu1 %v6722_v14  ;;  %v6768_v14 = vld [vmem:[#allocation82_spill] sm:$0xff] }
 0x332   : > { %4371 = vmatpush1.bf16.msra.mxu0 %v6723_v18  ;;  %v6769_v18 = vld [vmem:[#allocation83_spill] sm:$0xff] }
 0x333   : > { %4499 = vmatpush1.bf16.msra.mxu1 %v6724_v26  ;;  %4373 = vmatprep.subr.bf16.mxu0 %v6725_v27  ;;  %v6770_v26 = vld [vmem:[#allocation84_spill] sm:$0xff]  ;;  %v6771_v27 = vld [vmem:[#allocation85_spill] sm:$0xff] }
 0x334   : > { %4501 = vmatprep.subr.bf16.mxu1 %v6726_v28  ;;  %v6772_v28 = vld [vmem:[#allocation86_spill] sm:$0xff] }
 0x336   : > { %4375 = vmatpush1.bf16.msra.mxu0 %v6727_v32  ;;  %v6773_v32 = vld [vmem:[#allocation87_spill] sm:$0xff] }
 0x337   : > { %4503 = vmatpush1.bf16.msra.mxu1 %v6728_v39  ;;  %4377 = vmatprep.subr.bf16.mxu0 %v6729_v40  ;;  %v6774_v39 = vld [vmem:[#allocation88_spill] sm:$0xff]  ;;  %v6775_v40 = vld [vmem:[#allocation89_spill] sm:$0xff] }
 0x338   : > { %4505 = vmatprep.subr.bf16.mxu1 %v6730_v41  ;;  %v6776_v41 = vld [vmem:[#allocation90_spill] sm:$0xff] }
 0x33a   : > { %4379 = vmatpush1.bf16.msra.mxu0 %v6731_v47  ;;  %v6777_v47 = vld [vmem:[#allocation91_spill] sm:$0xff] }
 0x33b   : > { %4507 = vmatpush1.bf16.msra.mxu1 %v6732_v53  ;;  %4381 = vmatprep.subr.bf16.mxu0 %v6733_v54  ;;  %v6778_v53 = vld [vmem:[#allocation92_spill] sm:$0xff]  ;;  %v6779_v54 = vld [vmem:[#allocation93_spill] sm:$0xff] }
 0x33c   : > { %4509 = vmatprep.subr.bf16.mxu1 %v6734_v55  ;;  %v6780_v55 = vld [vmem:[#allocation94_spill] sm:$0xff] }
 0x33e   : > { %4383 = vmatpush1.bf16.msra.mxu0 %v6735_v61  ;;  %v6781_v61 = vld [vmem:[#allocation95_spill] sm:$0xff] }
 0x33f   : > { %4511 = vmatpush1.bf16.msra.mxu1 %v6736_v5  ;;  %4385 = vmatprep.subr.bf16.mxu0 %v6737_v6  ;;  %v6782_v5 = vld [vmem:[#allocation96_spill] sm:$0xff]  ;;  %v6783_v6 = vld [vmem:[#allocation97_spill] sm:$0xff] }
 0x340   : > { %4513 = vmatprep.subr.bf16.mxu1 %v6738_v7  ;;  %v6784_v7 = vld [vmem:[#allocation98_spill] sm:$0xff] }
 0x342   : > { %4387 = vmatpush1.bf16.msra.mxu0 %v6739_v15  ;;  %v6785_v15 = vld [vmem:[#allocation99_spill] sm:$0xff] }
 0x343   : > { %4515 = vmatpush1.bf16.msra.mxu1 %v6740_v24  ;;  %4389 = vmatprep.subr.bf16.mxu0 %v6741_v25  ;;  %v6786_v24 = vld [vmem:[#allocation100_spill] sm:$0xff]  ;;  %v6787_v25 = vld [vmem:[#allocation101_spill] sm:$0xff] }
 0x344   : > { %4517 = vmatprep.subr.bf16.mxu1 %v6742_v29  ;;  %v6788_v29 = vld [vmem:[#allocation102_spill] sm:$0xff] }
 0x346   : > { %4391 = vmatpush1.bf16.msra.mxu0 %v6743_v35  ;;  %v6789_v35 = vld [vmem:[#allocation103_spill] sm:$0xff] }
 0x347   : > { %4519 = vmatpush1.bf16.msra.mxu1 %v6744_v45  ;;  %4393 = vmatprep.subr.bf16.mxu0 %v6745_v49  ;;  %v6790_v45 = vld [vmem:[#allocation104_spill] sm:$0xff]  ;;  %v6792_v49 = vld [vmem:[#allocation106_spill] sm:$0xff] }
 0x348   : > { %4521 = vmatprep.subr.bf16.mxu1 %v6746_v56  ;;  %v6793_v56 = vld [vmem:[#allocation107_spill] sm:$0xff] }
 0x349   : > { %1999 = vmatmul.mubr.f32.vlgmr.msra.gmra.mrb[4].mxu0 %v1930_v48 }
 0x34a   : > { %2141 = vmatmul.mubr.f32.vlgmr.msra.gmra.mrb[4].mxu1 %v1930_v48  ;;  %4395 = vmatpush1.bf16.msra.mxu0 %v6748_v9  ;;  %v6791_v48 = vld [vmem:[#allocation105_spill] sm:$0xff] }
 0x34b   : > { %2069 = vmatprep.mubr.f32.mxu0 %v1933_v4  ;;  %4523 = vmatpush1.bf16.msra.mxu1 %v6749_v17  ;;  %v6795_v9 = vld [vmem:[#allocation109_spill] sm:$0xff]  ;;  %v6796_v17 = vld [vmem:[#allocation110_spill] sm:$0xff] }
 0x34c   : > { %2211 = vmatprep.mubr.f32.mxu1 %v1933_v4  ;;  %4397 = vmatprep.subr.bf16.mxu0 %v6750_v34  ;;  %v6794_v4 = vld [vmem:[#allocation108_spill] sm:$0xff]  ;;  %v6797_v34 = vld [vmem:[#allocation111_spill] sm:$0xff] }
 0x34d   : > { %4525 = vmatprep.subr.bf16.mxu1 %v6751_v36  ;;  %v2274_v36 = vld [vmem:[#allocation10 + $0x80] sm:$0xff] }
 0x34e   : > { %4399 = vmatpush1.bf16.msra.mxu0 %v6752_v37  ;;  %v2275_v37 = vld [vmem:[#allocation10 + $0x88] sm:$0xff] }
 0x34f   : > { %4527 = vmatpush1.bf16.msra.mxu1 %v6753_v31  ;;  %4401 = vmatprep.subr.bf16.mxu0 %v6754_v51  ;;  %v2306_v31 = vld [vmem:[#allocation10 + $0x180] sm:$0xff]  ;;  %v2307_v51 = vld [vmem:[#allocation10 + $0x188] sm:$0xff] }
 0x350   : > { %4529 = vmatprep.subr.bf16.mxu1 %v6755_v38  ;;  %v2259_v38 = vld [vmem:[#allocation10 + $0x8] sm:$0xff] }
 0x352   : > { %4403 = vmatpush1.bf16.msra.mxu0 %v6756_v30  ;;  %v2276_v30 = vld [vmem:[#allocation10 + $0x90] sm:$0xff] }
 0x353   : > { %4531 = vmatpush1.bf16.msra.mxu1 %v6757_v19  ;;  %4405 = vmatprep.subr.bf16.mxu0 %v6758_v59  ;;  %v2308_v19 = vld [vmem:[#allocation10 + $0x190] sm:$0xff]  ;;  %v2309_v59 = vld [vmem:[#allocation10 + $0x198] sm:$0xff] }
 0x354   : > { %4533 = vmatprep.subr.bf16.mxu1 %v6759_v10 }
 0x356   : > { %4407 = vmatpush1.bf16.msra.mxu0 %v6760_v22  ;;  %v2260_v22 = vld [vmem:[#allocation10 + $0x10] sm:$0xff] }
 0x357   : > { %4535 = vmatpush1.bf16.msra.mxu1 %v6761_v50  ;;  %4409 = vmatprep.subr.bf16.mxu0 %v6762_v57  ;;  %v2261_v50 = vld [vmem:[#allocation10 + $0x18] sm:$0xff]  ;;  %v2292_v57 = vld [vmem:[#allocation10 + $0x110] sm:$0xff] }
 0x358   : > { %4537 = vmatprep.subr.bf16.mxu1 %v6763_v46  ;;  %v2293_v46 = vld [vmem:[#allocation10 + $0x118] sm:$0xff] }
 0x35a   : > { %4411 = vmatpush1.bf16.msra.mxu0 %v6764_v63  ;;  %v4590_v63 = vpack.c.bf16 %v2261_v50, %v2260_v22 }
 0x35b   : > { %4539 = vmatpush1.bf16.msra.mxu1 %v6765_v3  ;;  %4413 = vmatprep.subr.bf16.mxu0 %v6766_v12  ;;  %v2278_v12 = vld [vmem:[#allocation10 + $0xa0] sm:$0xff] }
 0x35c   : > { %4541 = vmatprep.subr.bf16.mxu1 %v6767_v13  ;;  %v2279_v13 = vld [vmem:[#allocation10 + $0xa8] sm:$0xff] }
 0x35e   : > { %4415 = vmatpush1.bf16.msra.mxu0 %v6768_v14  ;;  %v2310_v14 = vld [vmem:[#allocation10 + $0x1a0] sm:$0xff] }
 0x35f   : > { %4543 = vmatpush1.bf16.msra.mxu1 %v6769_v18  ;;  %4417 = vmatprep.subr.bf16.mxu0 %v6770_v26 }
 0x360   : > { %4545 = vmatprep.subr.bf16.mxu1 %v6771_v27  ;;  %v2311_v27 = vld [vmem:[#allocation10 + $0x1a8] sm:$0xff] }
 0x362   : > { %4419 = vmatpush1.bf16.msra.mxu0 %v6772_v28  ;;  %v2262_v28 = vld [vmem:[#allocation10 + $0x20] sm:$0xff] }
 0x363   : > { %4547 = vmatpush1.bf16.msra.mxu1 %v6773_v32  ;;  %4421 = vmatprep.subr.bf16.mxu0 %v6774_v39  ;;  %v2263_v32 = vld [vmem:[#allocation10 + $0x28] sm:$0xff]  ;;  %v2294_v39 = vld [vmem:[#allocation10 + $0x120] sm:$0xff] }
 0x364   : > { %4549 = vmatprep.subr.bf16.mxu1 %v6775_v40  ;;  %v2295_v40 = vld [vmem:[#allocation10 + $0x128] sm:$0xff] }
 0x366   : > { %4423 = vmatpush1.bf16.msra.mxu0 %v6776_v41  ;;  %v4592_v41 = vpack.c.bf16 %v2279_v13, %v2278_v12  ;;  %v2271_v12 = vld [vmem:[#allocation10 + $0x68] sm:$0xff]  ;;  %v2302_v13 = vld [vmem:[#allocation10 + $0x160] sm:$0xff] }
 0x367   : > { %4551 = vmatpush1.bf16.msra.mxu1 %v6777_v47  ;;  %4425 = vmatprep.subr.bf16.mxu0 %v6778_v53  ;;  %v4624_v47 = vpack.c.bf16 %v2311_v27, %v2310_v14  ;;  %v4594_v53 = vpack.c.bf16 %v2263_v32, %v2262_v28  ;;  %v2303_v14 = vld [vmem:[#allocation10 + $0x168] sm:$0xff]  ;;  %v2288_v27 = vld [vmem:[#allocation10 + $0xf0] sm:$0xff]  ;;  %v2289_v28 = vld [vmem:[#allocation10 + $0xf8] sm:$0xff] }
 0x368   : > { %4553 = vmatprep.subr.bf16.mxu1 %v6779_v54  ;;  %v4626_v54 = vpack.c.bf16 %v2295_v40, %v2294_v39  ;;  %v2320_v32 = vld [vmem:[#allocation10 + $0x1f0] sm:$0xff]  ;;  %v2321_v39 = vld [vmem:[#allocation10 + $0x1f8] sm:$0xff] }
 0x36a   : > { %4427 = vmatpush1.bf16.msra.mxu0 %v6780_v55  ;;  %v2280_v55 = vld [vmem:[#allocation10 + $0xb0] sm:$0xff] }
 0x36b   : > { %4555 = vmatpush1.bf16.msra.mxu1 %v6781_v61  ;;  %4429 = vmatprep.subr.bf16.mxu0 %v6782_v5  ;;  %v2281_v61 = vld [vmem:[#allocation10 + $0xb8] sm:$0xff]  ;;  %v2312_v5 = vld [vmem:[#allocation10 + $0x1b0] sm:$0xff] }
 0x36c   : > { %4557 = vmatprep.subr.bf16.mxu1 %v6783_v6  ;;  %v4596_v6 = vpack.c.bf16 %v2281_v61, %v2280_v55  ;;  %v2273_v55 = vld [vmem:[#allocation10 + $0x78] sm:$0xff]  ;;  %v2304_v61 = vld [vmem:[#allocation10 + $0x170] sm:$0xff] }
 0x36e   : > { %4431 = vmatpush1.bf16.msra.mxu0 %v6784_v7  ;;  %v2313_v7 = vld [vmem:[#allocation10 + $0x1b8] sm:$0xff] }
 0x36f   : > { %4559 = vmatpush1.bf16.msra.mxu1 %v6785_v15  ;;  %4433 = vmatprep.subr.bf16.mxu0 %v6786_v24  ;;  %v2264_v15 = vld [vmem:[#allocation10 + $0x30] sm:$0xff]  ;;  %v2265_v24 = vld [vmem:[#allocation10 + $0x38] sm:$0xff] }
 0x370   : > { %4561 = vmatprep.subr.bf16.mxu1 %v6787_v25  ;;  %v4628_v25 = vpack.c.bf16 %v2313_v7, %v2312_v5  ;;  %v2305_v5 = vld [vmem:[#allocation10 + $0x178] sm:$0xff] }
 0x371   : > { %v4646_v7 = vpack.c.bf16 %v2305_v5, %v2304_v61  ;;  %v2475_v61 = vld [vmem:[#allocation13 + $0x60] sm:$0xff]  ;;  %v2476_v5 = vld [vmem:[#allocation13 + $0x68] sm:$0xff] }
 0x372   : > { %4435 = vmatpush1.bf16.msra.mxu0 %v6788_v29  ;;  %v4598_v29 = vpack.c.bf16 %v2265_v24, %v2264_v15  ;;  %v5327_v15 = vmov 0.0|0.0  }
 0x373   : > { %4563 = vmatpush1.bf16.msra.mxu1 %v6789_v35  ;;  %4437 = vmatprep.subr.bf16.mxu0 %v6790_v45  ;;  %v2296_v35 = vld [vmem:[#allocation10 + $0x130] sm:$0xff]  ;;  %v2297_v45 = vld [vmem:[#allocation10 + $0x138] sm:$0xff] }
 0x374   : > { %4565 = vmatprep.subr.bf16.mxu1 %v6791_v48  ;;  %v4630_v48 = vpack.c.bf16 %v2297_v45, %v2296_v35 }
 0x376   : > { %4439 = vmatpush1.bf16.msra.mxu0 %v6792_v49  ;;  %v2282_v49 = vld [vmem:[#allocation10 + $0xc0] sm:$0xff] }
 0x377   : > { %4567 = vmatpush1.bf16.msra.mxu1 %v6793_v56  ;;  %4441 = vmatprep.subr.bf16.mxu0 %v6794_v4  ;;  %v2283_v56 = vld [vmem:[#allocation10 + $0xc8] sm:$0xff]  ;;  %v2314_v4 = vld [vmem:[#allocation10 + $0x1c0] sm:$0xff] }
 0x378   : > { %4569 = vmatprep.subr.bf16.mxu1 %v6795_v9  ;;  %v4600_v9 = vpack.c.bf16 %v2283_v56, %v2282_v49 }
 0x37a   : > { %4443 = vmatpush1.bf16.msra.mxu0 %v6796_v17  ;;  %v2315_v17 = vld [vmem:[#allocation10 + $0x1c8] sm:$0xff] }
 0x37b   : > { %4571 = vmatpush1.bf16.msra.mxu1 %v6797_v34  ;;  %4445 = vmatprep.subr.bf16.mxu0 %v6132_v16  ;;  %v4584_v16 = vpack.c.bf16 %v2275_v37, %v2274_v36  ;;  %v2266_v34 = vld [vmem:[#allocation10 + $0x40] sm:$0xff]  ;;  %v2267_v36 = vld [vmem:[#allocation10 + $0x48] sm:$0xff]  ;;  %v4632_v37 = vpack.c.bf16 %v2315_v17, %v2314_v4 }
 0x37c   : > { %4573 = vmatprep.subr.bf16.mxu1 %v6134_v52  ;;  %v2258_v52 = vld [vmem:[#allocation10] sm:$0xff] }
 0x37d   : > { %v4586_v10 = vpack.c.bf16 %v2259_v38, %v2258_v52  ;;  %v2284_v52 = vld [vmem:[#allocation10 + $0xd0] sm:$0xff] }
 0x37e   : > { %4447 = vmatpush1.bf16.msra.mxu0 %v6138_v60  ;;  %v2290_v60 = vld [vmem:[#allocation10 + $0x100] sm:$0xff] }
 0x37f   : > { %4575 = vmatpush1.bf16.msra.mxu1 %v6140_v44  ;;  %4449 = vmatprep.subr.bf16.mxu0 %v6144_v8  ;;  %v4616_v44 = vpack.c.bf16 %v2307_v51, %v2306_v31  ;;  %v2291_v8 = vld [vmem:[#allocation10 + $0x108] sm:$0xff]  ;;  %v4602_v31 = vpack.c.bf16 %v2267_v36, %v2266_v34  ;;  %v2298_v51 = vld [vmem:[#allocation10 + $0x140] sm:$0xff] }
 0x380   : > { %4577 = vmatprep.subr.bf16.mxu1 %v6146_v11  ;;  %v2277_v11 = vld [vmem:[#allocation10 + $0x98] sm:$0xff] }
 0x382   : > { %4451 = vmatpush1.bf16.msra.mxu0 %v6150_v0  ;;  %v1932_v0 = vmul.f32 %v6173_v1, %v6173_v1 }
 0x383   : > { %4579 = vmatpush1.bf16.msra.mxu1 %v6152_v23  ;;  %4453 = vmatprep.subr.bf16.mxu0 %v6156_v21  ;;  %v4618_v23 = vpack.c.bf16 %v2291_v8, %v2290_v60  ;;  %v4588_v21 = vpack.c.bf16 %v2277_v11, %v2276_v30  ;;  %v2285_v60 = vld [vmem:[#allocation10 + $0xd8] sm:$0xff] }
 0x384   : > { %4581 = vmatprep.subr.bf16.mxu1 %v6158_v42  ;;  %v4620_v42 = vpack.c.bf16 %v2309_v59, %v2308_v19  ;;  %v2317_v8 = vld [vmem:[#allocation10 + $0x1d8] sm:$0xff]  ;;  %v4604_v30 = vpack.c.bf16 %v2285_v60, %v2284_v52  ;;  %v2268_v19 = vld [vmem:[#allocation10 + $0x50] sm:$0xff] }
 0x385   : > { %v2269_v59 = vld [vmem:[#allocation10 + $0x58] sm:$0xff] }
 0x386   : > { %4455 = vmatpush1.bf16.msra.mxu0 %v6162_v58  ;;  %v4622_v58 = vpack.c.bf16 %v2293_v46, %v2292_v57  ;;  %v4606_v22 = vpack.c.bf16 %v2269_v59, %v2268_v19  ;;  %v2319_v57 = vld [vmem:[#allocation10 + $0x1e8] sm:$0xff]  ;;  %v2270_v46 = vld [vmem:[#allocation10 + $0x60] sm:$0xff] }
 0x387   : > { %4583 = vmatpush1.bf16.msra.mxu1 %v6164_v62  ;;  %4585 = vmatprep.subr.bf16.mxu0 %v4584_v16  ;;  %v2299_v16 = vld [vmem:[#allocation10 + $0x148] sm:$0xff]  ;;  %v4610_v40 = vpack.c.bf16 %v2271_v12, %v2270_v46  ;;  %v2465_v46 = vld [vmem:[#allocation13 + $0x10] sm:$0xff] }
 0x388   : > { %4617 = vmatprep.subr.bf16.mxu1 %v4616_v44  ;;  %v4634_v38 = vpack.c.bf16 %v2299_v16, %v2298_v51  ;;  %v2316_v44 = vld [vmem:[#allocation10 + $0x1d0] sm:$0xff] }
 0x389   : > { %2070 = vmatmul.mubr.f32.vlgmr.msra.gmra.mrb[4].mxu0 %v1932_v0  ;;  %v4636_v11 = vpack.c.bf16 %v2317_v8, %v2316_v44 }
 0x38a   : > { %2212 = vmatmul.mubr.f32.vlgmr.msra.gmra.mrb[4].mxu1 %v1932_v0  ;;  %4587 = vmatpush3.bf16.msra.mxu0 %v4586_v10  ;;  %v2300_v10 = vld [vmem:[#allocation10 + $0x150] sm:$0xff]  ;;  %v2301_v0 = vld [vmem:[#allocation10 + $0x158] sm:$0xff] }
 0x38b   : > { %4619 = vmatpush3.bf16.msra.mxu1 %v4618_v23  ;;  %4589 = vmatprep.subr.bf16.mxu0 %v4588_v21  ;;  %v2286_v23 = vld [vmem:[#allocation10 + $0xe0] sm:$0xff]  ;;  %v2287_v21 = vld [vmem:[#allocation10 + $0xe8] sm:$0xff]  ;;  %v4638_v50 = vpack.c.bf16 %v2301_v0, %v2300_v10 }
 0x38c   : > { %4621 = vmatprep.subr.bf16.mxu1 %v4620_v42  ;;  %v2318_v42 = vld [vmem:[#allocation10 + $0x1e0] sm:$0xff] }
 0x38e   : > { %4591 = vmatpush3.bf16.msra.mxu0 %v4590_v63  ;;  %v4608_v63 = vpack.c.bf16 %v2287_v21, %v2286_v23 }
 0x38f   : > { %4623 = vmatpush3.bf16.msra.mxu1 %v4622_v58  ;;  %4593 = vmatprep.subr.bf16.mxu0 %v4592_v41  ;;  %v4640_v58 = vpack.c.bf16 %v2319_v57, %v2318_v42  ;;  %v4642_v41 = vpack.c.bf16 %v2303_v14, %v2302_v13  ;;  %v2464_v42 = vld [vmem:[#allocation13 + $0x8] sm:$0xff]  ;;  %v2467_v13 = vld [vmem:[#allocation13 + $0x20] sm:$0xff] }
 0x390   : > { %4625 = vmatprep.subr.bf16.mxu1 %v4624_v47  ;;  %v2272_v47 = vld [vmem:[#allocation10 + $0x70] sm:$0xff] }
 0x391   : > { %v2468_v14 = vld [vmem:[#allocation13 + $0x28] sm:$0xff] }
 0x392   : > { %4595 = vmatpush3.bf16.msra.mxu0 %v4594_v53  ;;  %v4612_v53 = vpack.c.bf16 %v2289_v28, %v2288_v27  ;;  %v4655_v27 = vpack.c.bf16 %v2468_v14, %v2467_v13  ;;  %v2469_v28 = vld [vmem:[#allocation13 + $0x30] sm:$0xff] }
 0x393   : > { %4627 = vmatpush3.bf16.msra.mxu1 %v4626_v54  ;;  %4597 = vmatprep.subr.bf16.mxu0 %v4596_v6  ;;  %v4644_v54 = vpack.c.bf16 %v2321_v39, %v2320_v32  ;;  %v4614_v6 = vpack.c.bf16 %v2273_v55, %v2272_v47  ;;  %v2470_v32 = vld [vmem:[#allocation13 + $0x38] sm:$0xff] }
 0x394   : > { %4629 = vmatprep.subr.bf16.mxu1 %v4628_v25  ;;  %v4658_v39 = vpack.c.bf16 %v2470_v32, %v2469_v28 }
 0x396   : > { %4599 = vmatpush3.bf16.msra.mxu0 %v4598_v29 }
 0x397   : > { %4631 = vmatpush3.bf16.msra.mxu1 %v4630_v48  ;;  %4601 = vmatprep.subr.bf16.mxu0 %v4600_v9 }
 0x398   : > { %4633 = vmatprep.subr.bf16.mxu1 %v4632_v37 }
 0x39a   : > { %4603 = vmatpush3.bf16.msra.mxu0 %v4602_v31 }
 0x39b   : > { %4635 = vmatpush3.bf16.msra.mxu1 %v4634_v38  ;;  %4605 = vmatprep.subr.bf16.mxu0 %v4604_v30 }
 0x39c   : > { %4637 = vmatprep.subr.bf16.mxu1 %v4636_v11 }
 0x39e   : > { %4607 = vmatpush3.bf16.msra.mxu0 %v4606_v22 }
 0x39f   : > { %4639 = vmatpush3.bf16.msra.mxu1 %v4638_v50  ;;  %4609 = vmatprep.subr.bf16.mxu0 %v4608_v63  ;;  %v2463_v50 = vld [vmem:[#allocation13] sm:$0xff]  ;;  %v2466_v63 = vld [vmem:[#allocation13 + $0x18] sm:$0xff] }
 0x3a0   : > { %4641 = vmatprep.subr.bf16.mxu1 %v4640_v58  ;;  %v4652_v12 = vpack.c.bf16 %v2466_v63, %v2465_v46  ;;  %v2729_v63 = vld [vmem:[#allocation16 + $0x48] sm:$0xff] }
 0x3a2   : > { %4611 = vmatpush3.bf16.msra.mxu0 %v4610_v40  ;;  %v2471_v40 = vld [vmem:[#allocation13 + $0x40] sm:$0xff] }
 0x3a3   : > { %4643 = vmatpush3.bf16.msra.mxu1 %v4642_v41  ;;  %4613 = vmatprep.subr.bf16.mxu0 %v4612_v53  ;;  %v2472_v41 = vld [vmem:[#allocation13 + $0x48] sm:$0xff]  ;;  %v2473_v53 = vld [vmem:[#allocation13 + $0x50] sm:$0xff] }
 0x3a4   : > { %4645 = vmatprep.subr.bf16.mxu1 %v4644_v54  ;;  %v4661_v47 = vpack.c.bf16 %v2472_v41, %v2471_v40  ;;  %v2474_v54 = vld [vmem:[#allocation13 + $0x58] sm:$0xff]  ;;  %v2728_v41 = vld [vmem:[#allocation16 + $0x40] sm:$0xff] }
 0x3a5   : > { %v4664_v55 = vpack.c.bf16 %v2474_v54, %v2473_v53 }
 0x3a6   : > { %4615 = vmatpush3.bf16.msra.mxu0 %v4614_v6  ;;  %v4667_v6 = vpack.c.bf16 %v2476_v5, %v2475_v61  ;;  %v2739_v5 = vld [vmem:[#allocation16 + $0x98] sm:$0xff] }
 0x3a7   : > { %4647 = vmatpush3.bf16.msra.mxu1 %v4646_v7  ;;  %4648 = vmatprep.subr.bf16.mxu0 %v5327_v15  ;;  %v2477_v7 = vld [vmem:[#allocation13 + $0x70] sm:$0xff] }
 0x3a8   : > { %4672 = vmatprep.subr.bf16.mxu1 %v5327_v15 }
 0x3dc   : > { %v6313_v62 = vpop.f32.mrb[2].mxu0  ;;  %v6315_v3 = vpop.f32.mrb[2].mxu1 }
 0x3dd   : > { %v6317_v18 = vpop.f32.mrb[3].mxu0  ;;  %v6319_v26 = vpop.f32.mrb[3].mxu1  ;;  %v2218_v24 = vmul.f32 %v6313_v62, %v6313_v62  ;;  %v2220_v25 = vmul.f32 %v6315_v3, %v6315_v3  ;;  %v2230_v44 = vsub.f32 %v5978_v43, %v6313_v62  ;;  %v2232_v30 = vsub.f32 %v6173_v1, %v6315_v3 }
 0x3de   : > { %v2219_v29 = vmul.f32 %v6317_v18, %v6317_v18  ;;  %v2221_v45 = vmul.f32 %v6319_v26, %v6319_v26  ;;  %v2231_v19 = vsub.f32 %v5972_v20, %v6317_v18  ;;  %v2233_v0 = vsub.f32 %v6747_v2, %v6319_v26 }
 0x3df   : > { %v4649_v20 = vpack.c.bf16 %v2464_v42, %v2463_v50  ;;  %v2642_v50 = vld [vmem:[%s6798_s7 + $0x60] sm:$0xff]  ;;  %v2643_v42 = vld [vmem:[%s6798_s7 + $0x68] sm:$0xff] }
 0x45c   : > { %v2071_v35 = vpop.f32.mrb[4].mxu0 }
 0x45d   : > { %v2222_v48 = vsub.f32 %v2071_v35, %v2218_v24  ;;  %v2213_v49 = vpop.f32.mrb[4].mxu1  ;;  %v2073_v56 = vpop.f32.mrb[5].mxu0  ;;  %v2478_v24 = vld [vmem:[#allocation13 + $0x78] sm:$0xff] }
 0x45e   : > { %v2224_v4 = vsub.f32 %v2213_v49, %v2220_v25  ;;  %v2223_v9 = vsub.f32 %v2073_v56, %v2219_v29  ;;  %v2215_v17 = vpop.f32.mrb[5].mxu1  ;;  %v4670_v25 = vpack.c.bf16 %v2478_v24, %v2477_v7  ;;  %v5329_v29 = vmov 0.0   ;;  %v2738_v24 = vld [vmem:[#allocation16 + $0x90] sm:$0xff] }
 0x45f   : > { %v2226_v34 = vmax.f32 %v2222_v48, 0.0  ;;  %v2225_v36 = vsub.f32 %v2215_v17, %v2221_v45  ;;  %v2322_v48 = vld [vmem:[#allocation11] sm:$0x1]  ;;  %v2631_v17 = vld [vmem:[%s6798_s7 + $0x8] sm:$0xff] }
 0x460   : > { %v2228_v37 = vmax.f32 %v2224_v4, 0.0  ;;  %v2227_v31 = vmax.f32 %v2223_v9, 0.0  ;;  %v2630_v9 = vld [vmem:[%s6798_s7] sm:$0xff] }
 0x461   : > { %v2234_v51 = vadd.f32 1e-05, %v2226_v34  ;;  %v2229_v16 = vmax.f32 %v2225_v36, 0.0 }
 0x462   : > { %v2236_v52 = vadd.f32 1e-05, %v2228_v37  ;;  %v2235_v38 = vadd.f32 1e-05, %v2227_v31  ;;  %v4697_v37 = vpack.c.bf16 %v2631_v17, %v2630_v9  ;;  %v2646_v17 = vld [vmem:[#allocation14] sm:$0x1] }
 0x463   : > { %4930 = vrsqrt.f32 %v2234_v51  ;;  %v2237_v60 = vadd.f32 1e-05, %v2229_v16  ;;  %v2632_v51 = vld [vmem:[%s6798_s7 + $0x10] sm:$0xff]  ;;  %v2633_v16 = vld [vmem:[%s6798_s7 + $0x18] sm:$0xff] }
 0x464   : > { %4932 = vrsqrt.f32 %v2236_v52 }
 0x465   : > { %4934 = vrsqrt.f32 %v2235_v38  ;;  %v4700_v38 = vpack.c.bf16 %v2633_v16, %v2632_v51  ;;  %v2741_v51 = vld [vmem:[#allocation16 + $0xa8] sm:$0xff]  ;;  %v2750_v16 = vld [vmem:[#allocation16 + $0xf0] sm:$0xff] }
 0x466   : > { %4936 = vrsqrt.f32 %v2237_v60  ;;  %v2634_v60 = vld [vmem:[%s6798_s7 + $0x20] sm:$0xff] }
 0x46d   : > { %v4931_v8 = vpop.eup %4930 }
 0x46e   : > { %v4933_v11 = vpop.eup %4932  ;;  %v2242_v59 = vmul.f32 %v4931_v8, %v2230_v44  ;;  %v2635_v44 = vld [vmem:[%s6798_s7 + $0x28] sm:$0xff] }
 0x46f   : > { %v4935_v10 = vpop.eup %4934  ;;  %v2244_v23 = vmul.f32 %v4933_v11, %v2232_v30  ;;  %v4703_v8 = vpack.c.bf16 %v2635_v44, %v2634_v60  ;;  %v2636_v30 = vld [vmem:[%s6798_s7 + $0x30] sm:$0xff]  ;;  %v2637_v11 = vld [vmem:[%s6798_s7 + $0x38] sm:$0xff]  ;;  %v4732_v60 = vpack.c.bf16 %v2750_v16, %v2741_v51 }
 0x470   : > { %v4937_v21 = vpop.eup %4936  ;;  %v2243_v22 = vmul.f32 %v4935_v10, %v2231_v19  ;;  %v2250_v43 = vmul.f32 0.2, %v2242_v59  ;;  %vm2246_vm1 = vcmp.gt.f32.partialorder %v2242_v59, 0.0  ;;  %v4706_v19 = vpack.c.bf16 %v2637_v11, %v2636_v30  ;;  %v2639_v10 = vld [vmem:[%s6798_s7 + $0x48] sm:$0xff]  ;;  %v2740_v44 = vld [vmem:[#allocation16 + $0xa0] sm:$0xff]  ;;  %v2725_v11 = vld [vmem:[#allocation16 + $0x28] sm:$0xff] }
 0x471   : > { %v2245_v57 = vmul.f32 %v4937_v21, %v2233_v0  ;;  %v2252_v1 = vmul.f32 0.2, %v2244_v23  ;;  %vm2248_vm3 = vcmp.gt.f32.partialorder %v2244_v23, 0.0  ;;  %v2641_v21 = vld [vmem:[%s6798_s7 + $0x58] sm:$0xff] }
 0x472   : > { %vm2247_vm0 = vcmp.gt.f32.partialorder %v2243_v22, 0.0  ;;  %v2251_v62 = vmul.f32 0.2, %v2243_v22  ;;  %v2254_v26 = vsel %vm2246_vm1, %v2242_v59, %v2250_v43  ;;  %v2638_v59 = vld [vmem:[%s6798_s7 + $0x40] sm:$0xff]  ;;  %v2644_v43 = vld [vmem:[%s6798_s7 + $0x70] sm:$0xff] }
 0x473   : > { %vm2249_vm2 = vcmp.gt.f32.partialorder %v2245_v57, 0.0  ;;  %v2253_v3 = vmul.f32 0.2, %v2245_v57  ;;  %v2256_v58 = vsel %vm2248_vm3, %v2244_v23, %v2252_v1  ;;  %v4709_v0 = vpack.c.bf16 %v2639_v10, %v2638_v59  ;;  %v2640_v23 = vld [vmem:[%s6798_s7 + $0x50] sm:$0xff] }
 0x474   : > { %v2255_v18 = vsel %vm2247_vm0, %v2243_v22, %v2251_v62  ;;  %v4712_v22 = vpack.c.bf16 %v2641_v21, %v2640_v23  ;;  %v2645_v62 = vld [vmem:[%s6798_s7 + $0x78] sm:$0xff]  ;;  %v2743_v21 = vld [vmem:[#allocation16 + $0xb8] sm:$0xff] }
 0x475   : > { %2387 = vmatprep.mubr.f32.mxu0 %v2255_v18  ;;  %v2257_v2 = vsel %vm2249_vm2, %v2245_v57, %v2253_v3  ;;  %v4715_v57 = vpack.c.bf16 %v2643_v42, %v2642_v50  ;;  %v4718_v1 = vpack.c.bf16 %v2645_v62, %v2644_v43  ;;  %v2721_v3 = vld [vmem:[#allocation16 + $0x8] sm:$0xff]  ;;  %v2720_v18 = vld [vmem:[#allocation16] sm:$0xff]  ;;  %v2751_v43 = vld [vmem:[#allocation16 + $0xf8] sm:$0xff] }
 0x476   : > { %2457 = vmatprep.mubr.f32.mxu1 %v2257_v2  ;;  %2388 = vmatmul.mubr.f32.vlgmr.msra.gmra.mrb[6].mxu0 %v2254_v26  ;;  %v4722_v2 = vpack.c.bf16 %v2729_v63, %v2720_v18  ;;  %v2733_v23 = vld [vmem:[#allocation16 + $0x68] sm:$0xff]  ;;  %v2727_v62 = vld [vmem:[#allocation16 + $0x38] sm:$0xff]  ;;  %v2726_v18 = vld [vmem:[#allocation16 + $0x30] sm:$0xff] }
 0x477   : > { %2458 = vmatmul.mubr.f32.vlgmr.msra.gmra.mrb[6].mxu1 %v2256_v58  ;;  %4650 = vmatpush3.bf16.msra.mxu0 %v4649_v20  ;;  %v2745_v63 = vld [vmem:[#allocation16 + $0xc8] sm:$0xff] }
 0x478   : > { %4674 = vmatpush3.bf16.msra.mxu1 %v4649_v20  ;;  %4651 = vmatprep.subr.bf16.mxu0 %v5327_v15  ;;  %v2730_v20 = vld [vmem:[#allocation16 + $0x50] sm:$0xff] }
 0x479   : > { %4675 = vmatprep.subr.bf16.mxu1 %v5327_v15  ;;  %3604 = vmatprep.mubr.msk.f32.mxu0 %vm5328_vm4, %v5329_v29  ;;  %v4720_v46 = vpack.c.bf16 %v2730_v20, %v2721_v3 }
 0x47a   : > { %3639 = vmatprep.mubr.msk.f32.mxu1 %vm5328_vm4, %v5329_v29 }
 0x47b   : > { %4653 = vmatpush3.bf16.msra.mxu0 %v4652_v12 }
 0x47c   : > { %4677 = vmatpush3.bf16.msra.mxu1 %v4652_v12  ;;  %4654 = vmatprep.subr.bf16.mxu0 %v5327_v15 }
 0x47d   : > { %4678 = vmatprep.subr.bf16.mxu1 %v5327_v15 }
 0x47f   : > { %4656 = vmatpush3.bf16.msra.mxu0 %v4655_v27 }
 0x480   : > { %4680 = vmatpush3.bf16.msra.mxu1 %v4655_v27  ;;  %4657 = vmatprep.subr.bf16.mxu0 %v5327_v15 }
 0x481   : > { %4681 = vmatprep.subr.bf16.mxu1 %v5327_v15 }
 0x483   : > { %4659 = vmatpush3.bf16.msra.mxu0 %v4658_v39 }
 0x484   : > { %4683 = vmatpush3.bf16.msra.mxu1 %v4658_v39  ;;  %4660 = vmatprep.subr.bf16.mxu0 %v5327_v15 }
 0x485   : > { %4684 = vmatprep.subr.bf16.mxu1 %v5327_v15 }
 0x487   : > { %4662 = vmatpush3.bf16.msra.mxu0 %v4661_v47 }
 0x488   : > { %4686 = vmatpush3.bf16.msra.mxu1 %v4661_v47  ;;  %4663 = vmatprep.subr.bf16.mxu0 %v5327_v15  ;;  %v2737_v47 = vld [vmem:[#allocation16 + $0x88] sm:$0xff] }
 0x489   : > { %4687 = vmatprep.subr.bf16.mxu1 %v5327_v15 }
 0x48b   : > { %4665 = vmatpush3.bf16.msra.mxu0 %v4664_v55 }
 0x48c   : > { %4689 = vmatpush3.bf16.msra.mxu1 %v4664_v55  ;;  %4666 = vmatprep.subr.bf16.mxu0 %v5327_v15  ;;  %v4753_v55 = vpack.c.bf16 %v2737_v47, %v2728_v41  ;;  %v3437_v47 = vld [vmem:[#allocation17 + $0x8] ss:$0 sm:$0xff] }
 0x48d   : > { %4690 = vmatprep.subr.bf16.mxu1 %v5327_v15 }
 0x48f   : > { %4668 = vmatpush3.bf16.msra.mxu0 %v4667_v6 }
 0x490   : > { %4692 = vmatpush3.bf16.msra.mxu1 %v4667_v6  ;;  %4669 = vmatprep.subr.bf16.mxu0 %v5327_v15  ;;  %v2748_v6 = vld [vmem:[#allocation16 + $0xe0] sm:$0xff] }
 0x491   : > { %4693 = vmatprep.subr.bf16.mxu1 %v5327_v15  ;;  %v4724_v7 = vpack.c.bf16 %v2748_v6, %v2739_v5 }
 0x493   : > { %4671 = vmatpush3.bf16.msra.mxu0 %v4670_v25 }
 0x494   : > { %4695 = vmatpush3.bf16.msra.mxu1 %v4670_v25  ;;  %4696 = vmatprep.subr.bf16.mxu0 %v5327_v15  ;;  %v2747_v25 = vld [vmem:[#allocation16 + $0xd8] sm:$0xff] }
 0x495   : > { %4721 = vmatprep.subr.bf16.mxu1 %v4720_v46  ;;  %v2735_v46 = vld [vmem:[#allocation16 + $0x78] sm:$0xff] }
 0x549   : > { %v3478_v35 = vpop.f32.mrb[6].mxu0 }
 0x54a   : > { %v3513_v45 = vpop.f32.mrb[6].mxu1  ;;  %v3479_v49 = vpop.f32.mrb[7].mxu0 }
 0x54b   : > { %v3480_v56 = vadd.f32 %v3479_v49, %v3478_v35  ;;  %v3514_v4 = vpop.f32.mrb[7].mxu1  ;;  %v4726_v35 = vpack.c.bf16 %v2747_v25, %v2738_v24 }
 0x54c   : > { %v3515_v34 = vadd.f32 %v3514_v4, %v3513_v45  ;;  %v2746_v45 = vld [vmem:[#allocation16 + $0xd0] sm:$0xff]  ;;  %v2732_v4 = vld [vmem:[#allocation16 + $0x60] sm:$0xff] }
 0x54d   : > { %v2390_v36 = vadd.f32 %v3480_v56, %v2322_v48  ;;  %v2755_v48 = vld [vmem:[#allocation16 + $0x118] sm:$0xff] }
 0x54e   : > { %v4756_v49 = vpack.c.bf16 %v2755_v48, %v2746_v45  ;;  %v2723_v56 = vld [vmem:[#allocation16 + $0x18] sm:$0xff] }
 0x54f   : > { %v6364_v31 = vadd.f32 %v3515_v34, %v2390_v36  ;;  %v4728_v9 = vpack.c.bf16 %v2732_v4, %v2723_v56  ;;  %v2722_v36 = vld [vmem:[#allocation16 + $0x10] sm:$0xff] }
 0x551   : > { %v2549_v52 = vmul.f32 %v6364_v31, %v6364_v31  ;;  %3605 = vmatmul.mubr.f32.vlgmr.msra.gmra.mrb[8].mxu0 %v6364_v31 }
 0x552   : > { %4698 = vmatpush3.bf16.msra.mxu0 %v4697_v37  ;;  %3674 = vmatprep.mubr.msk.f32.mxu0 %vm5328_vm4, %v5329_v29 }
 0x553   : > { %3640 = vmatmul.mubr.f32.vlgmr.msra.gmra.mrb[8].mxu1 %v2549_v52  ;;  %4699 = vmatprep.subr.bf16.mxu0 %v5327_v15 }
 0x554   : > { %2873 = vmatprep.mubr.f32.mxu1 %v5329_v29  ;;  %4723 = vmatpush1.bf16.msra.mxu1 %v4722_v2  ;;  %v2754_v2 = vld [vmem:[#allocation16 + $0x110] sm:$0xff] }
 0x555   : > { %4725 = vmatprep.subr.bf16.mxu1 %v4724_v7 }
 0x556   : > { %4701 = vmatpush3.bf16.msra.mxu0 %v4700_v38 }
 0x557   : > { %4702 = vmatprep.subr.bf16.mxu0 %v5327_v15 }
 0x558   : > { %4727 = vmatpush1.bf16.msra.mxu1 %v4726_v35 }
 0x559   : > { %4729 = vmatprep.subr.bf16.mxu1 %v4728_v9  ;;  %v6803_v9 = vld [vmem:[#allocation31_spill] sm:$0xff] }
 0x55a   : > { %4704 = vmatpush3.bf16.msra.mxu0 %v4703_v8  ;;  %v2749_v8 = vld [vmem:[#allocation16 + $0xe8] sm:$0xff] }
 0x55b   : > { %4705 = vmatprep.subr.bf16.mxu0 %v5327_v15  ;;  %v4734_v59 = vpack.c.bf16 %v2749_v8, %v2740_v44 }
 0x55e   : > { %4707 = vmatpush3.bf16.msra.mxu0 %v4706_v19  ;;  %v2734_v19 = vld [vmem:[#allocation16 + $0x70] sm:$0xff] }
 0x55f   : > { %4708 = vmatprep.subr.bf16.mxu0 %v5327_v15  ;;  %v4736_v10 = vpack.c.bf16 %v2734_v19, %v2725_v11 }
 0x562   : > { %4710 = vmatpush3.bf16.msra.mxu0 %v4709_v0  ;;  %v2724_v0 = vld [vmem:[#allocation16 + $0x20] sm:$0xff] }
 0x563   : > { %4711 = vmatprep.subr.bf16.mxu0 %v5327_v15  ;;  %v4738_v50 = vpack.c.bf16 %v2733_v23, %v2724_v0 }
 0x566   : > { %4713 = vmatpush3.bf16.msra.mxu0 %v4712_v22  ;;  %v2752_v22 = vld [vmem:[#allocation16 + $0x100] sm:$0xff] }
 0x567   : > { %4714 = vmatprep.subr.bf16.mxu0 %v5327_v15  ;;  %v4740_v42 = vpack.c.bf16 %v2752_v22, %v2743_v21 }
 0x56a   : > { %4716 = vmatpush3.bf16.msra.mxu0 %v4715_v57  ;;  %v2742_v57 = vld [vmem:[#allocation16 + $0xb0] sm:$0xff] }
 0x56b   : > { %4717 = vmatprep.subr.bf16.mxu0 %v5327_v15  ;;  %v4742_v3 = vpack.c.bf16 %v2751_v43, %v2742_v57 }
 0x56e   : > { %4719 = vmatpush3.bf16.msra.mxu0 %v4718_v1  ;;  %v2736_v1 = vld [vmem:[#allocation16 + $0x80] sm:$0xff] }
 0x56f   : > { %4752 = vmatprep.subr.bf16.mxu0 %v5327_v15  ;;  %v4744_v20 = vpack.c.bf16 %v2736_v1, %v2727_v62 }
 0x624   : > { %v2545_v26 = vpop.f32.mrb[8].mxu0 }
 0x625   : > { %v2620_v58 = vmul.f32 %v2545_v26, %v2545_v26  ;;  %v3606_v12 = vpop.f32.mrb[9].mxu0  ;;  %v2623_v39 = vsub.f32 %v6364_v31, %v2545_v26  ;;  %v4746_v26 = vpack.c.bf16 %v2735_v46, %v2726_v18 }
 0x626   : > { %v2616_v13 = vpop.f32.mrb[8].mxu1  ;;  %v2744_v12 = vld [vmem:[#allocation16 + $0xc0] sm:$0xff] }
 0x627   : > { %v2621_v14 = vsub.f32 %v2616_v13, %v2620_v58  ;;  %v3641_v27 = vpop.f32.mrb[9].mxu1  ;;  %v4748_v58 = vpack.c.bf16 %v2754_v2, %v2745_v63  ;;  %v2753_v13 = vld [vmem:[#allocation16 + $0x108] sm:$0xff] }
 0x628   : > { %v5330_v27 = vmov 1966171168  }
 0x629   : > { %v2622_v28 = vmax.f32 %v2621_v14, 0.0  ;;  %v4750_v14 = vpack.c.bf16 %v2753_v13, %v2744_v12 }
 0x62b   : > { %v2624_v32 = vadd.f32 1e-05, %v2622_v28  ;;  %v3177_v28 = vunpack.c.l.s4 %v5330_v27 }
 0x62d   : > { %4938 = vrsqrt.f32 %v2624_v32  ;;  %v2756_v32 = vld [vmem:[#allocation17] sm:$0xff] }
 0x62e   : > { %v2771_v4 = vrot.slane %v2756_v32, %v5752_v33 }
 0x637   : > { %v4939_v40 = vpop.eup %4938 }
 0x638   : > { %v2626_v53 = vmul.f32 %v4939_v40, %v2623_v39  ;;  %v3178_v39 = vunpack.c.0.s8 %v3177_v28  ;;  %v6799_v40 = vld [vmem:[#allocation30_spill] sm:$0xff] }
 0x639   : > { %v2763_v41 = vrot.slane %v2756_v32, %v6799_v40 }
 0x63a   : > { %vm2627_vm5 = vcmp.gt.f32.partialorder %v2626_v53, 0.0  ;;  %v2628_v54 = vmul.f32 0.2, %v2626_v53 }
 0x63c   : > { %v2629_v61 = vsel %vm2627_vm5, %v2626_v53, %v2628_v54  ;;  %v6800_v53 = vld [vmem:[#allocation29_spill] sm:$0xff] }
 0x63d   : > { %3675 = vmatmul.mubr.f32.vlgmr.msra.gmra.mrb[10].mxu0 %v2629_v61  ;;  %v2767_v54 = vrot.slane %v2756_v32, %v6800_v53 }
 0x63e   : > { %4754 = vmatpush3.bf16.msra.mxu0 %v4753_v55  ;;  %3685 = vmatprep.mubr.msk.f32.mxu0 %vm5328_vm4, %v5329_v29  ;;  %v6801_v55 = vld [vmem:[#allocation28_spill] sm:$0xff] }
 0x63f   : > { %4755 = vmatprep.subr.bf16.mxu0 %v5327_v15  ;;  %v2731_v15 = vld [vmem:[#allocation16 + $0x58] sm:$0xff]  ;;  %v3181_v61 = vsub.s32 %v3178_v39, %v6801_v55  ;;  %v6804_v51 = vsub.s32 4, %v6801_v55  ;;  %v2786_v19 = vsub.s32 6, %v6801_v55 }
 0x640   : > { %v4730_v38 = vpack.c.bf16 %v2731_v15, %v2722_v36 }
 0x641   : > { %v2779_v16 = vrot.slane %v2756_v32, %v6804_v51  ;;  %v2787_v23 = vrot.slane %v2756_v32, %v2786_v19 }
 0x642   : > { %4757 = vmatpush3.bf16.msra.mxu0 %v4756_v49  ;;  %v6802_v49 = vlaneseq }
 0x644   : > { %vm3240_vm8 = vcmp.lt.s32.totalorder %v6802_v49, 128 }
 0x710   : > { %v2713_v34 = vpop.f32.mrb[10].mxu0 }
 0x711   : > { %v2714_v37 = vadd.f32 %v2713_v34, %v2646_v17  ;;  %v3676_v31 = vpop.f32.mrb[11].mxu0  ;;  %v2775_v17 = vrot.slane %v2756_v32, %v6803_v9 }
 0x713   : > { %vm2717_vm6 = vcmp.gt.f32.partialorder %v2714_v37, 0.0  ;;  %v2718_v52 = vmul.f32 0.2, %v2714_v37 }
 0x715   : > { %v2719_v30 = vsel %vm2717_vm6, %v2714_v37, %v2718_v52 }
 0x716   : > { %3438 = vmatmul.mubr.msk.f32.vlgmr.msra.gmra.mrb[10].mxu1 %vm2805_vm7, %v2719_v30  ;;  %3686 = vmatmul.mubr.msk.f32.vlgmr.msra.gmra.mrb[12].mxu0 %vm2805_vm7, %v2719_v30 }
 0x717   : > { %4731 = vmatpush1.bf16.msra.mxu1 %v4730_v38  ;;  %2944 = vmatprep.mubr.f32.mxu1 %v5329_v29 }
 0x718   : > { %4733 = vmatprep.subr.bf16.mxu1 %v4732_v60  ;;  %v6805_v60 = vsub.s32 5, %v6801_v55 }
 0x71a   : > { %v2783_v44 = vrot.slane %v2756_v32, %v6805_v60 }
 0x71b   : > { %4735 = vmatpush1.bf16.msra.mxu1 %v4734_v59 }
 0x71c   : > { %4737 = vmatprep.subr.bf16.mxu1 %v4736_v10  ;;  %v2790_v10 = vsub.s32 7, %v6801_v55 }
 0x71e   : > { %3439 = vmatmul.mubr.msk.f32.vlgmr.msra.gmra.mrb[12].mxu1 %vm2805_vm7, %v2719_v30  ;;  %v2791_v21 = vrot.slane %v2756_v32, %v2790_v10 }
 0x71f   : > { %4739 = vmatpush1.bf16.msra.mxu1 %v4738_v50  ;;  %3015 = vmatprep.mubr.f32.mxu1 %v5329_v29 }
 0x720   : > { %4741 = vmatprep.subr.bf16.mxu1 %v4740_v42 }
 0x723   : > { %4743 = vmatpush1.bf16.msra.mxu1 %v4742_v3 }
 0x724   : > { %4745 = vmatprep.subr.bf16.mxu1 %v4744_v20 }
 0x726   : > { %3440 = vmatmul.mubr.msk.f32.vlgmr.msra.gmra.mrb[14].mxu1 %vm2805_vm7, %v2719_v30 }
 0x727   : > { %4747 = vmatpush1.bf16.msra.mxu1 %v4746_v26  ;;  %3086 = vmatprep.mubr.f32.mxu1 %v5329_v29 }
 0x728   : > { %4749 = vmatprep.subr.bf16.mxu1 %v4748_v58 }
 0x72b   : > { %4751 = vmatpush1.bf16.msra.mxu1 %v4750_v14 }
 0x72e   : > { %3441 = vmatmul.mubr.msk.f32.vlgmr.msra.gmra.mrb[16].mxu1 %vm2805_vm7, %v2719_v30 }
 0x7e9   : > { %v2875_v5 = vpop.f32.mrb[10].mxu1  ;;  %v3159_v6 = vpop.f32.mrb[12].mxu0 }
 0x7ea   : > { %v2876_v7 = vadd.f32 %v2875_v5, %v2763_v41  ;;  %v3160_v29 = vadd.f32 %v3437_v47, %v3159_v6  ;;  %v2877_v24 = vpop.f32.mrb[11].mxu1  ;;  %v3687_v25 = vpop.f32.mrb[13].mxu0 }
 0x7eb   : > { %v2878_v35 = vadd.f32 %v2877_v24, %v2767_v54 }
 0x7ec   : > { %v3227_v45 = vrot.slane %v3160_v29, %v3181_v61 }
 0x7ed   : > { %v3172_v48 = vcombine.low %v2876_v7, %v2878_v35 }
 0x7ee   : > { %v3234_v56 = vrot.slane %v3227_v45, %v3181_v61 }
 0x7ef   : > { %v3182_v52 = vrot.slane %v3172_v48, %v3181_v61 }
 0x7f0   : > { %3242 = vst.msk [vmem:[%s6441_s14 + $0x8] sm:$0x1] %vm3240_vm8, %v3234_v56 }
 0x7f1   : > { %v2946_v34 = vpop.f32.mrb[12].mxu1 }
 0x7f2   : > { %v2947_v36 = vadd.f32 %v2946_v34, %v2771_v4  ;;  %v2948_v15 = vpop.f32.mrb[13].mxu1 }
 0x7f3   : > { %v2949_v37 = vadd.f32 %v2948_v15, %v2775_v17 }
 0x7f5   : > { %v3173_v31 = vcombine.low %v2947_v36, %v2949_v37 }
 0x7f7   : > { %v3189_v38 = vrot.slane %v3173_v31, %v3181_v61 }
 0x7f9   : > { %v3204_v33 = vcombine.low %v3182_v52, %v3189_v38  ;;  %v3017_v8 = vpop.f32.mrb[14].mxu1 }
 0x7fa   : > { %v3018_v30 = vadd.f32 %v3017_v8, %v2779_v16  ;;  %v3019_v11 = vpop.f32.mrb[15].mxu1 }
 0x7fb   : > { %v3020_v59 = vadd.f32 %v3019_v11, %v2783_v44  ;;  %v3212_v20 = vrot.slane %v3204_v33, %v3181_v61 }
 0x7fd   : > { %v3174_v0 = vcombine.low %v3018_v30, %v3020_v59 }
 0x7ff   : > { %v3196_v62 = vrot.slane %v3174_v0, %v3181_v61 }
 0x801   : > { %v3088_v22 = vpop.f32.mrb[16].mxu1 }
 0x802   : > { %v3089_v50 = vadd.f32 %v3088_v22, %v2787_v23  ;;  %v3090_v42 = vpop.f32.mrb[17].mxu1 }
 0x803   : > { %v3091_v57 = vadd.f32 %v3090_v42, %v2791_v21 }
 0x805   : > { %v3175_v43 = vcombine.low %v3089_v50, %v3091_v57 }
 0x807   : > { %v3203_v1 = vrot.slane %v3175_v43, %v3181_v61 }
 0x809   : > { %v3205_v3 = vcombine.low %v3196_v62, %v3203_v1 }
 0x80b   : > { %v3219_v18 = vrot.slane %v3205_v3, %v3181_v61 }
 0x80d   : > { %v3220_v46 = vcombine.low %v3212_v20, %v3219_v18 }
 0x80f   : > { %3237 = vst [vmem:[%s6441_s14] sm:$0xff] %v3220_v46 }
 0x810   : > { %5236 = shalt.err (!%p5233_p8)
}
 0x811   : > { %s5237_s24 = scalar_lea.hbm %s6455_s12, 144  ;;  %s5241_s26 = scalar_lea.hbm %s6806_s16, 288 }
 0x812   : > { %p5238_p5 = scmp.ne.s32.totalorder %s6455_s12, %s5237_s24  ;;  %p5242_p4 = scmp.lt.u32.totalorder %s6455_s12, %s6806_s16 }
 0x813   : > { %p5243_p12 = scmp.lt.u32.totalorder %s5241_s26, %s5237_s24  ;;  %p5245_p1 = scmp.lt.u32.totalorder %s5237_s24, %s6455_s12 }
 0x814   : > { %p5239_p9 = pnand %p5238_p5, %p6807_p3 }
 0x815   : > { %p5244_p13 = por %p5243_p12, %p5242_p4 }
 0x816   : > { %p5240_p7 = pneg %p5239_p9 }
 0x817   : > { %p5246_p2 = por %p5245_p1, %p5244_p13 }
 0x819   : > { %p5247_p0 = pnand %p5246_p2, %p5240_p7 }
 0x81b   : > { %5250 = shalt.err (!%p5247_p0)
}
 0x81c   : > { %4821 = dma.vmem_to_hbm [thread:$0]  (%p6807_p3), %s6457_s30, 144, %s6455_s12, %s3244_s28  }
 0x81d PF: > { %s3270_s11 = sand.u32 1, %s5297_s17   ;;  %p6808_p6 = scmp.ne.s32.totalorder %s6620_s13, 0 }
 0x81e   : > { %p6809_p10 = scmp.ge.s32.totalorder %s5309_s20, 2  ;;  %s3271_s23 = scalar_lea.sflag [#allocation4], %s3270_s11 }
 0x820   : > { %p4856_p11 = pnand %p6809_p10, %p6808_p6 }
 0x822   : > { %5292 = dma.done.wait (!%p4856_p11), %s3271_s23, 144  }
 0x823   : > { %5294 = vsyncadd (!%p4856_p11), %s3271_s23, 4294967152  ;;  %p29_p8 = scmp.ge.s32.totalorder %s5630_s27, 4   ;;  %s6810_s17 = smov %s5301_s18 }
 0x824   : > { %s6811_s18 = smov %s5305_s19  ;;  %s6812_s19 = smov %s5642_s21 }
 0x825   : > { %s6813_s20 = smov %s5630_s27  ;;  %31 = sbr.rel (!%p29_p8) target bundleno = 15 (0xf), region = 145 }
 0x82c   :  { %3276 = vsyncpa [#allocation3], 1 }
 0x82d   :  { %3278 = vsyncpa [#allocation3 + $0x1], 1 }
 0x82e   :  { %3279 = vsyncpa [#allocation6], 1 }
 0x82f   :  { %3280 = vsyncpa [#allocation9], 1 }
 0x830   :  { %3281 = vsyncpa [#allocation12], 1 }
 0x831   :  { %3282 = vsyncpa [#allocation15], 1 }
 0x832   :  { %3283 = vsyncpa [#allocation18], 1 }
 0x833   :  { %3284 = vsyncpa [#allocation4], 1 }
 0x834   :  { %3286 = vsyncpa [#allocation4 + $0x1], 1 }

</bundles_post_ra>
